<compile_context>
chip_gen: v7x
topology: tpu7x:2x2x1
jax: 0.10.0
libtpu: 0.0.40
codegen_flags: <defaults>
</compile_context>

<pallas_src>
import functools

import jax
import jax.numpy as jnp
from jax.experimental import pallas as pl
from jax.experimental.pallas import tpu as pltpu  # noqa: F401  (TPU backend assumed)

EPS_LN = 1e-5   # torch.nn.LayerNorm default
EPS_IN = 1e-5   # torch.nn.InstanceNorm2d default

_WEIGHT_NAMES = (
    # --- STransformer ---
    "s_wq_bd", "s_wk_bd", "s_wv_bd", "s_fc_wT", "s_fc_b",
    "s_ln1_g", "s_ln1_b",
    "s_ff_w1T", "s_ff_b1", "s_ff_w2T", "s_ff_b2",
    "s_ln2_g", "s_ln2_b",
    "gcn_w1", "gcn_b1", "gcn_w2", "gcn_b2",
    "s_g1_wT", "s_g1_b", "s_g2_wT", "s_g2_b",
    # --- TTransformer ---
    "t_wq_bd", "t_wk_bd", "t_wv_bd", "t_fc_wT", "t_fc_b",
    "t_ln1_g", "t_ln1_b",
    "t_ff_w1T", "t_ff_b1", "t_ff_w2T", "t_ff_b2",
    "t_ln2_g", "t_ln2_b",
)


# ---------------------------------------------------------------------------
# In-kernel helpers (pure jnp on values)
# ---------------------------------------------------------------------------

def _layernorm(x, gamma, beta):
    mu = jnp.mean(x, axis=-1, keepdims=True)
    var = jnp.mean(jnp.square(x - mu), axis=-1, keepdims=True)
    return (x - mu) * jax.lax.rsqrt(var + EPS_LN) * gamma + beta


def _masked_mha(q2, k2, v2, wq, wk, wv, fc_wT, fc_b, mask, heads):
    """Multi-head attention over the flat (R, C) row slab.

    `mask` is an additive (R, R) group mask (0 inside the group, -1e30 outside), so one
    masked softmax per head reproduces the per-time-step / per-node grouped attention of
    SSelfAttention / TSelfAttention exactly, with no in-kernel regrouping.
    The 1/sqrt(embed_size) scale is pre-folded into `wq`.
    """
    R, C = q2.shape
    D = C // heads
    qp = jnp.dot(q2, wq, preferred_element_type=jnp.float32)
    kp = jnp.dot(k2, wk, preferred_element_type=jnp.float32)
    vp = jnp.dot(v2, wv, preferred_element_type=jnp.float32)
    acc = jnp.zeros((R, C), jnp.float32)
    for h in range(heads):                       # static tiny loop (H = 4)
        sl = slice(h * D, (h + 1) * D)
        e = jnp.einsum("qd,kd->qk", qp[:, sl], kp[:, sl],
                       preferred_element_type=jnp.float32) + mask
        e = e - jnp.max(e, axis=-1, keepdims=True)
        p = jnp.exp(e)
        attn = p * pl.reciprocal(jnp.sum(p, axis=-1, keepdims=True), approx=True)
        ctx_h = jnp.dot(attn, vp[:, sl], preferred_element_type=jnp.float32)     # (R, D)
        # fc_out folded per head slice of its weight: concat(ctx) @ fcT == sum_h ctx_h @ fcT[h]
        acc = acc + jnp.dot(ctx_h, fc_wT[sl, :], preferred_element_type=jnp.float32)
    return acc + fc_b


# ---------------------------------------------------------------------------
# The single fused kernel
# ---------------------------------------------------------------------------

def _st_block_kernel(q_ref, k_ref, v_ref, adj_ref, enc_ref, smask_ref, tmask_ref,
                     *wrefs, heads):
    assert len(wrefs) == len(_WEIGHT_NAMES) + 1
    w = {name: ref for name, ref in zip(_WEIGHT_NAMES, wrefs)}
    o_ref = wrefs[-1]

    q2 = q_ref[...]                                  # (R, C), rows = (node, time)
    k2 = k_ref[...]
    v2 = v_ref[...]

    # =================== STransformer ===================
    s_attn = _masked_mha(q2, k2, v2,
                         w["s_wq_bd"][...], w["s_wk_bd"][...], w["s_wv_bd"][...],
                         w["s_fc_wT"][...], w["s_fc_b"][...],
                         smask_ref[...], heads)
    x = _layernorm(s_attn + q2, w["s_ln1_g"][...], w["s_ln1_b"][...])
    h = jnp.maximum(
        jnp.dot(x, w["s_ff_w1T"][...], preferred_element_type=jnp.float32)
        + w["s_ff_b1"][...], 0.0)
    y = (jnp.dot(h, w["s_ff_w2T"][...], preferred_element_type=jnp.float32)
         + w["s_ff_b2"][...] + x)
    out1 = _layernorm(y, w["s_ln2_g"][...], w["s_ln2_b"][...])

    # GCN branch on the original query.  adj_ref holds kron(adj_norm, I_T), so the
    # per-time-step graph convolution becomes two dense 2-D matmuls on the (R, C) slab.
    # TODO(synk): GCN class is not defined in the reference file; standard 2-layer Kipf
    # GCN (no trailing log_softmax) is assumed.
    adjk = adj_ref[...]
    s1 = jnp.dot(q2, w["gcn_w1"][...], preferred_element_type=jnp.float32)
    h1 = jnp.maximum(
        jnp.dot(adjk, s1, preferred_element_type=jnp.float32) + w["gcn_b1"][...], 0.0)
    s2 = jnp.dot(h1, w["gcn_w2"][...], preferred_element_type=jnp.float32)
    out2 = jnp.dot(adjk, s2, preferred_element_type=jnp.float32) + w["gcn_b2"][...]

    # gated fusion + block-level residual (x1 = STransformer(...) + query)
    z = (jnp.dot(out1, w["s_g1_wT"][...], preferred_element_type=jnp.float32)
         + w["s_g1_b"][...]
         + jnp.dot(out2, w["s_g2_wT"][...], preferred_element_type=jnp.float32)
         + w["s_g2_b"][...])
    g = jax.nn.sigmoid(z)
    x1 = g * out1 + (1.0 - g) * out2 + q2

    # =================== TTransformer ===================
    qt = x1 + enc_ref[...]                           # query + one-hot temporal encoding
    t_attn = _masked_mha(qt, x1, x1,
                         w["t_wq_bd"][...], w["t_wk_bd"][...], w["t_wv_bd"][...],
                         w["t_fc_wT"][...], w["t_fc_b"][...],
                         tmask_ref[...], heads)
    xt = _layernorm(t_attn + qt, w["t_ln1_g"][...], w["t_ln1_b"][...])
    ht = jnp.maximum(
        jnp.dot(xt, w["t_ff_w1T"][...], preferred_element_type=jnp.float32)
        + w["t_ff_b1"][...], 0.0)
    yt = (jnp.dot(ht, w["t_ff_w2T"][...], preferred_element_type=jnp.float32)
          + w["t_ff_b2"][...] + xt)
    out_t = _layernorm(yt, w["t_ln2_g"][...], w["t_ln2_b"][...])

    # final block residual: x2 = TTransformer(x1, x1, x1, i) + x1
    o_ref[...] = out_t + x1


# ---------------------------------------------------------------------------
# Forward wrapper (tiny XLA glue: adj InstanceNorm + kron, one-hot gather, group masks)
# ---------------------------------------------------------------------------

def st_transformer_block(kparams, value, key_, query, adj, i, *, heads, time_num):
    N, T, C = query.shape
    R = N * T

    # adj InstanceNorm2d(1): one (N, N) plane, biased variance, no affine.
    adj_n = (adj - jnp.mean(adj)) * jax.lax.rsqrt(jnp.var(adj) + EPS_IN)
    # Lift to the flattened (node, time) row space so the GCN is plain 2-D matmuls.
    adj_big = jnp.kron(adj_n, jnp.eye(T, dtype=jnp.float32))             # (R, R)

    # One_hot_encoder: Linear applied to one-hot rows == row gather of the Linear weight.
    # TODO(synk): assumes One_hot_encoder's trainable eye parameter stays the identity.
    idx = (jnp.asarray(i) + jnp.arange(T)) % time_num
    enc = jnp.take(kparams["oh_wT"], idx, axis=0) + kparams["oh_b"]      # (T, C)
    enc_rows = jnp.tile(enc, (N, 1))                                     # (R, C)

    # Additive group masks: spatial attention mixes nodes at the same time step,
    # temporal attention mixes time steps of the same node.
    r = jnp.arange(R)
    s_mask = jnp.where((r[:, None] % T) == (r[None, :] % T), 0.0, -1e30).astype(jnp.float32)
    t_mask = jnp.where((r[:, None] // T) == (r[None, :] // T), 0.0, -1e30).astype(jnp.float32)

    out2d = pl.pallas_call(
        functools.partial(_st_block_kernel, heads=heads),
        out_shape=jax.ShapeDtypeStruct((R, C), jnp.float32),
    )(query.reshape(R, C), key_.reshape(R, C), value.reshape(R, C),
      adj_big, enc_rows, s_mask, t_mask,
      *[kparams[name] for name in _WEIGHT_NAMES])
    return out2d.reshape(N, T, C)


# ---------------------------------------------------------------------------
# Parameters: PyTorch-layout init + one-time host-side re-layout for the kernel
# ---------------------------------------------------------------------------

def init_params(rng, embed_size, heads, time_num, forward_expansion):
    C = embed_size
    D = C // heads
    F = forward_expansion * C
    keys = iter(jax.random.split(rng, 40))

    def w(shape, s=0.1):
        return jax.random.normal(next(keys), shape, jnp.float32) * s

    p = {}
    # STransformer / SSelfAttention
    p["s_wq"], p["s_wk"], p["s_wv"] = w((D, D)), w((D, D)), w((D, D))
    p["s_fc_w"], p["s_fc_b"] = w((C, C)), w((C,), 0.01)
    p["s_ln1_g"], p["s_ln1_b"] = jnp.ones((C,)), jnp.zeros((C,))
    p["s_ln2_g"], p["s_ln2_b"] = jnp.ones((C,)), jnp.zeros((C,))
    p["s_ff_w1"], p["s_ff_b1"] = w((F, C)), w((F,), 0.01)
    p["s_ff_w2"], p["s_ff_b2"] = w((C, F)), w((C,), 0.01)
    p["gcn_w1"], p["gcn_b1"] = w((C, C)), w((C,), 0.01)
    p["gcn_w2"], p["gcn_b2"] = w((C, C)), w((C,), 0.01)
    p["s_g1_w"], p["s_g1_b"] = w((C, C)), w((C,), 0.01)
    p["s_g2_w"], p["s_g2_b"] = w((C, C)), w((C,), 0.01)
    # TTransformer / TSelfAttention
    p["t_wq"], p["t_wk"], p["t_wv"] = w((D, D)), w((D, D)), w((D, D))
    p["t_fc_w"], p["t_fc_b"] = w((C, C)), w((C,), 0.01)
    p["t_ln1_g"], p["t_ln1_b"] = jnp.ones((C,)), jnp.zeros((C,))
    p["t_ln2_g"], p["t_ln2_b"] = jnp.ones((C,)), jnp.zeros((C,))
    p["t_ff_w1"], p["t_ff_b1"] = w((F, C)), w((F,), 0.01)
    p["t_ff_w2"], p["t_ff_b2"] = w((C, F)), w((C,), 0.01)
    # One_hot_encoder Linear(time_num -> C)
    p["oh_w"], p["oh_b"] = w((C, time_num)), w((C,), 0.01)
    return p


def prepare_kernel_params(p, *, heads, embed_size):
    """One-time host-side re-layout: block-diagonal per-head projections (scale folded
    into Wq), transposed Linear weights, (1, len) bias/LN rows, one-hot weight rows."""
    C = embed_size
    H = heads
    scale = 1.0 / (C ** 0.5)
    eye_h = jnp.eye(H, dtype=jnp.float32)

    def head_blockdiag(w_dd):          # per-head Linear (D,D) -> (C,C) acting on full C
        return jnp.kron(eye_h, w_dd.T)

    def row(v):
        return v.reshape(1, -1)

    kp = {
        "s_wq_bd": head_blockdiag(p["s_wq"]) * scale,
        "s_wk_bd": head_blockdiag(p["s_wk"]),
        "s_wv_bd": head_blockdiag(p["s_wv"]),
        "s_fc_wT": p["s_fc_w"].T, "s_fc_b": row(p["s_fc_b"]),
        "s_ln1_g": row(p["s_ln1_g"]), "s_ln1_b": row(p["s_ln1_b"]),
        "s_ff_w1T": p["s_ff_w1"].T, "s_ff_b1": row(p["s_ff_b1"]),
        "s_ff_w2T": p["s_ff_w2"].T, "s_ff_b2": row(p["s_ff_b2"]),
        "s_ln2_g": row(p["s_ln2_g"]), "s_ln2_b": row(p["s_ln2_b"]),
        "gcn_w1": p["gcn_w1"], "gcn_b1": row(p["gcn_b1"]),
        "gcn_w2": p["gcn_w2"], "gcn_b2": row(p["gcn_b2"]),
        "s_g1_wT": p["s_g1_w"].T, "s_g1_b": row(p["s_g1_b"]),
        "s_g2_wT": p["s_g2_w"].T, "s_g2_b": row(p["s_g2_b"]),
        "t_wq_bd": head_blockdiag(p["t_wq"]) * scale,
        "t_wk_bd": head_blockdiag(p["t_wk"]),
        "t_wv_bd": head_blockdiag(p["t_wv"]),
        "t_fc_wT": p["t_fc_w"].T, "t_fc_b": row(p["t_fc_b"]),
        "t_ln1_g": row(p["t_ln1_g"]), "t_ln1_b": row(p["t_ln1_b"]),
        "t_ff_w1T": p["t_ff_w1"].T, "t_ff_b1": row(p["t_ff_b1"]),
        "t_ff_w2T": p["t_ff_w2"].T, "t_ff_b2": row(p["t_ff_b2"]),
        "t_ln2_g": row(p["t_ln2_g"]), "t_ln2_b": row(p["t_ln2_b"]),
        "oh_wT": p["oh_w"].T, "oh_b": row(p["oh_b"]),
    }
    return kp


if __name__ == "__main__":
    embed_size, heads, time_num, forward_expansion = 32, 4, 16, 2
    N, T = 8, 4            # num_nodes, time_steps
    i = 3                  # start index for the One_hot_encoder

    root = jax.random.PRNGKey(0)
    k_param, k_v, k_k, k_q, k_a = jax.random.split(root, 5)
    params = init_params(k_param, embed_size, heads, time_num, forward_expansion)
    kparams = prepare_kernel_params(params, heads=heads, embed_size=embed_size)

    value = jax.random.normal(k_v, (N, T, embed_size), jnp.float32)
    key_t = jax.random.normal(k_k, (N, T, embed_size), jnp.float32)
    query = jax.random.normal(k_q, (N, T, embed_size), jnp.float32)
    adj = jax.random.uniform(k_a, (N, N), jnp.float32)

    fwd = jax.jit(functools.partial(st_transformer_block,
                                    heads=heads, time_num=time_num))
    out = fwd(kparams, value, key_t, query, adj, i)
    jax.block_until_ready(out)
    assert out.shape == (N, T, embed_size)
    assert bool(jnp.isfinite(out).all())
    print("KERNEL_OK")
</pallas_src>

<mosaic_0001>
module attributes {stable_mosaic.version = 11 : i64} {
  func.func @_st_block_kernel(%arg0: memref<32x32xf32, #tpu.memory_space<vmem>>, %arg1: memref<32x32xf32, #tpu.memory_space<vmem>>, %arg2: memref<32x32xf32, #tpu.memory_space<vmem>>, %arg3: memref<32x32xf32, #tpu.memory_space<vmem>>, %arg4: memref<32x32xf32, #tpu.memory_space<vmem>>, %arg5: memref<32x32xf32, #tpu.memory_space<vmem>>, %arg6: memref<32x32xf32, #tpu.memory_space<vmem>>, %arg7: memref<32x32xf32, #tpu.memory_space<vmem>>, %arg8: memref<32x32xf32, #tpu.memory_space<vmem>>, %arg9: memref<32x32xf32, #tpu.memory_space<vmem>>, %arg10: memref<32x32xf32, #tpu.memory_space<vmem>>, %arg11: memref<1x32xf32, #tpu.memory_space<vmem>>, %arg12: memref<1x32xf32, #tpu.memory_space<vmem>>, %arg13: memref<1x32xf32, #tpu.memory_space<vmem>>, %arg14: memref<32x64xf32, #tpu.memory_space<vmem>>, %arg15: memref<1x64xf32, #tpu.memory_space<vmem>>, %arg16: memref<64x32xf32, #tpu.memory_space<vmem>>, %arg17: memref<1x32xf32, #tpu.memory_space<vmem>>, %arg18: memref<1x32xf32, #tpu.memory_space<vmem>>, %arg19: memref<1x32xf32, #tpu.memory_space<vmem>>, %arg20: memref<32x32xf32, #tpu.memory_space<vmem>>, %arg21: memref<1x32xf32, #tpu.memory_space<vmem>>, %arg22: memref<32x32xf32, #tpu.memory_space<vmem>>, %arg23: memref<1x32xf32, #tpu.memory_space<vmem>>, %arg24: memref<32x32xf32, #tpu.memory_space<vmem>>, %arg25: memref<1x32xf32, #tpu.memory_space<vmem>>, %arg26: memref<32x32xf32, #tpu.memory_space<vmem>>, %arg27: memref<1x32xf32, #tpu.memory_space<vmem>>, %arg28: memref<32x32xf32, #tpu.memory_space<vmem>>, %arg29: memref<32x32xf32, #tpu.memory_space<vmem>>, %arg30: memref<32x32xf32, #tpu.memory_space<vmem>>, %arg31: memref<32x32xf32, #tpu.memory_space<vmem>>, %arg32: memref<1x32xf32, #tpu.memory_space<vmem>>, %arg33: memref<1x32xf32, #tpu.memory_space<vmem>>, %arg34: memref<1x32xf32, #tpu.memory_space<vmem>>, %arg35: memref<32x64xf32, #tpu.memory_space<vmem>>, %arg36: memref<1x64xf32, #tpu.memory_space<vmem>>, %arg37: memref<64x32xf32, #tpu.memory_space<vmem>>, %arg38: memref<1x32xf32, #tpu.memory_space<vmem>>, %arg39: memref<1x32xf32, #tpu.memory_space<vmem>>, %arg40: memref<1x32xf32, #tpu.memory_space<vmem>>, %arg41: memref<32x32xf32, #tpu.memory_space<vmem>>) attributes {dimension_semantics = [], scalar_prefetch = 0 : i64, scratch_operands = 0 : i64, tpu.core_type = #tpu.core_type<tc>} {
    %c0 = arith.constant 0 : index
    %c0_0 = arith.constant 0 : index
    %0 = vector.load %arg0[%c0, %c0_0] : memref<32x32xf32, #tpu.memory_space<vmem>>, vector<32x32xf32>
    %c0_1 = arith.constant 0 : index
    %c0_2 = arith.constant 0 : index
    %1 = vector.load %arg1[%c0_1, %c0_2] : memref<32x32xf32, #tpu.memory_space<vmem>>, vector<32x32xf32>
    %c0_3 = arith.constant 0 : index
    %c0_4 = arith.constant 0 : index
    %2 = vector.load %arg2[%c0_3, %c0_4] : memref<32x32xf32, #tpu.memory_space<vmem>>, vector<32x32xf32>
    %c0_5 = arith.constant 0 : index
    %c0_6 = arith.constant 0 : index
    %3 = vector.load %arg7[%c0_5, %c0_6] : memref<32x32xf32, #tpu.memory_space<vmem>>, vector<32x32xf32>
    %c0_7 = arith.constant 0 : index
    %c0_8 = arith.constant 0 : index
    %4 = vector.load %arg8[%c0_7, %c0_8] : memref<32x32xf32, #tpu.memory_space<vmem>>, vector<32x32xf32>
    %c0_9 = arith.constant 0 : index
    %c0_10 = arith.constant 0 : index
    %5 = vector.load %arg9[%c0_9, %c0_10] : memref<32x32xf32, #tpu.memory_space<vmem>>, vector<32x32xf32>
    %c0_11 = arith.constant 0 : index
    %c0_12 = arith.constant 0 : index
    %6 = vector.load %arg10[%c0_11, %c0_12] : memref<32x32xf32, #tpu.memory_space<vmem>>, vector<32x32xf32>
    %c0_13 = arith.constant 0 : index
    %c0_14 = arith.constant 0 : index
    %7 = vector.load %arg11[%c0_13, %c0_14] : memref<1x32xf32, #tpu.memory_space<vmem>>, vector<1x32xf32>
    %c0_15 = arith.constant 0 : index
    %c0_16 = arith.constant 0 : index
    %8 = vector.load %arg5[%c0_15, %c0_16] : memref<32x32xf32, #tpu.memory_space<vmem>>, vector<32x32xf32>
    %cst = arith.constant dense<0.000000e+00> : vector<32x32xf32>
    %9 = tpu.matmul %0, %3, %cst {dimension_numbers = #tpu.dot_dimension_numbers<[1], [0], [0], [1], [0, 0, 1, 1], [], []>} : vector<32x32xf32>, vector<32x32xf32>, vector<32x32xf32> -> vector<32x32xf32>
    %cst_17 = arith.constant dense<0.000000e+00> : vector<32x32xf32>
    %10 = tpu.matmul %1, %4, %cst_17 {dimension_numbers = #tpu.dot_dimension_numbers<[1], [0], [0], [1], [0, 0, 1, 1], [], []>} : vector<32x32xf32>, vector<32x32xf32>, vector<32x32xf32> -> vector<32x32xf32>
    %cst_18 = arith.constant dense<0.000000e+00> : vector<32x32xf32>
    %11 = tpu.matmul %2, %5, %cst_18 {dimension_numbers = #tpu.dot_dimension_numbers<[1], [0], [0], [1], [0, 0, 1, 1], [], []>} : vector<32x32xf32>, vector<32x32xf32>, vector<32x32xf32> -> vector<32x32xf32>
    %cst_19 = arith.constant 0.000000e+00 : f32
    %12 = vector.broadcast %cst_19 : f32 to vector<32x32xf32>
    %13 = vector.extract_strided_slice %9 {offsets = [0, 0], sizes = [32, 8], strides = [1, 1]} : vector<32x32xf32> to vector<32x8xf32>
    %14 = vector.extract_strided_slice %10 {offsets = [0, 0], sizes = [32, 8], strides = [1, 1]} : vector<32x32xf32> to vector<32x8xf32>
    "tpu.trace_start"() <{level = 10 : i32, message = "qd,kd->qk"}> : () -> ()
    %cst_20 = arith.constant dense<0.000000e+00> : vector<32x32xf32>
    %15 = tpu.matmul %13, %14, %cst_20 {dimension_numbers = #tpu.dot_dimension_numbers<[1], [1], [0], [0], [0, 0, 1, 0], [], []>} : vector<32x8xf32>, vector<32x8xf32>, vector<32x32xf32> -> vector<32x32xf32>
    "tpu.trace_stop"() : () -> ()
    %16 = arith.addf %15, %8 : vector<32x32xf32>
    %cst_21 = arith.constant dense<0xFF800000> : vector<32xf32>
    %17 = vector.multi_reduction <maximumf>, %16, %cst_21 [1] : vector<32x32xf32> to vector<32xf32>
    %18 = vector.shape_cast %17 : vector<32xf32> to vector<32x1xf32>
    %19 = vector.broadcast %18 : vector<32x1xf32> to vector<32x32xf32>
    %20 = arith.subf %16, %19 : vector<32x32xf32>
    %21 = math.exp %20 : vector<32x32xf32>
    %cst_22 = arith.constant dense<0.000000e+00> : vector<32xf32>
    %22 = vector.multi_reduction <add>, %21, %cst_22 [1] : vector<32x32xf32> to vector<32xf32>
    %23 = vector.shape_cast %22 : vector<32xf32> to vector<32x1xf32>
    %24 = tpu.reciprocal %23 {approx = true} : vector<32x1xf32> -> vector<32x1xf32>
    %25 = vector.broadcast %24 : vector<32x1xf32> to vector<32x32xf32>
    %26 = arith.mulf %21, %25 : vector<32x32xf32>
    %27 = vector.extract_strided_slice %11 {offsets = [0, 0], sizes = [32, 8], strides = [1, 1]} : vector<32x32xf32> to vector<32x8xf32>
    %cst_23 = arith.constant dense<0.000000e+00> : vector<32x8xf32>
    %28 = tpu.matmul %26, %27, %cst_23 {dimension_numbers = #tpu.dot_dimension_numbers<[1], [0], [0], [1], [0, 0, 1, 1], [], []>} : vector<32x32xf32>, vector<32x8xf32>, vector<32x8xf32> -> vector<32x8xf32>
    %29 = vector.extract_strided_slice %6 {offsets = [0, 0], sizes = [8, 32], strides = [1, 1]} : vector<32x32xf32> to vector<8x32xf32>
    %cst_24 = arith.constant dense<0.000000e+00> : vector<32x32xf32>
    %30 = tpu.matmul %28, %29, %cst_24 {dimension_numbers = #tpu.dot_dimension_numbers<[1], [0], [0], [1], [0, 0, 1, 1], [], []>} : vector<32x8xf32>, vector<8x32xf32>, vector<32x32xf32> -> vector<32x32xf32>
    %31 = arith.addf %12, %30 : vector<32x32xf32>
    %32 = vector.extract_strided_slice %9 {offsets = [0, 8], sizes = [32, 8], strides = [1, 1]} : vector<32x32xf32> to vector<32x8xf32>
    %33 = vector.extract_strided_slice %10 {offsets = [0, 8], sizes = [32, 8], strides = [1, 1]} : vector<32x32xf32> to vector<32x8xf32>
    "tpu.trace_start"() <{level = 10 : i32, message = "qd,kd->qk"}> : () -> ()
    %cst_25 = arith.constant dense<0.000000e+00> : vector<32x32xf32>
    %34 = tpu.matmul %32, %33, %cst_25 {dimension_numbers = #tpu.dot_dimension_numbers<[1], [1], [0], [0], [0, 0, 1, 0], [], []>} : vector<32x8xf32>, vector<32x8xf32>, vector<32x32xf32> -> vector<32x32xf32>
    "tpu.trace_stop"() : () -> ()
    %35 = arith.addf %34, %8 : vector<32x32xf32>
    %cst_26 = arith.constant dense<0xFF800000> : vector<32xf32>
    %36 = vector.multi_reduction <maximumf>, %35, %cst_26 [1] : vector<32x32xf32> to vector<32xf32>
    %37 = vector.shape_cast %36 : vector<32xf32> to vector<32x1xf32>
    %38 = vector.broadcast %37 : vector<32x1xf32> to vector<32x32xf32>
    %39 = arith.subf %35, %38 : vector<32x32xf32>
    %40 = math.exp %39 : vector<32x32xf32>
    %cst_27 = arith.constant dense<0.000000e+00> : vector<32xf32>
    %41 = vector.multi_reduction <add>, %40, %cst_27 [1] : vector<32x32xf32> to vector<32xf32>
    %42 = vector.shape_cast %41 : vector<32xf32> to vector<32x1xf32>
    %43 = tpu.reciprocal %42 {approx = true} : vector<32x1xf32> -> vector<32x1xf32>
    %44 = vector.broadcast %43 : vector<32x1xf32> to vector<32x32xf32>
    %45 = arith.mulf %40, %44 : vector<32x32xf32>
    %46 = vector.extract_strided_slice %11 {offsets = [0, 8], sizes = [32, 8], strides = [1, 1]} : vector<32x32xf32> to vector<32x8xf32>
    %cst_28 = arith.constant dense<0.000000e+00> : vector<32x8xf32>
    %47 = tpu.matmul %45, %46, %cst_28 {dimension_numbers = #tpu.dot_dimension_numbers<[1], [0], [0], [1], [0, 0, 1, 1], [], []>} : vector<32x32xf32>, vector<32x8xf32>, vector<32x8xf32> -> vector<32x8xf32>
    %48 = vector.extract_strided_slice %6 {offsets = [8, 0], sizes = [8, 32], strides = [1, 1]} : vector<32x32xf32> to vector<8x32xf32>
    %cst_29 = arith.constant dense<0.000000e+00> : vector<32x32xf32>
    %49 = tpu.matmul %47, %48, %cst_29 {dimension_numbers = #tpu.dot_dimension_numbers<[1], [0], [0], [1], [0, 0, 1, 1], [], []>} : vector<32x8xf32>, vector<8x32xf32>, vector<32x32xf32> -> vector<32x32xf32>
    %50 = arith.addf %31, %49 : vector<32x32xf32>
    %51 = vector.extract_strided_slice %9 {offsets = [0, 16], sizes = [32, 8], strides = [1, 1]} : vector<32x32xf32> to vector<32x8xf32>
    %52 = vector.extract_strided_slice %10 {offsets = [0, 16], sizes = [32, 8], strides = [1, 1]} : vector<32x32xf32> to vector<32x8xf32>
    "tpu.trace_start"() <{level = 10 : i32, message = "qd,kd->qk"}> : () -> ()
    %cst_30 = arith.constant dense<0.000000e+00> : vector<32x32xf32>
    %53 = tpu.matmul %51, %52, %cst_30 {dimension_numbers = #tpu.dot_dimension_numbers<[1], [1], [0], [0], [0, 0, 1, 0], [], []>} : vector<32x8xf32>, vector<32x8xf32>, vector<32x32xf32> -> vector<32x32xf32>
    "tpu.trace_stop"() : () -> ()
    %54 = arith.addf %53, %8 : vector<32x32xf32>
    %cst_31 = arith.constant dense<0xFF800000> : vector<32xf32>
    %55 = vector.multi_reduction <maximumf>, %54, %cst_31 [1] : vector<32x32xf32> to vector<32xf32>
    %56 = vector.shape_cast %55 : vector<32xf32> to vector<32x1xf32>
    %57 = vector.broadcast %56 : vector<32x1xf32> to vector<32x32xf32>
    %58 = arith.subf %54, %57 : vector<32x32xf32>
    %59 = math.exp %58 : vector<32x32xf32>
    %cst_32 = arith.constant dense<0.000000e+00> : vector<32xf32>
    %60 = vector.multi_reduction <add>, %59, %cst_32 [1] : vector<32x32xf32> to vector<32xf32>
    %61 = vector.shape_cast %60 : vector<32xf32> to vector<32x1xf32>
    %62 = tpu.reciprocal %61 {approx = true} : vector<32x1xf32> -> vector<32x1xf32>
    %63 = vector.broadcast %62 : vector<32x1xf32> to vector<32x32xf32>
    %64 = arith.mulf %59, %63 : vector<32x32xf32>
    %65 = vector.extract_strided_slice %11 {offsets = [0, 16], sizes = [32, 8], strides = [1, 1]} : vector<32x32xf32> to vector<32x8xf32>
    %cst_33 = arith.constant dense<0.000000e+00> : vector<32x8xf32>
    %66 = tpu.matmul %64, %65, %cst_33 {dimension_numbers = #tpu.dot_dimension_numbers<[1], [0], [0], [1], [0, 0, 1, 1], [], []>} : vector<32x32xf32>, vector<32x8xf32>, vector<32x8xf32> -> vector<32x8xf32>
    %67 = vector.extract_strided_slice %6 {offsets = [16, 0], sizes = [8, 32], strides = [1, 1]} : vector<32x32xf32> to vector<8x32xf32>
    %cst_34 = arith.constant dense<0.000000e+00> : vector<32x32xf32>
    %68 = tpu.matmul %66, %67, %cst_34 {dimension_numbers = #tpu.dot_dimension_numbers<[1], [0], [0], [1], [0, 0, 1, 1], [], []>} : vector<32x8xf32>, vector<8x32xf32>, vector<32x32xf32> -> vector<32x32xf32>
    %69 = arith.addf %50, %68 : vector<32x32xf32>
    %70 = vector.extract_strided_slice %9 {offsets = [0, 24], sizes = [32, 8], strides = [1, 1]} : vector<32x32xf32> to vector<32x8xf32>
    %71 = vector.extract_strided_slice %10 {offsets = [0, 24], sizes = [32, 8], strides = [1, 1]} : vector<32x32xf32> to vector<32x8xf32>
    "tpu.trace_start"() <{level = 10 : i32, message = "qd,kd->qk"}> : () -> ()
    %cst_35 = arith.constant dense<0.000000e+00> : vector<32x32xf32>
    %72 = tpu.matmul %70, %71, %cst_35 {dimension_numbers = #tpu.dot_dimension_numbers<[1], [1], [0], [0], [0, 0, 1, 0], [], []>} : vector<32x8xf32>, vector<32x8xf32>, vector<32x32xf32> -> vector<32x32xf32>
    "tpu.trace_stop"() : () -> ()
    %73 = arith.addf %72, %8 : vector<32x32xf32>
    %cst_36 = arith.constant dense<0xFF800000> : vector<32xf32>
    %74 = vector.multi_reduction <maximumf>, %73, %cst_36 [1] : vector<32x32xf32> to vector<32xf32>
    %75 = vector.shape_cast %74 : vector<32xf32> to vector<32x1xf32>
    %76 = vector.broadcast %75 : vector<32x1xf32> to vector<32x32xf32>
    %77 = arith.subf %73, %76 : vector<32x32xf32>
    %78 = math.exp %77 : vector<32x32xf32>
    %cst_37 = arith.constant dense<0.000000e+00> : vector<32xf32>
    %79 = vector.multi_reduction <add>, %78, %cst_37 [1] : vector<32x32xf32> to vector<32xf32>
    %80 = vector.shape_cast %79 : vector<32xf32> to vector<32x1xf32>
    %81 = tpu.reciprocal %80 {approx = true} : vector<32x1xf32> -> vector<32x1xf32>
    %82 = vector.broadcast %81 : vector<32x1xf32> to vector<32x32xf32>
    %83 = arith.mulf %78, %82 : vector<32x32xf32>
    %84 = vector.extract_strided_slice %11 {offsets = [0, 24], sizes = [32, 8], strides = [1, 1]} : vector<32x32xf32> to vector<32x8xf32>
    %cst_38 = arith.constant dense<0.000000e+00> : vector<32x8xf32>
    %85 = tpu.matmul %83, %84, %cst_38 {dimension_numbers = #tpu.dot_dimension_numbers<[1], [0], [0], [1], [0, 0, 1, 1], [], []>} : vector<32x32xf32>, vector<32x8xf32>, vector<32x8xf32> -> vector<32x8xf32>
    %86 = vector.extract_strided_slice %6 {offsets = [24, 0], sizes = [8, 32], strides = [1, 1]} : vector<32x32xf32> to vector<8x32xf32>
    %cst_39 = arith.constant dense<0.000000e+00> : vector<32x32xf32>
    %87 = tpu.matmul %85, %86, %cst_39 {dimension_numbers = #tpu.dot_dimension_numbers<[1], [0], [0], [1], [0, 0, 1, 1], [], []>} : vector<32x8xf32>, vector<8x32xf32>, vector<32x32xf32> -> vector<32x32xf32>
    %88 = arith.addf %69, %87 : vector<32x32xf32>
    %89 = vector.broadcast %7 : vector<1x32xf32> to vector<32x32xf32>
    %90 = arith.addf %88, %89 : vector<32x32xf32>
    %91 = arith.addf %90, %0 : vector<32x32xf32>
    %c0_40 = arith.constant 0 : index
    %c0_41 = arith.constant 0 : index
    %92 = vector.load %arg12[%c0_40, %c0_41] : memref<1x32xf32, #tpu.memory_space<vmem>>, vector<1x32xf32>
    %c0_42 = arith.constant 0 : index
    %c0_43 = arith.constant 0 : index
    %93 = vector.load %arg13[%c0_42, %c0_43] : memref<1x32xf32, #tpu.memory_space<vmem>>, vector<1x32xf32>
    %cst_44 = arith.constant dense<0.000000e+00> : vector<32xf32>
    %94 = vector.multi_reduction <add>, %91, %cst_44 [1] : vector<32x32xf32> to vector<32xf32>
    %95 = vector.shape_cast %94 : vector<32xf32> to vector<32x1xf32>
    %cst_45 = arith.constant 3.200000e+01 : f32
    %96 = vector.broadcast %cst_45 : f32 to vector<32x1xf32>
    %97 = arith.divf %95, %96 : vector<32x1xf32>
    %98 = vector.broadcast %97 : vector<32x1xf32> to vector<32x32xf32>
    %99 = arith.subf %91, %98 : vector<32x32xf32>
    %100 = arith.mulf %99, %99 : vector<32x32xf32>
    %cst_46 = arith.constant dense<0.000000e+00> : vector<32xf32>
    %101 = vector.multi_reduction <add>, %100, %cst_46 [1] : vector<32x32xf32> to vector<32xf32>
    %102 = vector.shape_cast %101 : vector<32xf32> to vector<32x1xf32>
    %cst_47 = arith.constant 3.200000e+01 : f32
    %103 = vector.broadcast %cst_47 : f32 to vector<32x1xf32>
    %104 = arith.divf %102, %103 : vector<32x1xf32>
    %105 = vector.broadcast %97 : vector<32x1xf32> to vector<32x32xf32>
    %106 = arith.subf %91, %105 : vector<32x32xf32>
    %cst_48 = arith.constant 9.99999974E-6 : f32
    %107 = vector.broadcast %cst_48 : f32 to vector<32x1xf32>
    %108 = arith.addf %104, %107 : vector<32x1xf32>
    %109 = math.rsqrt %108 : vector<32x1xf32>
    %110 = vector.broadcast %109 : vector<32x1xf32> to vector<32x32xf32>
    %111 = arith.mulf %106, %110 : vector<32x32xf32>
    %112 = vector.broadcast %92 : vector<1x32xf32> to vector<32x32xf32>
    %113 = arith.mulf %111, %112 : vector<32x32xf32>
    %114 = vector.broadcast %93 : vector<1x32xf32> to vector<32x32xf32>
    %115 = arith.addf %113, %114 : vector<32x32xf32>
    %c0_49 = arith.constant 0 : index
    %c0_50 = arith.constant 0 : index
    %116 = vector.load %arg14[%c0_49, %c0_50] : memref<32x64xf32, #tpu.memory_space<vmem>>, vector<32x64xf32>
    %cst_51 = arith.constant dense<0.000000e+00> : vector<32x64xf32>
    %117 = tpu.matmul %115, %116, %cst_51 {dimension_numbers = #tpu.dot_dimension_numbers<[1], [0], [0], [1], [0, 0, 1, 1], [], []>} : vector<32x32xf32>, vector<32x64xf32>, vector<32x64xf32> -> vector<32x64xf32>
    %c0_52 = arith.constant 0 : index
    %c0_53 = arith.constant 0 : index
    %118 = vector.load %arg15[%c0_52, %c0_53] : memref<1x64xf32, #tpu.memory_space<vmem>>, vector<1x64xf32>
    %119 = vector.broadcast %118 : vector<1x64xf32> to vector<32x64xf32>
    %120 = arith.addf %117, %119 : vector<32x64xf32>
    %cst_54 = arith.constant 0.000000e+00 : f32
    %121 = vector.broadcast %cst_54 : f32 to vector<32x64xf32>
    %122 = arith.maximumf %120, %121 : vector<32x64xf32>
    %c0_55 = arith.constant 0 : index
    %c0_56 = arith.constant 0 : index
    %123 = vector.load %arg16[%c0_55, %c0_56] : memref<64x32xf32, #tpu.memory_space<vmem>>, vector<64x32xf32>
    %cst_57 = arith.constant dense<0.000000e+00> : vector<32x32xf32>
    %124 = tpu.matmul %122, %123, %cst_57 {dimension_numbers = #tpu.dot_dimension_numbers<[1], [0], [0], [1], [0, 0, 1, 1], [], []>} : vector<32x64xf32>, vector<64x32xf32>, vector<32x32xf32> -> vector<32x32xf32>
    %c0_58 = arith.constant 0 : index
    %c0_59 = arith.constant 0 : index
    %125 = vector.load %arg17[%c0_58, %c0_59] : memref<1x32xf32, #tpu.memory_space<vmem>>, vector<1x32xf32>
    %126 = vector.broadcast %125 : vector<1x32xf32> to vector<32x32xf32>
    %127 = arith.addf %124, %126 : vector<32x32xf32>
    %128 = arith.addf %127, %115 : vector<32x32xf32>
    %c0_60 = arith.constant 0 : index
    %c0_61 = arith.constant 0 : index
    %129 = vector.load %arg18[%c0_60, %c0_61] : memref<1x32xf32, #tpu.memory_space<vmem>>, vector<1x32xf32>
    %c0_62 = arith.constant 0 : index
    %c0_63 = arith.constant 0 : index
    %130 = vector.load %arg19[%c0_62, %c0_63] : memref<1x32xf32, #tpu.memory_space<vmem>>, vector<1x32xf32>
    %cst_64 = arith.constant dense<0.000000e+00> : vector<32xf32>
    %131 = vector.multi_reduction <add>, %128, %cst_64 [1] : vector<32x32xf32> to vector<32xf32>
    %132 = vector.shape_cast %131 : vector<32xf32> to vector<32x1xf32>
    %cst_65 = arith.constant 3.200000e+01 : f32
    %133 = vector.broadcast %cst_65 : f32 to vector<32x1xf32>
    %134 = arith.divf %132, %133 : vector<32x1xf32>
    %135 = vector.broadcast %134 : vector<32x1xf32> to vector<32x32xf32>
    %136 = arith.subf %128, %135 : vector<32x32xf32>
    %137 = arith.mulf %136, %136 : vector<32x32xf32>
    %cst_66 = arith.constant dense<0.000000e+00> : vector<32xf32>
    %138 = vector.multi_reduction <add>, %137, %cst_66 [1] : vector<32x32xf32> to vector<32xf32>
    %139 = vector.shape_cast %138 : vector<32xf32> to vector<32x1xf32>
    %cst_67 = arith.constant 3.200000e+01 : f32
    %140 = vector.broadcast %cst_67 : f32 to vector<32x1xf32>
    %141 = arith.divf %139, %140 : vector<32x1xf32>
    %142 = vector.broadcast %134 : vector<32x1xf32> to vector<32x32xf32>
    %143 = arith.subf %128, %142 : vector<32x32xf32>
    %cst_68 = arith.constant 9.99999974E-6 : f32
    %144 = vector.broadcast %cst_68 : f32 to vector<32x1xf32>
    %145 = arith.addf %141, %144 : vector<32x1xf32>
    %146 = math.rsqrt %145 : vector<32x1xf32>
    %147 = vector.broadcast %146 : vector<32x1xf32> to vector<32x32xf32>
    %148 = arith.mulf %143, %147 : vector<32x32xf32>
    %149 = vector.broadcast %129 : vector<1x32xf32> to vector<32x32xf32>
    %150 = arith.mulf %148, %149 : vector<32x32xf32>
    %151 = vector.broadcast %130 : vector<1x32xf32> to vector<32x32xf32>
    %152 = arith.addf %150, %151 : vector<32x32xf32>
    %c0_69 = arith.constant 0 : index
    %c0_70 = arith.constant 0 : index
    %153 = vector.load %arg3[%c0_69, %c0_70] : memref<32x32xf32, #tpu.memory_space<vmem>>, vector<32x32xf32>
    %c0_71 = arith.constant 0 : index
    %c0_72 = arith.constant 0 : index
    %154 = vector.load %arg20[%c0_71, %c0_72] : memref<32x32xf32, #tpu.memory_space<vmem>>, vector<32x32xf32>
    %cst_73 = arith.constant dense<0.000000e+00> : vector<32x32xf32>
    %155 = tpu.matmul %0, %154, %cst_73 {dimension_numbers = #tpu.dot_dimension_numbers<[1], [0], [0], [1], [0, 0, 1, 1], [], []>} : vector<32x32xf32>, vector<32x32xf32>, vector<32x32xf32> -> vector<32x32xf32>
    %cst_74 = arith.constant dense<0.000000e+00> : vector<32x32xf32>
    %156 = tpu.matmul %153, %155, %cst_74 {dimension_numbers = #tpu.dot_dimension_numbers<[1], [0], [0], [1], [0, 0, 1, 1], [], []>} : vector<32x32xf32>, vector<32x32xf32>, vector<32x32xf32> -> vector<32x32xf32>
    %c0_75 = arith.constant 0 : index
    %c0_76 = arith.constant 0 : index
    %157 = vector.load %arg21[%c0_75, %c0_76] : memref<1x32xf32, #tpu.memory_space<vmem>>, vector<1x32xf32>
    %158 = vector.broadcast %157 : vector<1x32xf32> to vector<32x32xf32>
    %159 = arith.addf %156, %158 : vector<32x32xf32>
    %cst_77 = arith.constant 0.000000e+00 : f32
    %160 = vector.broadcast %cst_77 : f32 to vector<32x32xf32>
    %161 = arith.maximumf %159, %160 : vector<32x32xf32>
    %c0_78 = arith.constant 0 : index
    %c0_79 = arith.constant 0 : index
    %162 = vector.load %arg22[%c0_78, %c0_79] : memref<32x32xf32, #tpu.memory_space<vmem>>, vector<32x32xf32>
    %cst_80 = arith.constant dense<0.000000e+00> : vector<32x32xf32>
    %163 = tpu.matmul %161, %162, %cst_80 {dimension_numbers = #tpu.dot_dimension_numbers<[1], [0], [0], [1], [0, 0, 1, 1], [], []>} : vector<32x32xf32>, vector<32x32xf32>, vector<32x32xf32> -> vector<32x32xf32>
    %cst_81 = arith.constant dense<0.000000e+00> : vector<32x32xf32>
    %164 = tpu.matmul %153, %163, %cst_81 {dimension_numbers = #tpu.dot_dimension_numbers<[1], [0], [0], [1], [0, 0, 1, 1], [], []>} : vector<32x32xf32>, vector<32x32xf32>, vector<32x32xf32> -> vector<32x32xf32>
    %c0_82 = arith.constant 0 : index
    %c0_83 = arith.constant 0 : index
    %165 = vector.load %arg23[%c0_82, %c0_83] : memref<1x32xf32, #tpu.memory_space<vmem>>, vector<1x32xf32>
    %166 = vector.broadcast %165 : vector<1x32xf32> to vector<32x32xf32>
    %167 = arith.addf %164, %166 : vector<32x32xf32>
    %c0_84 = arith.constant 0 : index
    %c0_85 = arith.constant 0 : index
    %168 = vector.load %arg24[%c0_84, %c0_85] : memref<32x32xf32, #tpu.memory_space<vmem>>, vector<32x32xf32>
    %cst_86 = arith.constant dense<0.000000e+00> : vector<32x32xf32>
    %169 = tpu.matmul %152, %168, %cst_86 {dimension_numbers = #tpu.dot_dimension_numbers<[1], [0], [0], [1], [0, 0, 1, 1], [], []>} : vector<32x32xf32>, vector<32x32xf32>, vector<32x32xf32> -> vector<32x32xf32>
    %c0_87 = arith.constant 0 : index
    %c0_88 = arith.constant 0 : index
    %170 = vector.load %arg25[%c0_87, %c0_88] : memref<1x32xf32, #tpu.memory_space<vmem>>, vector<1x32xf32>
    %171 = vector.broadcast %170 : vector<1x32xf32> to vector<32x32xf32>
    %172 = arith.addf %169, %171 : vector<32x32xf32>
    %c0_89 = arith.constant 0 : index
    %c0_90 = arith.constant 0 : index
    %173 = vector.load %arg26[%c0_89, %c0_90] : memref<32x32xf32, #tpu.memory_space<vmem>>, vector<32x32xf32>
    %cst_91 = arith.constant dense<0.000000e+00> : vector<32x32xf32>
    %174 = tpu.matmul %167, %173, %cst_91 {dimension_numbers = #tpu.dot_dimension_numbers<[1], [0], [0], [1], [0, 0, 1, 1], [], []>} : vector<32x32xf32>, vector<32x32xf32>, vector<32x32xf32> -> vector<32x32xf32>
    %175 = arith.addf %172, %174 : vector<32x32xf32>
    %c0_92 = arith.constant 0 : index
    %c0_93 = arith.constant 0 : index
    %176 = vector.load %arg27[%c0_92, %c0_93] : memref<1x32xf32, #tpu.memory_space<vmem>>, vector<1x32xf32>
    %177 = vector.broadcast %176 : vector<1x32xf32> to vector<32x32xf32>
    %178 = arith.addf %175, %177 : vector<32x32xf32>
    %179 = arith.negf %178 : vector<32x32xf32>
    %180 = math.exp %179 : vector<32x32xf32>
    %cst_94 = arith.constant 1.000000e+00 : f32
    %181 = vector.broadcast %cst_94 : f32 to vector<32x32xf32>
    %182 = arith.addf %181, %180 : vector<32x32xf32>
    %183 = arith.divf %181, %182 : vector<32x32xf32>
    %184 = arith.mulf %183, %152 : vector<32x32xf32>
    %cst_95 = arith.constant 1.000000e+00 : f32
    %185 = vector.broadcast %cst_95 : f32 to vector<32x32xf32>
    %186 = arith.subf %185, %183 : vector<32x32xf32>
    %187 = arith.mulf %186, %167 : vector<32x32xf32>
    %188 = arith.addf %184, %187 : vector<32x32xf32>
    %189 = arith.addf %188, %0 : vector<32x32xf32>
    %c0_96 = arith.constant 0 : index
    %c0_97 = arith.constant 0 : index
    %190 = vector.load %arg4[%c0_96, %c0_97] : memref<32x32xf32, #tpu.memory_space<vmem>>, vector<32x32xf32>
    %191 = arith.addf %189, %190 : vector<32x32xf32>
    %c0_98 = arith.constant 0 : index
    %c0_99 = arith.constant 0 : index
    %192 = vector.load %arg28[%c0_98, %c0_99] : memref<32x32xf32, #tpu.memory_space<vmem>>, vector<32x32xf32>
    %c0_100 = arith.constant 0 : index
    %c0_101 = arith.constant 0 : index
    %193 = vector.load %arg29[%c0_100, %c0_101] : memref<32x32xf32, #tpu.memory_space<vmem>>, vector<32x32xf32>
    %c0_102 = arith.constant 0 : index
    %c0_103 = arith.constant 0 : index
    %194 = vector.load %arg30[%c0_102, %c0_103] : memref<32x32xf32, #tpu.memory_space<vmem>>, vector<32x32xf32>
    %c0_104 = arith.constant 0 : index
    %c0_105 = arith.constant 0 : index
    %195 = vector.load %arg31[%c0_104, %c0_105] : memref<32x32xf32, #tpu.memory_space<vmem>>, vector<32x32xf32>
    %c0_106 = arith.constant 0 : index
    %c0_107 = arith.constant 0 : index
    %196 = vector.load %arg32[%c0_106, %c0_107] : memref<1x32xf32, #tpu.memory_space<vmem>>, vector<1x32xf32>
    %c0_108 = arith.constant 0 : index
    %c0_109 = arith.constant 0 : index
    %197 = vector.load %arg6[%c0_108, %c0_109] : memref<32x32xf32, #tpu.memory_space<vmem>>, vector<32x32xf32>
    %cst_110 = arith.constant dense<0.000000e+00> : vector<32x32xf32>
    %198 = tpu.matmul %191, %192, %cst_110 {dimension_numbers = #tpu.dot_dimension_numbers<[1], [0], [0], [1], [0, 0, 1, 1], [], []>} : vector<32x32xf32>, vector<32x32xf32>, vector<32x32xf32> -> vector<32x32xf32>
    %cst_111 = arith.constant dense<0.000000e+00> : vector<32x32xf32>
    %199 = tpu.matmul %189, %193, %cst_111 {dimension_numbers = #tpu.dot_dimension_numbers<[1], [0], [0], [1], [0, 0, 1, 1], [], []>} : vector<32x32xf32>, vector<32x32xf32>, vector<32x32xf32> -> vector<32x32xf32>
    %cst_112 = arith.constant dense<0.000000e+00> : vector<32x32xf32>
    %200 = tpu.matmul %189, %194, %cst_112 {dimension_numbers = #tpu.dot_dimension_numbers<[1], [0], [0], [1], [0, 0, 1, 1], [], []>} : vector<32x32xf32>, vector<32x32xf32>, vector<32x32xf32> -> vector<32x32xf32>
    %cst_113 = arith.constant 0.000000e+00 : f32
    %201 = vector.broadcast %cst_113 : f32 to vector<32x32xf32>
    %202 = vector.extract_strided_slice %198 {offsets = [0, 0], sizes = [32, 8], strides = [1, 1]} : vector<32x32xf32> to vector<32x8xf32>
    %203 = vector.extract_strided_slice %199 {offsets = [0, 0], sizes = [32, 8], strides = [1, 1]} : vector<32x32xf32> to vector<32x8xf32>
    "tpu.trace_start"() <{level = 10 : i32, message = "qd,kd->qk"}> : () -> ()
    %cst_114 = arith.constant dense<0.000000e+00> : vector<32x32xf32>
    %204 = tpu.matmul %202, %203, %cst_114 {dimension_numbers = #tpu.dot_dimension_numbers<[1], [1], [0], [0], [0, 0, 1, 0], [], []>} : vector<32x8xf32>, vector<32x8xf32>, vector<32x32xf32> -> vector<32x32xf32>
    "tpu.trace_stop"() : () -> ()
    %205 = arith.addf %204, %197 : vector<32x32xf32>
    %cst_115 = arith.constant dense<0xFF800000> : vector<32xf32>
    %206 = vector.multi_reduction <maximumf>, %205, %cst_115 [1] : vector<32x32xf32> to vector<32xf32>
    %207 = vector.shape_cast %206 : vector<32xf32> to vector<32x1xf32>
    %208 = vector.broadcast %207 : vector<32x1xf32> to vector<32x32xf32>
    %209 = arith.subf %205, %208 : vector<32x32xf32>
    %210 = math.exp %209 : vector<32x32xf32>
    %cst_116 = arith.constant dense<0.000000e+00> : vector<32xf32>
    %211 = vector.multi_reduction <add>, %210, %cst_116 [1] : vector<32x32xf32> to vector<32xf32>
    %212 = vector.shape_cast %211 : vector<32xf32> to vector<32x1xf32>
    %213 = tpu.reciprocal %212 {approx = true} : vector<32x1xf32> -> vector<32x1xf32>
    %214 = vector.broadcast %213 : vector<32x1xf32> to vector<32x32xf32>
    %215 = arith.mulf %210, %214 : vector<32x32xf32>
    %216 = vector.extract_strided_slice %200 {offsets = [0, 0], sizes = [32, 8], strides = [1, 1]} : vector<32x32xf32> to vector<32x8xf32>
    %cst_117 = arith.constant dense<0.000000e+00> : vector<32x8xf32>
    %217 = tpu.matmul %215, %216, %cst_117 {dimension_numbers = #tpu.dot_dimension_numbers<[1], [0], [0], [1], [0, 0, 1, 1], [], []>} : vector<32x32xf32>, vector<32x8xf32>, vector<32x8xf32> -> vector<32x8xf32>
    %218 = vector.extract_strided_slice %195 {offsets = [0, 0], sizes = [8, 32], strides = [1, 1]} : vector<32x32xf32> to vector<8x32xf32>
    %cst_118 = arith.constant dense<0.000000e+00> : vector<32x32xf32>
    %219 = tpu.matmul %217, %218, %cst_118 {dimension_numbers = #tpu.dot_dimension_numbers<[1], [0], [0], [1], [0, 0, 1, 1], [], []>} : vector<32x8xf32>, vector<8x32xf32>, vector<32x32xf32> -> vector<32x32xf32>
    %220 = arith.addf %201, %219 : vector<32x32xf32>
    %221 = vector.extract_strided_slice %198 {offsets = [0, 8], sizes = [32, 8], strides = [1, 1]} : vector<32x32xf32> to vector<32x8xf32>
    %222 = vector.extract_strided_slice %199 {offsets = [0, 8], sizes = [32, 8], strides = [1, 1]} : vector<32x32xf32> to vector<32x8xf32>
    "tpu.trace_start"() <{level = 10 : i32, message = "qd,kd->qk"}> : () -> ()
    %cst_119 = arith.constant dense<0.000000e+00> : vector<32x32xf32>
    %223 = tpu.matmul %221, %222, %cst_119 {dimension_numbers = #tpu.dot_dimension_numbers<[1], [1], [0], [0], [0, 0, 1, 0], [], []>} : vector<32x8xf32>, vector<32x8xf32>, vector<32x32xf32> -> vector<32x32xf32>
    "tpu.trace_stop"() : () -> ()
    %224 = arith.addf %223, %197 : vector<32x32xf32>
    %cst_120 = arith.constant dense<0xFF800000> : vector<32xf32>
    %225 = vector.multi_reduction <maximumf>, %224, %cst_120 [1] : vector<32x32xf32> to vector<32xf32>
    %226 = vector.shape_cast %225 : vector<32xf32> to vector<32x1xf32>
    %227 = vector.broadcast %226 : vector<32x1xf32> to vector<32x32xf32>
    %228 = arith.subf %224, %227 : vector<32x32xf32>
    %229 = math.exp %228 : vector<32x32xf32>
    %cst_121 = arith.constant dense<0.000000e+00> : vector<32xf32>
    %230 = vector.multi_reduction <add>, %229, %cst_121 [1] : vector<32x32xf32> to vector<32xf32>
    %231 = vector.shape_cast %230 : vector<32xf32> to vector<32x1xf32>
    %232 = tpu.reciprocal %231 {approx = true} : vector<32x1xf32> -> vector<32x1xf32>
    %233 = vector.broadcast %232 : vector<32x1xf32> to vector<32x32xf32>
    %234 = arith.mulf %229, %233 : vector<32x32xf32>
    %235 = vector.extract_strided_slice %200 {offsets = [0, 8], sizes = [32, 8], strides = [1, 1]} : vector<32x32xf32> to vector<32x8xf32>
    %cst_122 = arith.constant dense<0.000000e+00> : vector<32x8xf32>
    %236 = tpu.matmul %234, %235, %cst_122 {dimension_numbers = #tpu.dot_dimension_numbers<[1], [0], [0], [1], [0, 0, 1, 1], [], []>} : vector<32x32xf32>, vector<32x8xf32>, vector<32x8xf32> -> vector<32x8xf32>
    %237 = vector.extract_strided_slice %195 {offsets = [8, 0], sizes = [8, 32], strides = [1, 1]} : vector<32x32xf32> to vector<8x32xf32>
    %cst_123 = arith.constant dense<0.000000e+00> : vector<32x32xf32>
    %238 = tpu.matmul %236, %237, %cst_123 {dimension_numbers = #tpu.dot_dimension_numbers<[1], [0], [0], [1], [0, 0, 1, 1], [], []>} : vector<32x8xf32>, vector<8x32xf32>, vector<32x32xf32> -> vector<32x32xf32>
    %239 = arith.addf %220, %238 : vector<32x32xf32>
    %240 = vector.extract_strided_slice %198 {offsets = [0, 16], sizes = [32, 8], strides = [1, 1]} : vector<32x32xf32> to vector<32x8xf32>
    %241 = vector.extract_strided_slice %199 {offsets = [0, 16], sizes = [32, 8], strides = [1, 1]} : vector<32x32xf32> to vector<32x8xf32>
    "tpu.trace_start"() <{level = 10 : i32, message = "qd,kd->qk"}> : () -> ()
    %cst_124 = arith.constant dense<0.000000e+00> : vector<32x32xf32>
    %242 = tpu.matmul %240, %241, %cst_124 {dimension_numbers = #tpu.dot_dimension_numbers<[1], [1], [0], [0], [0, 0, 1, 0], [], []>} : vector<32x8xf32>, vector<32x8xf32>, vector<32x32xf32> -> vector<32x32xf32>
    "tpu.trace_stop"() : () -> ()
    %243 = arith.addf %242, %197 : vector<32x32xf32>
    %cst_125 = arith.constant dense<0xFF800000> : vector<32xf32>
    %244 = vector.multi_reduction <maximumf>, %243, %cst_125 [1] : vector<32x32xf32> to vector<32xf32>
    %245 = vector.shape_cast %244 : vector<32xf32> to vector<32x1xf32>
    %246 = vector.broadcast %245 : vector<32x1xf32> to vector<32x32xf32>
    %247 = arith.subf %243, %246 : vector<32x32xf32>
    %248 = math.exp %247 : vector<32x32xf32>
    %cst_126 = arith.constant dense<0.000000e+00> : vector<32xf32>
    %249 = vector.multi_reduction <add>, %248, %cst_126 [1] : vector<32x32xf32> to vector<32xf32>
    %250 = vector.shape_cast %249 : vector<32xf32> to vector<32x1xf32>
    %251 = tpu.reciprocal %250 {approx = true} : vector<32x1xf32> -> vector<32x1xf32>
    %252 = vector.broadcast %251 : vector<32x1xf32> to vector<32x32xf32>
    %253 = arith.mulf %248, %252 : vector<32x32xf32>
    %254 = vector.extract_strided_slice %200 {offsets = [0, 16], sizes = [32, 8], strides = [1, 1]} : vector<32x32xf32> to vector<32x8xf32>
    %cst_127 = arith.constant dense<0.000000e+00> : vector<32x8xf32>
    %255 = tpu.matmul %253, %254, %cst_127 {dimension_numbers = #tpu.dot_dimension_numbers<[1], [0], [0], [1], [0, 0, 1, 1], [], []>} : vector<32x32xf32>, vector<32x8xf32>, vector<32x8xf32> -> vector<32x8xf32>
    %256 = vector.extract_strided_slice %195 {offsets = [16, 0], sizes = [8, 32], strides = [1, 1]} : vector<32x32xf32> to vector<8x32xf32>
    %cst_128 = arith.constant dense<0.000000e+00> : vector<32x32xf32>
    %257 = tpu.matmul %255, %256, %cst_128 {dimension_numbers = #tpu.dot_dimension_numbers<[1], [0], [0], [1], [0, 0, 1, 1], [], []>} : vector<32x8xf32>, vector<8x32xf32>, vector<32x32xf32> -> vector<32x32xf32>
    %258 = arith.addf %239, %257 : vector<32x32xf32>
    %259 = vector.extract_strided_slice %198 {offsets = [0, 24], sizes = [32, 8], strides = [1, 1]} : vector<32x32xf32> to vector<32x8xf32>
    %260 = vector.extract_strided_slice %199 {offsets = [0, 24], sizes = [32, 8], strides = [1, 1]} : vector<32x32xf32> to vector<32x8xf32>
    "tpu.trace_start"() <{level = 10 : i32, message = "qd,kd->qk"}> : () -> ()
    %cst_129 = arith.constant dense<0.000000e+00> : vector<32x32xf32>
    %261 = tpu.matmul %259, %260, %cst_129 {dimension_numbers = #tpu.dot_dimension_numbers<[1], [1], [0], [0], [0, 0, 1, 0], [], []>} : vector<32x8xf32>, vector<32x8xf32>, vector<32x32xf32> -> vector<32x32xf32>
    "tpu.trace_stop"() : () -> ()
    %262 = arith.addf %261, %197 : vector<32x32xf32>
    %cst_130 = arith.constant dense<0xFF800000> : vector<32xf32>
    %263 = vector.multi_reduction <maximumf>, %262, %cst_130 [1] : vector<32x32xf32> to vector<32xf32>
    %264 = vector.shape_cast %263 : vector<32xf32> to vector<32x1xf32>
    %265 = vector.broadcast %264 : vector<32x1xf32> to vector<32x32xf32>
    %266 = arith.subf %262, %265 : vector<32x32xf32>
    %267 = math.exp %266 : vector<32x32xf32>
    %cst_131 = arith.constant dense<0.000000e+00> : vector<32xf32>
    %268 = vector.multi_reduction <add>, %267, %cst_131 [1] : vector<32x32xf32> to vector<32xf32>
    %269 = vector.shape_cast %268 : vector<32xf32> to vector<32x1xf32>
    %270 = tpu.reciprocal %269 {approx = true} : vector<32x1xf32> -> vector<32x1xf32>
    %271 = vector.broadcast %270 : vector<32x1xf32> to vector<32x32xf32>
    %272 = arith.mulf %267, %271 : vector<32x32xf32>
    %273 = vector.extract_strided_slice %200 {offsets = [0, 24], sizes = [32, 8], strides = [1, 1]} : vector<32x32xf32> to vector<32x8xf32>
    %cst_132 = arith.constant dense<0.000000e+00> : vector<32x8xf32>
    %274 = tpu.matmul %272, %273, %cst_132 {dimension_numbers = #tpu.dot_dimension_numbers<[1], [0], [0], [1], [0, 0, 1, 1], [], []>} : vector<32x32xf32>, vector<32x8xf32>, vector<32x8xf32> -> vector<32x8xf32>
    %275 = vector.extract_strided_slice %195 {offsets = [24, 0], sizes = [8, 32], strides = [1, 1]} : vector<32x32xf32> to vector<8x32xf32>
    %cst_133 = arith.constant dense<0.000000e+00> : vector<32x32xf32>
    %276 = tpu.matmul %274, %275, %cst_133 {dimension_numbers = #tpu.dot_dimension_numbers<[1], [0], [0], [1], [0, 0, 1, 1], [], []>} : vector<32x8xf32>, vector<8x32xf32>, vector<32x32xf32> -> vector<32x32xf32>
    %277 = arith.addf %258, %276 : vector<32x32xf32>
    %278 = vector.broadcast %196 : vector<1x32xf32> to vector<32x32xf32>
    %279 = arith.addf %277, %278 : vector<32x32xf32>
    %280 = arith.addf %279, %191 : vector<32x32xf32>
    %c0_134 = arith.constant 0 : index
    %c0_135 = arith.constant 0 : index
    %281 = vector.load %arg33[%c0_134, %c0_135] : memref<1x32xf32, #tpu.memory_space<vmem>>, vector<1x32xf32>
    %c0_136 = arith.constant 0 : index
    %c0_137 = arith.constant 0 : index
    %282 = vector.load %arg34[%c0_136, %c0_137] : memref<1x32xf32, #tpu.memory_space<vmem>>, vector<1x32xf32>
    %cst_138 = arith.constant dense<0.000000e+00> : vector<32xf32>
    %283 = vector.multi_reduction <add>, %280, %cst_138 [1] : vector<32x32xf32> to vector<32xf32>
    %284 = vector.shape_cast %283 : vector<32xf32> to vector<32x1xf32>
    %cst_139 = arith.constant 3.200000e+01 : f32
    %285 = vector.broadcast %cst_139 : f32 to vector<32x1xf32>
    %286 = arith.divf %284, %285 : vector<32x1xf32>
    %287 = vector.broadcast %286 : vector<32x1xf32> to vector<32x32xf32>
    %288 = arith.subf %280, %287 : vector<32x32xf32>
    %289 = arith.mulf %288, %288 : vector<32x32xf32>
    %cst_140 = arith.constant dense<0.000000e+00> : vector<32xf32>
    %290 = vector.multi_reduction <add>, %289, %cst_140 [1] : vector<32x32xf32> to vector<32xf32>
    %291 = vector.shape_cast %290 : vector<32xf32> to vector<32x1xf32>
    %cst_141 = arith.constant 3.200000e+01 : f32
    %292 = vector.broadcast %cst_141 : f32 to vector<32x1xf32>
    %293 = arith.divf %291, %292 : vector<32x1xf32>
    %294 = vector.broadcast %286 : vector<32x1xf32> to vector<32x32xf32>
    %295 = arith.subf %280, %294 : vector<32x32xf32>
    %cst_142 = arith.constant 9.99999974E-6 : f32
    %296 = vector.broadcast %cst_142 : f32 to vector<32x1xf32>
    %297 = arith.addf %293, %296 : vector<32x1xf32>
    %298 = math.rsqrt %297 : vector<32x1xf32>
    %299 = vector.broadcast %298 : vector<32x1xf32> to vector<32x32xf32>
    %300 = arith.mulf %295, %299 : vector<32x32xf32>
    %301 = vector.broadcast %281 : vector<1x32xf32> to vector<32x32xf32>
    %302 = arith.mulf %300, %301 : vector<32x32xf32>
    %303 = vector.broadcast %282 : vector<1x32xf32> to vector<32x32xf32>
    %304 = arith.addf %302, %303 : vector<32x32xf32>
    %c0_143 = arith.constant 0 : index
    %c0_144 = arith.constant 0 : index
    %305 = vector.load %arg35[%c0_143, %c0_144] : memref<32x64xf32, #tpu.memory_space<vmem>>, vector<32x64xf32>
    %cst_145 = arith.constant dense<0.000000e+00> : vector<32x64xf32>
    %306 = tpu.matmul %304, %305, %cst_145 {dimension_numbers = #tpu.dot_dimension_numbers<[1], [0], [0], [1], [0, 0, 1, 1], [], []>} : vector<32x32xf32>, vector<32x64xf32>, vector<32x64xf32> -> vector<32x64xf32>
    %c0_146 = arith.constant 0 : index
    %c0_147 = arith.constant 0 : index
    %307 = vector.load %arg36[%c0_146, %c0_147] : memref<1x64xf32, #tpu.memory_space<vmem>>, vector<1x64xf32>
    %308 = vector.broadcast %307 : vector<1x64xf32> to vector<32x64xf32>
    %309 = arith.addf %306, %308 : vector<32x64xf32>
    %cst_148 = arith.constant 0.000000e+00 : f32
    %310 = vector.broadcast %cst_148 : f32 to vector<32x64xf32>
    %311 = arith.maximumf %309, %310 : vector<32x64xf32>
    %c0_149 = arith.constant 0 : index
    %c0_150 = arith.constant 0 : index
    %312 = vector.load %arg37[%c0_149, %c0_150] : memref<64x32xf32, #tpu.memory_space<vmem>>, vector<64x32xf32>
    %cst_151 = arith.constant dense<0.000000e+00> : vector<32x32xf32>
    %313 = tpu.matmul %311, %312, %cst_151 {dimension_numbers = #tpu.dot_dimension_numbers<[1], [0], [0], [1], [0, 0, 1, 1], [], []>} : vector<32x64xf32>, vector<64x32xf32>, vector<32x32xf32> -> vector<32x32xf32>
    %c0_152 = arith.constant 0 : index
    %c0_153 = arith.constant 0 : index
    %314 = vector.load %arg38[%c0_152, %c0_153] : memref<1x32xf32, #tpu.memory_space<vmem>>, vector<1x32xf32>
    %315 = vector.broadcast %314 : vector<1x32xf32> to vector<32x32xf32>
    %316 = arith.addf %313, %315 : vector<32x32xf32>
    %317 = arith.addf %316, %304 : vector<32x32xf32>
    %c0_154 = arith.constant 0 : index
    %c0_155 = arith.constant 0 : index
    %318 = vector.load %arg39[%c0_154, %c0_155] : memref<1x32xf32, #tpu.memory_space<vmem>>, vector<1x32xf32>
    %c0_156 = arith.constant 0 : index
    %c0_157 = arith.constant 0 : index
    %319 = vector.load %arg40[%c0_156, %c0_157] : memref<1x32xf32, #tpu.memory_space<vmem>>, vector<1x32xf32>
    %cst_158 = arith.constant dense<0.000000e+00> : vector<32xf32>
    %320 = vector.multi_reduction <add>, %317, %cst_158 [1] : vector<32x32xf32> to vector<32xf32>
    %321 = vector.shape_cast %320 : vector<32xf32> to vector<32x1xf32>
    %cst_159 = arith.constant 3.200000e+01 : f32
    %322 = vector.broadcast %cst_159 : f32 to vector<32x1xf32>
    %323 = arith.divf %321, %322 : vector<32x1xf32>
    %324 = vector.broadcast %323 : vector<32x1xf32> to vector<32x32xf32>
    %325 = arith.subf %317, %324 : vector<32x32xf32>
    %326 = arith.mulf %325, %325 : vector<32x32xf32>
    %cst_160 = arith.constant dense<0.000000e+00> : vector<32xf32>
    %327 = vector.multi_reduction <add>, %326, %cst_160 [1] : vector<32x32xf32> to vector<32xf32>
    %328 = vector.shape_cast %327 : vector<32xf32> to vector<32x1xf32>
    %cst_161 = arith.constant 3.200000e+01 : f32
    %329 = vector.broadcast %cst_161 : f32 to vector<32x1xf32>
    %330 = arith.divf %328, %329 : vector<32x1xf32>
    %331 = vector.broadcast %323 : vector<32x1xf32> to vector<32x32xf32>
    %332 = arith.subf %317, %331 : vector<32x32xf32>
    %cst_162 = arith.constant 9.99999974E-6 : f32
    %333 = vector.broadcast %cst_162 : f32 to vector<32x1xf32>
    %334 = arith.addf %330, %333 : vector<32x1xf32>
    %335 = math.rsqrt %334 : vector<32x1xf32>
    %336 = vector.broadcast %335 : vector<32x1xf32> to vector<32x32xf32>
    %337 = arith.mulf %332, %336 : vector<32x32xf32>
    %338 = vector.broadcast %318 : vector<1x32xf32> to vector<32x32xf32>
    %339 = arith.mulf %337, %338 : vector<32x32xf32>
    %340 = vector.broadcast %319 : vector<1x32xf32> to vector<32x32xf32>
    %341 = arith.addf %339, %340 : vector<32x32xf32>
    %342 = arith.addf %341, %189 : vector<32x32xf32>
    %c0_163 = arith.constant 0 : index
    %c0_164 = arith.constant 0 : index
    %343 = vector.load %arg41[%c0_163, %c0_164] : memref<32x32xf32, #tpu.memory_space<vmem>>, vector<32x32xf32>
    tpu.vector_store %arg41[%c0_163, %c0_164], %342 {strides = array<i32>} : memref<32x32xf32, #tpu.memory_space<vmem>>, vector<32x32xf32>,
    return
  }
}

</mosaic_0001>

<bundles_post_ra>
// kernel: st_transformer_block.1
= control target key start
LH: loop header
LB: loop body
LE: loop exit
PB: predicated region body
PF: predicated region fallthrough
CT: control target
= control target key end

     0   :  { %s6987_s6 = smov 1   ;;  %s6988_s10 = smov 2   ;;  %s8109_s0 = inlined_call_operand.smem [shape: u32[42], index: -1, kind: input, shape index: {}] }
   0x1   :  { %s7042_s5 = sld [smem:[%s8109_s0]]   ;;  %s6989_s14 = smov 3  }
   0x2   :  { %s7047_s9 = sld [smem:[%s8109_s0 + %s6987_s6]]   ;;  %s6990_s18 = smov 4  }
   0x3   :  { %s7052_s13 = sld [smem:[%s8109_s0 + %s6988_s10]]   ;;  %s6991_s22 = smov 5  }
   0x4   :  { %s7057_s17 = sld [smem:[%s8109_s0 + %s6989_s14]]   ;;  %s6992_s26 = smov 6  }
   0x5   :  { %s7062_s21 = sld [smem:[%s8109_s0 + %s6990_s18]]   ;;  %s6993_s30 = smov 7  }
   0x6   :  { %s7067_s25 = sld [smem:[%s8109_s0 + %s6991_s22]]   ;;  %s6994_s4 = smov 8  }
   0x7   :  { %s7072_s29 = sld [smem:[%s8109_s0 + %s6992_s26]]   ;;  %s6995_s10 = smov 9  }
   0x8   :  { %s7077_s3 = sld [smem:[%s8109_s0 + %s6993_s30]]   ;;  %s6996_s15 = smov 10  }
   0x9   :  { %s7082_s8 = sld [smem:[%s8109_s0 + %s6994_s4]]   ;;  %s6997_s20 = smov 11  }
   0xa   :  { %s7087_s14 = sld [smem:[%s8109_s0 + %s6995_s10]]   ;;  %s6998_s26 = smov 12  }
   0xb   :  { %8121 = sst [smem:[#allocation5_spill]] %s7062_s21  ;;  %s6999_s1 = smov 13  }
   0xc   :  { %s7092_s19 = sld [smem:[%s8109_s0 + %s6996_s15]]   ;;  %s7000_s7 = smov 14  }
   0xd   :  { %8122 = sst [smem:[#allocation6_spill]] %s7072_s29  ;;  %s7001_s15 = smov 15  }
   0xe   :  { %s7097_s24 = sld [smem:[%s8109_s0 + %s6997_s20]]   ;;  %s7002_s22 = smov 16  }
   0xf   :  { %s7102_s30 = sld [smem:[%s8109_s0 + %s6998_s26]]   ;;  %s7003_s28 = smov 17  }
  0x10   :  { %s7107_s6 = sld [smem:[%s8109_s0 + %s6999_s1]]  }
  0x11   :  { %s7112_s12 = sld [smem:[%s8109_s0 + %s7000_s7]]   ;;  %s7004_s7 = smov 18  }
  0x12   :  { %s7117_s20 = sld [smem:[%s8109_s0 + %s7001_s15]]   ;;  %s7005_s15 = smov 19  }
  0x13   :  { %s7122_s27 = sld [smem:[%s8109_s0 + %s7002_s22]]   ;;  %s7006_s22 = smov 20  }
  0x14   :  { %s7127_s4 = sld [smem:[%s8109_s0 + %s7003_s28]]   ;;  %s7007_s28 = smov 21  }
  0x15   :  { %s7132_s29 = sld [smem:[%s8109_s0 + %s7004_s7]]   ;;  %s7008_s7 = smov 22  }
  0x16   :  { %8123 = sst [smem:[#allocation7_spill]] %s7107_s6 }
  0x17   :  { %s7137_s21 = sld [smem:[%s8109_s0 + %s7005_s15]]   ;;  %s7009_s15 = smov 23  }
  0x18   :  { %8124 = sst [smem:[#allocation8_spill]] %s7117_s20 }
  0x19   :  { %s7142_s20 = sld [smem:[%s8109_s0 + %s7006_s22]]   ;;  %s7010_s22 = smov 24  }
  0x1a   :  { %8125 = sst [smem:[#allocation9_spill]] %s7127_s4 }
  0x1b   :  { %8126 = sst [smem:[#allocation10_spill]] %s7132_s29 }
  0x1c   :  { %s7147_s4 = sld [smem:[%s8109_s0 + %s7007_s28]]   ;;  %s7011_s28 = smov 25  }
  0x1d   :  { %8127 = sst [smem:[#allocation11_spill]] %s7137_s21 }
  0x1e   :  { %s7152_s29 = sld [smem:[%s8109_s0 + %s7008_s7]]   ;;  %s7012_s7 = smov 26  }
  0x1f   :  { %s7157_s21 = sld [smem:[%s8109_s0 + %s7009_s15]]   ;;  %s7013_s15 = smov 27  }
  0x20   :  { %s7162_s6 = sld [smem:[%s8109_s0 + %s7010_s22]]   ;;  %s7014_s22 = smov 28  }
  0x22   :  { %8128 = sst [smem:[#allocation12_spill]] %s7147_s4 }
  0x23   :  { %s7167_s4 = sld [smem:[%s8109_s0 + %s7011_s28]]   ;;  %s7015_s28 = smov 29  }
  0x24   :  { %8129 = sst [smem:[#allocation13_spill]] %s7152_s29 }
  0x25   :  { %8130 = sst [smem:[#allocation14_spill]] %s7157_s21 }
  0x26   :  { %8131 = sst [smem:[#allocation15_spill]] %s7162_s6 }
  0x27   :  { %s7172_s29 = sld [smem:[%s8109_s0 + %s7012_s7]]   ;;  %s7016_s7 = smov 30  }
  0x28   :  { %s7177_s21 = sld [smem:[%s8109_s0 + %s7013_s15]]   ;;  %s7017_s15 = smov 31  }
  0x29   :  { %8132 = sst [smem:[#allocation16_spill]] %s7167_s4 }
  0x2a   :  { %s7182_s6 = sld [smem:[%s8109_s0 + %s7014_s22]]   ;;  %s7018_s22 = smov 32  }
  0x2b   :  { %s7187_s4 = sld [smem:[%s8109_s0 + %s7015_s28]]   ;;  %s7019_s28 = smov 33  }
  0x2d   :  { %8133 = sst [smem:[#allocation17_spill]] %s7172_s29 }
  0x2e   :  { %8134 = sst [smem:[#allocation18_spill]] %s7177_s21 }
  0x2f   :  { %s7192_s29 = sld [smem:[%s8109_s0 + %s7016_s7]]   ;;  %s7020_s7 = smov 34  }
  0x30   :  { %8135 = sst [smem:[#allocation19_spill]] %s7182_s6 }
  0x31   :  { %8136 = sst [smem:[#allocation20_spill]] %s7187_s4 }
  0x32   :  { %s7197_s21 = sld [smem:[%s8109_s0 + %s7017_s15]]   ;;  %s7021_s15 = smov 35  }
  0x33   :  { %s7202_s6 = sld [smem:[%s8109_s0 + %s7018_s22]]   ;;  %s7022_s22 = smov 36  }
  0x34   :  { %s7207_s4 = sld [smem:[%s8109_s0 + %s7019_s28]]   ;;  %s7023_s28 = smov 37  }
  0x35   :  { %8137 = sst [smem:[#allocation21_spill]] %s7192_s29 }
  0x36   :  { %s7212_s29 = sld [smem:[%s8109_s0 + %s7020_s7]]   ;;  %s7024_s7 = smov 38  }
  0x38   :  { %8138 = sst [smem:[#allocation22_spill]] %s7197_s21 }
  0x39   :  { %8139 = sst [smem:[#allocation23_spill]] %s7202_s6 }
  0x3a   :  { %8140 = sst [smem:[#allocation24_spill]] %s7207_s4 }
  0x3b   :  { %s7217_s21 = sld [smem:[%s8109_s0 + %s7021_s15]]   ;;  %s7025_s15 = smov 39  }
  0x3c   :  { %8141 = sst [smem:[#allocation25_spill]] %s7212_s29 }
  0x3d   :  { %s7222_s6 = sld [smem:[%s8109_s0 + %s7022_s22]]   ;;  %s7026_s22 = smov 40  }
  0x3e   :  { %s7227_s4 = sld [smem:[%s8109_s0 + %s7023_s28]]   ;;  %s7027_s28 = smov 41  }
  0x3f   :  { %s7232_s29 = sld [smem:[%s8109_s0 + %s7024_s7]]  }
  0x41   :  { %8142 = sst [smem:[#allocation26_spill]] %s7217_s21 }
  0x42   :  { %s7237_s21 = sld [smem:[%s8109_s0 + %s7025_s15]]  }
  0x43   :  { %8143 = sst [smem:[#allocation27_spill]] %s7222_s6 }
  0x44   :  { %8144 = sst [smem:[#allocation28_spill]] %s7227_s4 }
  0x45   :  { %s7242_s6 = sld [smem:[%s8109_s0 + %s7026_s22]]  }
  0x46   :  { %s7247_s4 = sld [smem:[%s8109_s0 + %s7027_s28]]  }
  0x47   :  { %v183_v0 = vld [vmem:[%s7077_s3] sm:$0xff]  ;;  %v184_v1 = vld [vmem:[%s7077_s3 + $0x8] sm:$0xff]  ;;  %v185_v2 = vld [vmem:[%s7077_s3 + $0x10] sm:$0xff]  ;;  %vm204_vm0 = vcmask 261120  }
  0x48   :  { %v6280_v3 = vpack.c.bf16 %v184_v1, %v183_v0  ;;  %v186_v4 = vld [vmem:[%s7077_s3 + $0x18] sm:$0xff]  ;;  %v171_v5 = vld [vmem:[%s7042_s5] sm:$0xff]  ;;  %v188_v8 = vld [vmem:[%s7082_s8 + $0x8] sm:$0xff] }
  0x49   :  { %v6284_v6 = vpack.c.bf16 %v186_v4, %v185_v2  ;;  %5760 = vmatprep.mubr.msk.f32.mxu1 %vm204_vm0, %v171_v5  ;;  %v187_v7 = vld [vmem:[%s7082_s8] sm:$0xff] }
  0x4a   :  { %6281 = vmatprep.subr.bf16.mxu1 %v6280_v3  ;;  %v6288_v9 = vpack.c.bf16 %v188_v8, %v187_v7 }
  0x4b   :  { %6283 = vmatpush3.bf16.msra.mxu1 %v6280_v3 }
  0x4c   :  { %6285 = vmatprep.subr.bf16.mxu1 %v6284_v6 }
  0x4d   :  { %88 = vsyncpa [#allocation3], 0  ;;  %v189_v10 = vld [vmem:[%s7082_s8 + $0x10] sm:$0xff]  ;;  %v190_v11 = vld [vmem:[%s7082_s8 + $0x18] sm:$0xff]  ;;  %vm496_vm1 = vcmask 64512   ;;  %s7028_s0 = smov 120  }
  0x4e   :  { %v172_v12 = vld [vmem:[%s7042_s5 + $0x8] sm:$0xff]  ;;  %v173_v13 = vld [vmem:[%s7042_s5 + $0x10] sm:$0xff]  ;;  %v6292_v14 = vpack.c.bf16 %v190_v11, %v189_v10  ;;  %v174_v15 = vld [vmem:[%s7042_s5 + $0x18] sm:$0xff]  ;;  %s8150_s3 = sld [smem:[#allocation12_spill]]  ;;  %vm2173_vm3 = vcmask 523264   ;;  %s8151_s8 = sld [smem:[#allocation9_spill]] }
  0x4f   :  { %6287 = vmatpush3.bf16.msra.mxu1 %v6284_v6  ;;  %v175_v16 = vld [vmem:[%s7047_s9] sm:$0xff]  ;;  %v176_v17 = vld [vmem:[%s7047_s9 + $0x8] sm:$0xff]  ;;  %v177_v18 = vld [vmem:[%s7047_s9 + $0x10] sm:$0xff]  ;;  %s8159_s7 = sld [smem:[#allocation20_spill]]  ;;  %s8160_s10 = sld [smem:[#allocation16_spill]] }
  0x50   :  { %6289 = vmatprep.subr.bf16.mxu1 %v6288_v9  ;;  %v178_v19 = vld [vmem:[%s7047_s9 + $0x18] sm:$0xff]  ;;  %vm7285_vm2 = vmpackc.low %vm496_vm1, %vm496_vm1  ;;  %v191_v33 = vld [vmem:[%s7087_s14] sm:$0xff]  ;;  %s7029_s9 = smov 112   ;;  %s8161_s11 = sld [smem:[#allocation18_spill]] }
  0x51   :  { %v192_v34 = vld [vmem:[%s7087_s14 + $0x8] sm:$0xff]  ;;  %v193_v35 = vld [vmem:[%s7087_s14 + $0x10] sm:$0xff]  ;;  %v194_v37 = vld [vmem:[%s7087_s14 + $0x18] sm:$0xff]  ;;  %s8152_s14 = sld [smem:[#allocation15_spill]]  ;;  %s8162_s15 = sld [smem:[#allocation5_spill]] }
  0x52   :  { %5761 = vmatmul.mubr.msk.f32.vlgmr.msra.gmra.mrb[0].mxu1 %vm204_vm0, %v172_v12  ;;  %v6296_v36 = vpack.c.bf16 %v192_v34, %v191_v33  ;;  %v179_v38 = vld [vmem:[%s7052_s13] sm:$0xff]  ;;  %v6300_v39 = vpack.c.bf16 %v194_v37, %v193_v35  ;;  %v180_v40 = vld [vmem:[%s7052_s13 + $0x8] sm:$0xff]  ;;  %v181_v41 = vld [vmem:[%s7052_s13 + $0x10] sm:$0xff]  ;;  %s8163_s16 = sld [smem:[#allocation6_spill]]  ;;  %s8165_s22 = sld [smem:[#allocation23_spill]] }
  0x53   :  { %6291 = vmatpush3.bf16.msra.mxu1 %v6288_v9  ;;  %5763 = vmatprep.mubr.msk.f32.mxu1 %vm204_vm0, %v173_v13  ;;  %v182_v42 = vld [vmem:[%s7052_s13 + $0x18] sm:$0xff]  ;;  %v7320_v43 = vld [vmem:[%s7067_s25] sm:$0xff]  ;;  %v7323_v45 = vld [vmem:[%s7067_s25 + $0x8] sm:$0xff]  ;;  %s7030_s13 = smov 104   ;;  %s8164_s18 = sld [smem:[#allocation22_spill]] }
  0x54   :  { %6293 = vmatprep.subr.bf16.mxu1 %v6292_v14  ;;  %5788 = vmatprep.mubr.msk.f32.mxu0 %vm204_vm0, %v179_v38  ;;  %v7327_v48 = vld [vmem:[%s7067_s25 + $0x10] sm:$0xff]  ;;  %v7332_v52 = vld [vmem:[%s7067_s25 + $0x18] sm:$0xff]  ;;  %s8149_s25 = sld [smem:[#allocation8_spill]]  ;;  %s8166_s23 = sld [smem:[#allocation26_spill]] }
  0x55   :  { %6297 = vmatprep.subr.bf16.mxu0 %v6296_v36  ;;  %s8167_s26 = sld [smem:[#allocation28_spill]]  ;;  %s8168_s28 = sld [smem:[#allocation24_spill]] }
  0x56   :  { %5764 = vmatmul.mubr.msk.f32.gmra.mrb[2].mxu1 %vm204_vm0, %v174_v15  ;;  %6299 = vmatpush3.bf16.msra.mxu0 %v6296_v36  ;;  %s8169_s1 = sld [smem:[#allocation25_spill]]  ;;  %s8170_s2 = sld [smem:[#allocation27_spill]] }
  0x57   :  { %6295 = vmatpush3.bf16.msra.mxu1 %v6292_v14  ;;  %5774 = vmatprep.mubr.msk.f32.mxu1 %vm204_vm0, %v175_v16 }
  0x58   :  { %6301 = vmatprep.subr.bf16.mxu0 %v6300_v39 }
  0x5a   :  { %5775 = vmatmul.mubr.msk.f32.vlgmr.msra.gmra.mrb[4].mxu1 %vm204_vm0, %v176_v17  ;;  %6303 = vmatpush3.bf16.msra.mxu0 %v6300_v39 }
  0x5b   :  { %5777 = vmatprep.mubr.msk.f32.mxu1 %vm204_vm0, %v177_v18 }
  0x5d   :  { %5789 = vmatmul.mubr.msk.f32.vlgmr.msra.gmra.mrb[0].mxu0 %vm204_vm0, %v180_v40 }
  0x5e   :  { %5778 = vmatmul.mubr.msk.f32.gmra.mrb[6].mxu1 %vm204_vm0, %v178_v19  ;;  %5791 = vmatprep.mubr.msk.f32.mxu0 %vm204_vm0, %v181_v41 }
  0x61   :  { %5792 = vmatmul.mubr.msk.f32.gmra.mrb[2].mxu0 %vm204_vm0, %v182_v42 }
 0x125   :  { %v7273_v20 = vpop.f32.mrb[0].mxu1 }
 0x126   :  { %v7275_v21 = vpop.f32.mrb[1].mxu1 }
 0x127   :  { %5802 = vmatprep.mubr.msk.f32.mxu1 %vm496_vm1, %v7275_v21 }
 0x129   :  { %v7279_v22 = vpop.f32.mrb[2].mxu1 }
 0x12a   :  { %v7281_v23 = vpop.f32.mrb[3].mxu1 }
 0x12d   :  { %v5776_v24 = vpop.f32.mrb[4].mxu1 }
 0x12e   :  { %v380_v25 = vpop.f32.mrb[5].mxu1 }
 0x12f   :  { %v6304_v27 = vpack.c.bf16 %v5776_v24, %v380_v25  ;;  %v7289_v28 = vpack.i.bf16 %v5776_v24, %v380_v25 }
 0x130   :  { %v5790_v59 = vpop.f32.mrb[0].mxu0 }
 0x131   :  { %6306 = vmatprep.subr.msk.bf16.mxu1 %vm7285_vm2, %v6304_v27  ;;  %v5779_v29 = vpop.f32.mrb[6].mxu1  ;;  %v477_v60 = vpop.f32.mrb[1].mxu0 }
 0x132   :  { %6309 = vmatpush3.bf16.xpose.msk.msra.mxu1 %vm7285_vm2, %v6304_v27  ;;  %v390_v30 = vpop.f32.mrb[7].mxu1  ;;  %v6316_v18 = vpack.c.bf16 %v5790_v59, %v477_v60  ;;  %v7343_v24 = vpack.i.bf16 %v5790_v59, %v477_v60 }
 0x133   :  { %v6310_v31 = vpack.c.bf16 %v5779_v29, %v390_v30  ;;  %v7295_v32 = vpack.i.bf16 %v5779_v29, %v390_v30 }
 0x134   :  { %v5793_v17 = vpop.f32.mrb[2].mxu0  ;;  %6317 = vmatprep.subr.bf16.mxu0 %v6316_v18 }
 0x135   :  { %6312 = vmatprep.subr.msk.bf16.mxu1 %vm7285_vm2, %v6310_v31  ;;  %v487_v19 = vpop.f32.mrb[3].mxu0  ;;  %6319 = vmatpush3.bf16.msra.mxu0 %v6316_v18 }
 0x136   :  { %v6320_v25 = vpack.c.bf16 %v5793_v17, %v487_v19  ;;  %v7345_v27 = vpack.i.bf16 %v5793_v17, %v487_v19 }
 0x138   :  { %6321 = vmatprep.subr.bf16.mxu0 %v6320_v25 }
 0x139   :  { %6323 = vmatpush3.bf16.msra.mxu0 %v6320_v25 }
 0x13a   :  { %6315 = vmatpush3.bf16.xpose.msk.msra.mxu1 %vm7285_vm2, %v6310_v31 }
 0x141   :  { %5803 = vmatmul.mubr.msk.f32.vlgmr.msra.gmra.mrb[8].mxu1 %vm496_vm1, %v7273_v20 }
 0x142   :  { %5805 = vmatprep.mubr.msk.f32.mxu1 %vm496_vm1, %v7281_v23 }
 0x145   :  { %5806 = vmatmul.mubr.msk.f32.gmra.mrb[10].mxu1 %vm496_vm1, %v7279_v22 }
 0x214   :  { %v5804_v44 = vpop.f32.mrb[8].mxu1 }
 0x215   :  { %v587_v46 = vpop.f32.mrb[9].mxu1  ;;  %v593_v49 = vadd.f32 %v5804_v44, %v7323_v45 }
 0x216   :  { %v588_v47 = vadd.f32 %v587_v46, %v7320_v43 }
 0x217   :  { %v609_v57 = vsel %vm204_vm0, %v593_v49, -inf }
 0x218   :  { %v5807_v50 = vpop.f32.mrb[10].mxu1  ;;  %v606_v51 = vsel %vm204_vm0, %v588_v47, -inf }
 0x219   :  { %v597_v53 = vpop.f32.mrb[11].mxu1  ;;  %607 = vmax.xlane.f32.xlu0 %v606_v51  ;;  %v603_v55 = vadd.f32 %v5807_v50, %v7332_v52 }
 0x21a   :  { %v598_v54 = vadd.f32 %v597_v53, %v7327_v48 }
 0x21b   :  { %v615_v58 = vsel %vm204_vm0, %v603_v55, -inf }
 0x21c   :  { %v612_v56 = vsel %vm204_vm0, %v598_v54, -inf }
 0x21d   :  { %613 = vmax.xlane.f32.xlu1 %v612_v56  ;;  %610 = vmax.xlane.f32.xlu0 %v609_v57 }
 0x221   :  { %616 = vmax.xlane.f32.xlu1 %v615_v58 }
 0x2a6   :  { %v608_v61 = vpop.xlane.xlu0 %607 }
 0x2a7   :  { %v618_v62 = vsub.f32 %v588_v47, %v608_v61 }
 0x2a9   :  { %v622_v63 = vmul.f32 1.442695, %v618_v62 }
 0x2aa   :  { %v614_v0 = vpop.xlane.xlu1 %613  ;;  %v611_v1 = vpop.xlane.xlu0 %610 }
 0x2ab   :  { %6783 = vpow2.f32 %v622_v63  ;;  %v620_v2 = vsub.f32 %v598_v54, %v614_v0  ;;  %v619_v3 = vsub.f32 %v593_v49, %v611_v1 }
 0x2ad   :  { %v626_v4 = vmul.f32 1.442695, %v620_v2  ;;  %v624_v5 = vmul.f32 1.442695, %v619_v3 }
 0x2ae   :  { %v617_v6 = vpop.xlane.xlu1 %616 }
 0x2af   :  { %6785 = vpow2.f32 %v626_v4  ;;  %v621_v7 = vsub.f32 %v603_v55, %v617_v6 }
 0x2b0   :  { %6787 = vpow2.f32 %v624_v5 }
 0x2b1   :  { %v628_v8 = vmul.f32 1.442695, %v621_v7 }
 0x2b3   :  { %6789 = vpow2.f32 %v628_v8 }
 0x2b5   :  { %v6784_v9 = vpop.eup %6783 }
 0x2b6   :  { %v630_v10 = vsel %vm204_vm0, %v6784_v9, 0.0 }
 0x2b7   :  { %631 = vadd.xlane.f32.xlu0 %v630_v10 }
 0x2b9   :  { %v6786_v11 = vpop.eup %6785 }
 0x2ba   :  { %v6788_v12 = vpop.eup %6787  ;;  %v636_v13 = vsel %vm204_vm0, %v6786_v11, 0.0 }
 0x2bb   :  { %637 = vadd.xlane.f32.xlu0 %v636_v13  ;;  %v633_v14 = vsel %vm204_vm0, %v6788_v12, 0.0 }
 0x2bc   :  { %634 = vadd.xlane.f32.xlu1 %v633_v14 }
 0x2bd   :  { %v6790_v15 = vpop.eup %6789 }
 0x2be   :  { %v639_v16 = vsel %vm204_vm0, %v6790_v15, 0.0 }
 0x2c0   :  { %640 = vadd.xlane.f32.xlu1 %v639_v16 }
 0x2d1   :  { %6669 = vrot.lane.b32.xlu1 %v7295_v32, %s7028_s0  ;;  %6664 = vrot.lane.b32.xlu0 %v7289_v28, %s7028_s0 }
 0x2d5   :  { %747 = vrot.lane.b32.xlu1 %v7275_v21, %s7028_s0  ;;  %751 = vrot.lane.b32.xlu0 %v7281_v23, %s7028_s0 }
 0x2d9   :  { %749 = vrot.lane.b32.xlu1 %v7273_v20, %s7028_s0  ;;  %6674 = vrot.lane.b32.xlu0 %v7289_v28, %s7029_s9 }
 0x2dd   :  { %753 = vrot.lane.b32.xlu1 %v7279_v22, %s7028_s0  ;;  %1215 = vrot.lane.b32.xlu0 %v7275_v21, %s7029_s9 }
 0x2e1   :  { %6679 = vrot.lane.b32.xlu1 %v7295_v32, %s7029_s9  ;;  %1219 = vrot.lane.b32.xlu0 %v7281_v23, %s7029_s9 }
 0x2e5   :  { %1217 = vrot.lane.b32.xlu1 %v7273_v20, %s7029_s9 }
 0x2e9   :  { %1221 = vrot.lane.b32.xlu1 %v7279_v22, %s7029_s9 }
 0x344   :  { %v632_v29 = vpop.xlane.xlu0 %631 }
 0x345   :  { %6791 = vrcp.f32 %v632_v29 }
 0x348   :  { %v638_v30 = vpop.xlane.xlu0 %637 }
 0x349   :  { %v635_v31 = vpop.xlane.xlu1 %634  ;;  %6793 = vrcp.f32 %v638_v30 }
 0x34a   :  { %6795 = vrcp.f32 %v635_v31 }
 0x34c   :  { %v6665_v33 = vpop.permute.xlu0 %6664 }
 0x34d   :  { %v641_v34 = vpop.xlane.xlu1 %640  ;;  %v6667_v35 = vunpack.i.h.bf16 %v6665_v33  ;;  %v6666_v36 = vunpack.i.l.bf16 %v6665_v33 }
 0x34e   :  { %6797 = vrcp.f32 %v641_v34 }
 0x34f   :  { %v6792_v37 = vpop.eup %6791  ;;  %v6324_v38 = vpack.c.bf16 %v6667_v35, %v6666_v36 }
 0x350   :  { %v646_v39 = vmul.f32 %v6792_v37, %v6784_v9  ;;  %v752_v41 = vpop.permute.xlu0 %751 }
 0x351   :  { %v6670_v40 = vpop.permute.xlu1 %6669  ;;  %6326 = vmatprep.subr.msk.bf16.mxu0 %vm7285_vm2, %v6324_v38 }
 0x352   :  { %5816 = vmatprep.mubr.msk.f32.mxu0 %vm204_vm0, %v646_v39  ;;  %v6672_v44 = vunpack.i.h.bf16 %v6670_v40  ;;  %v6671_v46 = vunpack.i.l.bf16 %v6670_v40 }
 0x353   :  { %v6794_v42 = vpop.eup %6793 }
 0x354   :  { %v6796_v47 = vpop.eup %6795  ;;  %v648_v49 = vmul.f32 %v6794_v42, %v6786_v11  ;;  %v6330_v53 = vpack.c.bf16 %v6672_v44, %v6671_v46  ;;  %v6675_v55 = vpop.permute.xlu0 %6674 }
 0x355   :  { %v647_v50 = vmul.f32 %v6796_v47, %v6788_v12  ;;  %v748_v51 = vpop.permute.xlu1 %747  ;;  %v6677_v58 = vunpack.i.h.bf16 %v6675_v55  ;;  %v6676_v59 = vunpack.i.l.bf16 %v6675_v55 }
 0x357   :  { %5817 = vmatmul.mubr.msk.f32.vlgmr.msra.gmra.mrb[4].mxu0 %vm204_vm0, %v647_v50  ;;  %v6344_v61 = vpack.c.bf16 %v6677_v58, %v6676_v59 }
 0x358   :  { %v6798_v54 = vpop.eup %6797  ;;  %6329 = vmatpush3.bf16.xpose.msk.msra.mxu0 %vm7285_vm2, %v6324_v38  ;;  %5819 = vmatprep.mubr.msk.f32.mxu0 %vm204_vm0, %v648_v49  ;;  %v1216_v2 = vpop.permute.xlu0 %1215 }
 0x359   :  { %6332 = vmatprep.subr.msk.bf16.mxu0 %vm7285_vm2, %v6330_v53  ;;  %v750_v56 = vpop.permute.xlu1 %749  ;;  %v649_v57 = vmul.f32 %v6798_v54, %v6790_v15 }
 0x35b   :  { %5820 = vmatmul.mubr.msk.f32.gmra.mrb[6].mxu0 %vm204_vm0, %v649_v57 }
 0x35c   :  { %5830 = vmatprep.mubr.msk.f32.mxu0 %vm496_vm1, %v748_v51  ;;  %v1220_v4 = vpop.permute.xlu0 %1219 }
 0x35d   :  { %v754_v60 = vpop.permute.xlu1 %753 }
 0x360   :  { %6335 = vmatpush3.bf16.xpose.msk.msra.mxu0 %vm7285_vm2, %v6330_v53 }
 0x361   :  { %6346 = vmatprep.subr.msk.bf16.mxu0 %vm7285_vm2, %v6344_v61  ;;  %v6680_v62 = vpop.permute.xlu1 %6679 }
 0x362   :  { %v6682_v63 = vunpack.i.h.bf16 %v6680_v62  ;;  %v6681_v0 = vunpack.i.l.bf16 %v6680_v62 }
 0x364   :  { %v6350_v1 = vpack.c.bf16 %v6682_v63, %v6681_v0 }
 0x365   :  { %v1218_v3 = vpop.permute.xlu1 %1217 }
 0x367   :  { %5831 = vmatmul.mubr.msk.f32.vlgmr.msra.gmra.mrb[8].mxu0 %vm496_vm1, %v750_v56 }
 0x368   :  { %5833 = vmatprep.mubr.msk.f32.mxu0 %vm496_vm1, %v752_v41  ;;  %6349 = vmatpush3.bf16.xpose.msk.msra.mxu0 %vm7285_vm2, %v6344_v61 }
 0x369   :  { %6352 = vmatprep.subr.msk.bf16.mxu0 %vm7285_vm2, %v6350_v1  ;;  %v1222_v5 = vpop.permute.xlu1 %1221 }
 0x36b   :  { %5834 = vmatmul.mubr.msk.f32.gmra.mrb[10].mxu0 %vm496_vm1, %v754_v60 }
 0x36c   :  { %5874 = vmatprep.mubr.msk.f32.mxu0 %vm496_vm1, %v1216_v2 }
 0x370   :  { %6355 = vmatpush3.bf16.xpose.msk.msra.mxu0 %vm7285_vm2, %v6350_v1 }
 0x377   :  { %5875 = vmatmul.mubr.msk.f32.vlgmr.msra.gmra.mrb[12].mxu0 %vm496_vm1, %v1218_v3 }
 0x378   :  { %5877 = vmatprep.mubr.msk.f32.mxu0 %vm496_vm1, %v1220_v4 }
 0x37b   :  { %5878 = vmatmul.mubr.msk.f32.gmra.mrb[14].mxu0 %vm496_vm1, %v1222_v5 }
 0x42a   :  { %v7399_v6 = vpop.f32.mrb[4].mxu0 }
 0x42b   :  { %v7401_v7 = vpop.f32.mrb[5].mxu0 }
 0x42e   :  { %v7403_v8 = vpop.f32.mrb[6].mxu0 }
 0x42f   :  { %v7405_v9 = vpop.f32.mrb[7].mxu0 }
 0x43a   :  { %v5832_v10 = vpop.f32.mrb[8].mxu0 }
 0x43b   :  { %v851_v11 = vadd.f32 %v5832_v10, %v7323_v45  ;;  %v845_v12 = vpop.f32.mrb[9].mxu0 }
 0x43c   :  { %v846_v13 = vadd.f32 %v845_v12, %v7320_v43 }
 0x43d   :  { %v867_v14 = vsel %vm204_vm0, %v851_v11, -inf }
 0x43e   :  { %868 = vmax.xlane.f32.xlu1 %v867_v14  ;;  %v5835_v15 = vpop.f32.mrb[10].mxu0  ;;  %v864_v16 = vsel %vm204_vm0, %v846_v13, -inf }
 0x43f   :  { %v855_v17 = vpop.f32.mrb[11].mxu0  ;;  %865 = vmax.xlane.f32.xlu0 %v864_v16  ;;  %v861_v19 = vadd.f32 %v5835_v15, %v7332_v52 }
 0x440   :  { %v856_v18 = vadd.f32 %v855_v17, %v7327_v48 }
 0x441   :  { %v873_v29 = vsel %vm204_vm0, %v861_v19, -inf }
 0x442   :  { %v870_v25 = vsel %vm204_vm0, %v856_v18, -inf }
 0x443   :  { %871 = vmax.xlane.f32.xlu0 %v870_v25 }
 0x447   :  { %874 = vmax.xlane.f32.xlu0 %v873_v29 }
 0x44a   :  { %v5876_v30 = vpop.f32.mrb[12].mxu0 }
 0x44b   :  { %v1313_v31 = vpop.f32.mrb[13].mxu0 }
 0x44c   :  { %v7442_v59 = vadd.f32 %v1313_v31, %v7320_v43 }
 0x44e   :  { %v5879_v33 = vpop.f32.mrb[14].mxu0 }
 0x44f   :  { %v1323_v34 = vpop.f32.mrb[15].mxu0 }
 0x4cb   :  { %v869_v35 = vpop.xlane.xlu1 %868 }
 0x4cc   :  { %v877_v36 = vsub.f32 %v851_v11, %v869_v35  ;;  %v866_v37 = vpop.xlane.xlu0 %865 }
 0x4cd   :  { %v876_v38 = vsub.f32 %v846_v13, %v866_v37 }
 0x4ce   :  { %v882_v39 = vmul.f32 1.442695, %v877_v36 }
 0x4cf   :  { %v880_v40 = vmul.f32 1.442695, %v876_v38 }
 0x4d0   :  { %6799 = vpow2.f32 %v882_v39  ;;  %v872_v41 = vpop.xlane.xlu0 %871 }
 0x4d1   :  { %6801 = vpow2.f32 %v880_v40  ;;  %v878_v42 = vsub.f32 %v856_v18, %v872_v41 }
 0x4d3   :  { %v884_v44 = vmul.f32 1.442695, %v878_v42 }
 0x4d4   :  { %v875_v46 = vpop.xlane.xlu0 %874 }
 0x4d5   :  { %6803 = vpow2.f32 %v884_v44  ;;  %v879_v47 = vsub.f32 %v861_v19, %v875_v46 }
 0x4d7   :  { %v886_v49 = vmul.f32 1.442695, %v879_v47 }
 0x4d9   :  { %6805 = vpow2.f32 %v886_v49 }
 0x4da   :  { %v7415_v50 = vpop.eup %6799 }
 0x4db   :  { %v6802_v51 = vpop.eup %6801  ;;  %v891_v53 = vsel %vm204_vm0, %v7415_v50, 0.0 }
 0x4dc   :  { %892 = vadd.xlane.f32.xlu1 %v891_v53  ;;  %v888_v54 = vsel %vm204_vm0, %v6802_v51, 0.0 }
 0x4dd   :  { %889 = vadd.xlane.f32.xlu0 %v888_v54 }
 0x4df   :  { %v6804_v55 = vpop.eup %6803 }
 0x4e0   :  { %v894_v56 = vsel %vm204_vm0, %v6804_v55, 0.0 }
 0x4e1   :  { %895 = vadd.xlane.f32.xlu0 %v894_v56 }
 0x4e3   :  { %v7421_v57 = vpop.eup %6805 }
 0x4e4   :  { %v897_v58 = vsel %vm204_vm0, %v7421_v57, 0.0 }
 0x4e5   :  { %898 = vadd.xlane.f32.xlu1 %v897_v58 }
 0x4f6   :  { %6689 = vrot.lane.b32.xlu1 %v7345_v27, %s7028_s0 }
 0x4f7   :  { %6684 = vrot.lane.b32.xlu0 %v7343_v24, %s7028_s0 }
 0x4fa   :  { %6694 = vrot.lane.b32.xlu1 %v7289_v28, %s7030_s13  ;;  %v7445_v28 = vadd.f32 %v1323_v34, %v7327_v48 }
 0x4fb   :  { %1586 = vrot.lane.b32.xlu0 %v7275_v21, %s7030_s13  ;;  %v1332_v21 = vsel %vm204_vm0, %v7442_v59, -inf }
 0x4fe   :  { %6699 = vrot.lane.b32.xlu1 %v7295_v32, %s7030_s13  ;;  %v7450_v32 = vadd.f32 %v5879_v33, %v7332_v52 }
 0x4ff   :  { %1590 = vrot.lane.b32.xlu0 %v7281_v23, %s7030_s13  ;;  %v1338_v23 = vsel %vm204_vm0, %v7445_v28, -inf }
 0x502   :  { %1588 = vrot.lane.b32.xlu1 %v7273_v20, %s7030_s13  ;;  %v7455_v20 = vadd.f32 %v5876_v30, %v7323_v45 }
 0x504   :  { %v1335_v60 = vsel %vm204_vm0, %v7455_v20, -inf }
 0x506   :  { %1592 = vrot.lane.b32.xlu1 %v7279_v22, %s7030_s13  ;;  %v1341_v22 = vsel %vm204_vm0, %v7450_v32, -inf }
 0x51e   :  { %1333 = vmax.xlane.f32.xlu0 %v1332_v21 }
 0x522   :  { %1339 = vmax.xlane.f32.xlu0 %v1338_v23 }
 0x526   :  { %1342 = vmax.xlane.f32.xlu0 %v1341_v22 }
 0x52a   :  { %1336 = vmax.xlane.f32.xlu1 %v1335_v60  ;;  %v196_v60 = vld [vmem:[%s7092_s19 + $0x8] sm:$0xff] }
 0x569   :  { %v893_v62 = vpop.xlane.xlu1 %892 }
 0x56a   :  { %v890_v61 = vpop.xlane.xlu0 %889 }
 0x56b   :  { %6807 = vrcp.f32 %v890_v61  ;;  %v195_v61 = vld [vmem:[%s7092_s19] sm:$0xff] }
 0x56c   :  { %6809 = vrcp.f32 %v893_v62 }
 0x56e   :  { %v896_v63 = vpop.xlane.xlu0 %895 }
 0x56f   :  { %6811 = vrcp.f32 %v896_v63 }
 0x572   :  { %v899_v0 = vpop.xlane.xlu1 %898  ;;  %v6685_v1 = vpop.permute.xlu0 %6684 }
 0x573   :  { %v6687_v2 = vunpack.i.h.bf16 %v6685_v1  ;;  %v6686_v3 = vunpack.i.l.bf16 %v6685_v1  ;;  %6813 = vrcp.f32 %v899_v0 }
 0x575   :  { %v6808_v4 = vpop.eup %6807  ;;  %v6336_v5 = vpack.c.bf16 %v6687_v2, %v6686_v3 }
 0x576   :  { %v6690_v10 = vpop.permute.xlu1 %6689  ;;  %v1587_v11 = vpop.permute.xlu0 %1586  ;;  %v904_v12 = vmul.f32 %v6808_v4, %v6802_v51 }
 0x577   :  { %v6692_v13 = vunpack.i.h.bf16 %v6690_v10  ;;  %v6691_v14 = vunpack.i.l.bf16 %v6690_v10  ;;  %6337 = vmatprep.subr.bf16.mxu1 %v6336_v5  ;;  %5910 = vmatprep.mubr.msk.f32.mxu0 %vm496_vm1, %v1587_v11  ;;  %v6810_v16 = vpop.eup %6809 }
 0x578   :  { %6339 = vmatpush3.bf16.msra.mxu1 %v6336_v5  ;;  %5844 = vmatprep.mubr.msk.f32.mxu1 %vm204_vm0, %v904_v12  ;;  %v905_v29 = vmul.f32 %v6810_v16, %v7415_v50 }
 0x579   :  { %v6340_v15 = vpack.c.bf16 %v6692_v13, %v6691_v14  ;;  %v6812_v18 = vpop.eup %6811 }
 0x57a   :  { %v6695_v17 = vpop.permute.xlu1 %6694  ;;  %v906_v34 = vmul.f32 %v6812_v18, %v6804_v55  ;;  %v1591_v40 = vpop.permute.xlu0 %1590 }
 0x57b   :  { %v6697_v19 = vunpack.i.h.bf16 %v6695_v17  ;;  %v6696_v25 = vunpack.i.l.bf16 %v6695_v17  ;;  %6341 = vmatprep.subr.bf16.mxu1 %v6340_v15 }
 0x57c   :  { %6343 = vmatpush3.bf16.msra.mxu1 %v6340_v15 }
 0x57d   :  { %v6364_v30 = vpack.c.bf16 %v6697_v19, %v6696_v25  ;;  %v6814_v31 = vpop.eup %6813  ;;  %5850 = vmatprep.subr.mxu1 %v196_v60 }
 0x57e   :  { %v6700_v33 = vpop.permute.xlu1 %6699  ;;  %v907_v38 = vmul.f32 %v6814_v31, %v7421_v57 }
 0x57f   :  { %v6702_v35 = vunpack.i.h.bf16 %v6700_v33  ;;  %v6701_v36 = vunpack.i.l.bf16 %v6700_v33  ;;  %5845 = vmatmul.mubr.msk.f32.vlgmr.msra.gmra.mrb[12].mxu1 %vm204_vm0, %v905_v29  ;;  %6366 = vmatprep.subr.msk.bf16.mxu0 %vm7285_vm2, %v6364_v30 }
 0x580   :  { %5847 = vmatprep.mubr.msk.f32.mxu1 %vm204_vm0, %v906_v34  ;;  %6369 = vmatpush3.bf16.xpose.msk.msra.mxu0 %vm7285_vm2, %v6364_v30 }
 0x581   :  { %v6370_v37 = vpack.c.bf16 %v6702_v35, %v6701_v36  ;;  %5851 = vmatpush3.msra.mxu1 %v196_v60 }
 0x582   :  { %v1589_v39 = vpop.permute.xlu1 %1588  ;;  %5858 = vmatprep.subr.mxu1 %v195_v61 }
 0x583   :  { %5848 = vmatmul.mubr.msk.f32.gmra.mrb[14].mxu1 %vm204_vm0, %v907_v38  ;;  %6372 = vmatprep.subr.msk.bf16.mxu0 %vm7285_vm2, %v6370_v37 }
 0x586   :  { %v1593_v41 = vpop.permute.xlu1 %1592 }
 0x588   :  { %6375 = vmatpush3.bf16.xpose.msk.msra.mxu0 %vm7285_vm2, %v6370_v37 }
 0x58f   :  { %5911 = vmatmul.mubr.msk.f32.vlgmr.msra.gmra.mrb[16].mxu0 %vm496_vm1, %v1589_v39 }
 0x590   :  { %5913 = vmatprep.mubr.msk.f32.mxu0 %vm496_vm1, %v1591_v40 }
 0x593   :  { %5914 = vmatmul.mubr.msk.f32.gmra.mrb[18].mxu0 %vm496_vm1, %v1593_v41  ;;  %v197_v41 = vld [vmem:[%s7092_s19 + $0x10] sm:$0xff] }
 0x5ab   :  { %v1334_v42 = vpop.xlane.xlu0 %1333 }
 0x5ac   :  { %v1344_v44 = vsub.f32 %v7442_v59, %v1334_v42 }
 0x5ae   :  { %v1348_v46 = vmul.f32 1.442695, %v1344_v44 }
 0x5af   :  { %v1340_v47 = vpop.xlane.xlu0 %1339 }
 0x5b0   :  { %6815 = vpow2.f32 %v1348_v46  ;;  %v1346_v49 = vsub.f32 %v7445_v28, %v1340_v47 }
 0x5b2   :  { %v1352_v50 = vmul.f32 1.442695, %v1346_v49 }
 0x5b3   :  { %v1343_v51 = vpop.xlane.xlu0 %1342 }
 0x5b4   :  { %6817 = vpow2.f32 %v1352_v50  ;;  %v1347_v53 = vsub.f32 %v7450_v32, %v1343_v51 }
 0x5b6   :  { %v1354_v57 = vmul.f32 1.442695, %v1347_v53 }
 0x5b7   :  { %v1337_v54 = vpop.xlane.xlu1 %1336 }
 0x5b8   :  { %v1345_v55 = vsub.f32 %v7455_v20, %v1337_v54 }
 0x5ba   :  { %v6816_v56 = vpop.eup %6815  ;;  %v1350_v58 = vmul.f32 1.442695, %v1345_v55 }
 0x5bb   :  { %v1356_v21 = vsel %vm204_vm0, %v6816_v56, 0.0 }
 0x5bc   :  { %6819 = vpow2.f32 %v1350_v58  ;;  %1357 = vadd.xlane.f32.xlu0 %v1356_v21 }
 0x5bd   :  { %6821 = vpow2.f32 %v1354_v57 }
 0x5be   :  { %v6818_v59 = vpop.eup %6817 }
 0x5bf   :  { %v1362_v28 = vsel %vm204_vm0, %v6818_v59, 0.0 }
 0x5c0   :  { %1363 = vadd.xlane.f32.xlu0 %v1362_v28 }
 0x5c6   :  { %v6820_v23 = vpop.eup %6819 }
 0x5c7   :  { %v1359_v32 = vsel %vm204_vm0, %v6820_v23, 0.0  ;;  %v7486_v22 = vpop.eup %6821 }
 0x5c8   :  { %1360 = vadd.xlane.f32.xlu1 %v1359_v32  ;;  %v1365_v20 = vsel %vm204_vm0, %v7486_v22, 0.0 }
 0x5cc   :  { %1366 = vadd.xlane.f32.xlu1 %v1365_v20 }
 0x5d6   :  { %6704 = vrot.lane.b32.xlu0 %v7343_v24, %s7029_s9 }
 0x5dd   :  { %6709 = vrot.lane.b32.xlu1 %v7345_v27, %s7029_s9 }
 0x649   :  { %v1358_v62 = vpop.xlane.xlu0 %1357 }
 0x64a   :  { %6823 = vrcp.f32 %v1358_v62 }
 0x64d   :  { %v1364_v63 = vpop.xlane.xlu0 %1363 }
 0x651   :  { %v6705_v0 = vpop.permute.xlu0 %6704 }
 0x652   :  { %v6707_v1 = vunpack.i.h.bf16 %v6705_v0  ;;  %v6706_v2 = vunpack.i.l.bf16 %v6705_v0  ;;  %v5846_v3 = vpop.f32.mrb[12].mxu1 }
 0x653   :  { %v1002_v4 = vpop.f32.mrb[13].mxu1 }
 0x654   :  { %5852 = vmatprep.mubr.msk.f32.mxu1 %vm496_vm1, %v1002_v4  ;;  %v6356_v5 = vpack.c.bf16 %v6707_v1, %v6706_v2  ;;  %v6824_v14 = vpop.eup %6823 }
 0x655   :  { %v1361_v10 = vpop.xlane.xlu1 %1360  ;;  %5853 = vmatmul.mubr.msk.f32.vlgmr.msra.gmra.mrb[16].mxu1 %vm496_vm1, %v5846_v3  ;;  %v1372_v19 = vmul.f32 %v6824_v14, %v6816_v56 }
 0x656   :  { %5859 = vmatpush3.msra.mxu1 %v195_v61  ;;  %v5849_v11 = vpop.f32.mrb[14].mxu1  ;;  %6825 = vrcp.f32 %v1361_v10 }
 0x657   :  { %6357 = vmatprep.subr.bf16.mxu1 %v6356_v5  ;;  %v1012_v12 = vpop.f32.mrb[15].mxu1  ;;  %6827 = vrcp.f32 %v1364_v63 }
 0x658   :  { %5855 = vmatprep.mubr.msk.f32.mxu1 %vm496_vm1, %v1012_v12 }
 0x659   :  { %v1367_v13 = vpop.xlane.xlu1 %1366  ;;  %5856 = vmatmul.mubr.msk.f32.gmra.mrb[18].mxu1 %vm496_vm1, %v5849_v11 }
 0x65a   :  { %5860 = vmatprep.mubr.msk.f32.mxu1 %vm496_vm1, %v7401_v7  ;;  %6829 = vrcp.f32 %v1367_v13 }
 0x65d   :  { %v6710_v15 = vpop.permute.xlu1 %6709  ;;  %5861 = vmatmul.mubr.msk.f32.vlgmr.msra.gmra.mrb[16].mxu1 %vm496_vm1, %v7399_v6 }
 0x65e   :  { %v6712_v16 = vunpack.i.h.bf16 %v6710_v15  ;;  %v6711_v17 = vunpack.i.l.bf16 %v6710_v15  ;;  %6359 = vmatpush3.bf16.msra.mxu1 %v6356_v5  ;;  %5863 = vmatprep.mubr.msk.f32.mxu1 %vm496_vm1, %v7405_v9  ;;  %v198_v15 = vld [vmem:[%s7092_s19 + $0x18] sm:$0xff]  ;;  %s8153_s19 = sld [smem:[#allocation17_spill]] }
 0x660   :  { %v6360_v18 = vpack.c.bf16 %v6712_v16, %v6711_v17  ;;  %v6826_v25 = vpop.eup %6825 }
 0x661   :  { %5864 = vmatmul.mubr.msk.f32.gmra.mrb[18].mxu1 %vm496_vm1, %v7403_v8  ;;  %v6828_v29 = vpop.eup %6827  ;;  %v1373_v31 = vmul.f32 %v6826_v25, %v6820_v23 }
 0x662   :  { %6361 = vmatprep.subr.bf16.mxu1 %v6360_v18  ;;  %5888 = vmatprep.mubr.msk.f32.mxu1 %vm204_vm0, %v1372_v19  ;;  %v5912_v7 = vpop.f32.mrb[16].mxu0  ;;  %v1374_v35 = vmul.f32 %v6828_v29, %v6818_v59 }
 0x663   :  { %v1690_v30 = vadd.f32 %v5912_v7, %v7323_v45  ;;  %6363 = vmatpush3.bf16.msra.mxu1 %v6360_v18  ;;  %v1684_v6 = vpop.f32.mrb[17].mxu0 }
 0x664   :  { %v1685_v33 = vadd.f32 %v1684_v6, %v7320_v43  ;;  %v6830_v34 = vpop.eup %6829  ;;  %5894 = vmatprep.subr.mxu1 %v197_v41 }
 0x665   :  { %v1706_v9 = vsel %vm204_vm0, %v1690_v30, -inf  ;;  %v1375_v43 = vmul.f32 %v6830_v34, %v7486_v22 }
 0x666   :  { %v5915_v36 = vpop.f32.mrb[18].mxu0  ;;  %1707 = vmax.xlane.f32.xlu0 %v1706_v9  ;;  %5889 = vmatmul.mubr.msk.f32.vlgmr.msra.gmra.mrb[20].mxu1 %vm204_vm0, %v1373_v31  ;;  %v1703_v8 = vsel %vm204_vm0, %v1685_v33, -inf  ;;  %v7544_v31 = vld [vmem:[%s7042_s5] sm:$0xff] }
 0x667   :  { %v1700_v37 = vadd.f32 %v5915_v36, %v7332_v52  ;;  %v1694_v38 = vpop.f32.mrb[19].mxu0  ;;  %1704 = vmax.xlane.f32.xlu1 %v1703_v8  ;;  %5891 = vmatprep.mubr.msk.f32.mxu1 %vm204_vm0, %v1374_v35  ;;  %v7550_v8 = vld [vmem:[%s7042_s5 + $0x8] sm:$0xff] }
 0x668   :  { %v1695_v45 = vadd.f32 %v1694_v38, %v7327_v48  ;;  %5895 = vmatpush3.msra.mxu1 %v197_v41 }
 0x669   :  { %v1712_v39 = vsel %vm204_vm0, %v1700_v37, -inf }
 0x66a   :  { %5892 = vmatmul.mubr.msk.f32.gmra.mrb[22].mxu1 %vm204_vm0, %v1375_v43  ;;  %v1709_v40 = vsel %vm204_vm0, %v1695_v45, -inf }
 0x66b   :  { %1710 = vmax.xlane.f32.xlu0 %v1709_v40  ;;  %1713 = vmax.xlane.f32.xlu1 %v1712_v39 }
 0x6f3   :  { %v1708_v52 = vpop.xlane.xlu0 %1707 }
 0x6f4   :  { %v1716_v42 = vsub.f32 %v1690_v30, %v1708_v52  ;;  %v1705_v44 = vpop.xlane.xlu1 %1704 }
 0x6f5   :  { %v1715_v46 = vsub.f32 %v1685_v33, %v1705_v44  ;;  %v5310_v33 = vld [vmem:[%s7097_s24] ss:$0 sm:$0xff]  ;;  %s8154_s24 = sld [smem:[#allocation10_spill]] }
 0x6f6   :  { %v1721_v47 = vmul.f32 1.442695, %v1716_v42  ;;  %v7557_v42 = vld [vmem:[%s7042_s5 + $0x18] sm:$0xff] }
 0x6f7   :  { %v1719_v49 = vmul.f32 1.442695, %v1715_v46  ;;  %v7561_v46 = vld [vmem:[%s7042_s5 + $0x10] sm:$0xff]  ;;  %s8147_s5 = sld [smem:[#allocation7_spill]] }
 0x6f8   :  { %6831 = vpow2.f32 %v1721_v47  ;;  %v1714_v48 = vpop.xlane.xlu1 %1713  ;;  %v1711_v50 = vpop.xlane.xlu0 %1710 }
 0x6f9   :  { %6833 = vpow2.f32 %v1719_v49  ;;  %v1718_v51 = vsub.f32 %v1700_v37, %v1714_v48  ;;  %v1717_v53 = vsub.f32 %v1695_v45, %v1711_v50  ;;  %v2353_v50 = vld [vmem:[%s7142_s20] sm:$0xff] }
 0x6fb   :  { %v1725_v54 = vmul.f32 1.442695, %v1718_v51  ;;  %v1723_v55 = vmul.f32 1.442695, %v1717_v53  ;;  %v2354_v51 = vld [vmem:[%s7142_s20 + $0x8] sm:$0xff]  ;;  %v2355_v53 = vld [vmem:[%s7142_s20 + $0x10] sm:$0xff] }
 0x6fd   :  { %6835 = vpow2.f32 %v1725_v54  ;;  %v6408_v54 = vpack.c.bf16 %v2354_v51, %v2353_v50 }
 0x6fe   :  { %6837 = vpow2.f32 %v1723_v55  ;;  %v2356_v55 = vld [vmem:[%s7142_s20 + $0x18] sm:$0xff]  ;;  %s8157_s20 = sld [smem:[#allocation21_spill]] }
 0x702   :  { %v6832_v56 = vpop.eup %6831 }
 0x703   :  { %v6834_v57 = vpop.eup %6833  ;;  %v1730_v58 = vsel %vm204_vm0, %v6832_v56, 0.0 }
 0x704   :  { %1731 = vadd.xlane.f32.xlu1 %v1730_v58  ;;  %v1727_v21 = vsel %vm204_vm0, %v6834_v57, 0.0 }
 0x705   :  { %1728 = vadd.xlane.f32.xlu0 %v1727_v21 }
 0x707   :  { %v6836_v59 = vpop.eup %6835 }
 0x708   :  { %v6838_v28 = vpop.eup %6837  ;;  %v1736_v23 = vsel %vm204_vm0, %v6836_v59, 0.0 }
 0x709   :  { %1737 = vadd.xlane.f32.xlu1 %v1736_v23  ;;  %v1733_v32 = vsel %vm204_vm0, %v6838_v28, 0.0 }
 0x70a   :  { %1734 = vadd.xlane.f32.xlu0 %v1733_v32 }
 0x71a   :  { %6719 = vrot.lane.b32.xlu1 %v7345_v27, %s7030_s13 }
 0x720   :  { %6714 = vrot.lane.b32.xlu0 %v7343_v24, %s7030_s13 }
 0x739   :  { %v5890_v22 = vpop.f32.mrb[20].mxu1 }
 0x73a   :  { %v1466_v20 = vpop.f32.mrb[21].mxu1 }
 0x73b   :  { %5896 = vmatprep.mubr.msk.f32.mxu1 %vm496_vm1, %v1466_v20 }
 0x73c   :  { %5897 = vmatmul.mubr.msk.f32.vlgmr.msra.gmra.mrb[16].mxu1 %vm496_vm1, %v5890_v22 }
 0x73d   :  { %v5893_v60 = vpop.f32.mrb[22].mxu1 }
 0x73e   :  { %v1476_v61 = vpop.f32.mrb[23].mxu1 }
 0x73f   :  { %5899 = vmatprep.mubr.msk.f32.mxu1 %vm496_vm1, %v1476_v61 }
 0x740   :  { %5900 = vmatmul.mubr.msk.f32.gmra.mrb[18].mxu1 %vm496_vm1, %v5893_v60 }
 0x791   :  { %v1732_v62 = vpop.xlane.xlu1 %1731 }
 0x792   :  { %v1729_v63 = vpop.xlane.xlu0 %1728 }
 0x793   :  { %6839 = vrcp.f32 %v1729_v63 }
 0x794   :  { %6841 = vrcp.f32 %v1732_v62 }
 0x796   :  { %v1738_v0 = vpop.xlane.xlu1 %1737 }
 0x797   :  { %v1735_v27 = vpop.xlane.xlu0 %1734 }
 0x798   :  { %6843 = vrcp.f32 %v1735_v27 }
 0x799   :  { %6845 = vrcp.f32 %v1738_v0 }
 0x79a   :  { %v6720_v24 = vpop.permute.xlu1 %6719 }
 0x79b   :  { %v6715_v1 = vpop.permute.xlu0 %6714  ;;  %v6722_v2 = vunpack.i.h.bf16 %v6720_v24  ;;  %v6721_v3 = vunpack.i.l.bf16 %v6720_v24 }
 0x79c   :  { %v6717_v4 = vunpack.i.h.bf16 %v6715_v1  ;;  %v6716_v5 = vunpack.i.l.bf16 %v6715_v1 }
 0x79d   :  { %v6840_v10 = vpop.eup %6839  ;;  %v6380_v13 = vpack.c.bf16 %v6722_v2, %v6721_v3 }
 0x79e   :  { %v6376_v11 = vpack.c.bf16 %v6717_v4, %v6716_v5  ;;  %v1743_v12 = vmul.f32 %v6840_v10, %v6834_v57  ;;  %v6842_v14 = vpop.eup %6841  ;;  %v2046_v5 = vld [vmem:[%s7112_s12] sm:$0xff]  ;;  %v2047_v10 = vld [vmem:[%s7112_s12 + $0x8] sm:$0xff] }
 0x79f   :  { %v1744_v17 = vmul.f32 %v6842_v14, %v6832_v56  ;;  %v6412_v56 = vpack.c.bf16 %v2356_v55, %v2355_v53 }
 0x7a0   :  { %6377 = vmatprep.subr.bf16.mxu1 %v6376_v11  ;;  %5924 = vmatprep.mubr.msk.f32.mxu1 %vm204_vm0, %v1743_v12  ;;  %v2048_v12 = vld [vmem:[%s7112_s12 + $0x10] sm:$0xff] }
 0x7a1   :  { %6379 = vmatpush3.bf16.msra.mxu1 %v6376_v11  ;;  %v6384_v11 = vpack.c.bf16 %v2047_v10, %v2046_v5 }
 0x7a2   :  { %6381 = vmatprep.subr.bf16.mxu1 %v6380_v13  ;;  %v6844_v16 = vpop.eup %6843 }
 0x7a3   :  { %v6846_v18 = vpop.eup %6845  ;;  %v1745_v19 = vmul.f32 %v6844_v16, %v6838_v28  ;;  %6385 = vmatprep.subr.bf16.mxu0 %v6384_v11  ;;  %v2158_v16 = vld [vmem:[%s7122_s27] sm:$0xff] }
 0x7a4   :  { %v1746_v25 = vmul.f32 %v6846_v18, %v6836_v59  ;;  %6387 = vmatpush3.bf16.msra.mxu0 %v6384_v11 }
 0x7a5   :  { %6383 = vmatpush3.bf16.msra.mxu1 %v6380_v13  ;;  %v2049_v13 = vld [vmem:[%s7112_s12 + $0x18] sm:$0xff]  ;;  %s8156_s12 = sld [smem:[#allocation14_spill]] }
 0x7a6   :  { %5930 = vmatprep.subr.mxu1 %v198_v15  ;;  %v6388_v14 = vpack.c.bf16 %v2049_v13, %v2048_v12 }
 0x7a8   :  { %5925 = vmatmul.mubr.msk.f32.vlgmr.msra.gmra.mrb[24].mxu1 %vm204_vm0, %v1744_v17  ;;  %6389 = vmatprep.subr.bf16.mxu0 %v6388_v14  ;;  %v2159_v17 = vld [vmem:[%s7122_s27 + $0x8] sm:$0xff] }
 0x7a9   :  { %5927 = vmatprep.mubr.msk.f32.mxu1 %vm204_vm0, %v1745_v19  ;;  %5931 = vmatpush3.msra.mxu1 %v198_v15  ;;  %v2349_v15 = vld [vmem:[%s7057_s17] sm:$0xff]  ;;  %v6392_v18 = vpack.c.bf16 %v2159_v17, %v2158_v16 }
 0x7aa   :  { %6409 = vmatprep.subr.bf16.mxu1 %v6408_v54  ;;  %6391 = vmatpush3.bf16.msra.mxu0 %v6388_v14 }
 0x7ab   :  { %6393 = vmatprep.subr.bf16.mxu0 %v6392_v18 }
 0x7ac   :  { %5928 = vmatmul.mubr.msk.f32.gmra.mrb[26].mxu1 %vm204_vm0, %v1746_v25 }
 0x87b   :  { %v5926_v29 = vpop.f32.mrb[24].mxu1 }
 0x87c   :  { %v1837_v7 = vpop.f32.mrb[25].mxu1 }
 0x87d   :  { %5932 = vmatprep.mubr.msk.f32.mxu1 %vm496_vm1, %v1837_v7 }
 0x87e   :  { %5933 = vmatmul.mubr.msk.f32.vlgmr.msra.gmra.mrb[16].mxu1 %vm496_vm1, %v5926_v29 }
 0x87f   :  { %v5929_v30 = vpop.f32.mrb[26].mxu1  ;;  %6411 = vmatpush3.bf16.msra.mxu1 %v6408_v54  ;;  %v5312_v54 = vld [vmem:[%s8147_s5] ss:$0 sm:$0xff] }
 0x880   :  { %v1847_v6 = vpop.f32.mrb[27].mxu1  ;;  %6413 = vmatprep.subr.bf16.mxu1 %v6412_v56 }
 0x881   :  { %5935 = vmatprep.mubr.msk.f32.mxu1 %vm496_vm1, %v1847_v6 }
 0x882   :  { %5936 = vmatmul.mubr.msk.f32.gmra.mrb[18].mxu1 %vm496_vm1, %v5929_v30 }
 0x883   :  { %5982 = vmatprep.mubr.msk.f32.mxu1 %vm204_vm0, %v7544_v31  ;;  %6415 = vmatpush3.bf16.msra.mxu1 %v6412_v56 }
 0x886   :  { %5983 = vmatmul.mubr.msk.f32.vlgmr.msra.gmra.mrb[28].mxu1 %vm204_vm0, %v7550_v8 }
 0x887   :  { %5985 = vmatprep.mubr.msk.f32.mxu1 %vm204_vm0, %v7561_v46 }
 0x88a   :  { %5986 = vmatmul.mubr.msk.f32.gmra.mrb[30].mxu1 %vm204_vm0, %v7557_v42 }
 0x88b   :  { %5996 = vmatprep.mubr.msk.f32.mxu1 %vm204_vm0, %v2349_v15 }
 0x951   :  { %v5934_v34 = vpop.f32.mrb[16].mxu1 }
 0x952   :  { %v1964_v9 = vadd.f32 %v5934_v34, %v5310_v33  ;;  %v1934_v35 = vpop.f32.mrb[17].mxu1  ;;  %v7608_v34 = vld [vmem:[%s7057_s17 + $0x10] sm:$0xff] }
 0x953   :  { %v1963_v36 = vadd.f32 %v5310_v33, %v1934_v35 }
 0x954   :  { %v1968_v37 = vadd.f32 %v7550_v8, %v1964_v9  ;;  %v7615_v9 = vld [vmem:[%s7057_s17 + $0x18] sm:$0xff] }
 0x955   :  { %v5937_v38 = vpop.f32.mrb[18].mxu1  ;;  %v1967_v45 = vadd.f32 %v7544_v31, %v1963_v36 }
 0x956   :  { %v1966_v43 = vadd.f32 %v5937_v38, %v5310_v33  ;;  %v1944_v39 = vpop.f32.mrb[19].mxu1  ;;  %v1976_v40 = vsel %vm204_vm0, %v1968_v37, 0.0 }
 0x957   :  { %v1965_v41 = vadd.f32 %v5310_v33, %v1944_v39  ;;  %1977 = vadd.xlane.f32.xlu0 %v1976_v40  ;;  %v1973_v52 = vsel %vm204_vm0, %v1967_v45, 0.0  ;;  %v7605_v33 = vld [vmem:[%s7057_s17 + $0x8] sm:$0xff]  ;;  %s8148_s17 = sld [smem:[#allocation13_spill]] }
 0x958   :  { %1974 = vadd.xlane.f32.xlu1 %v1973_v52  ;;  %v1970_v44 = vadd.f32 %v7557_v42, %v1966_v43 }
 0x959   :  { %v1969_v47 = vadd.f32 %v7561_v46, %v1965_v41  ;;  %v5984_v19 = vpop.f32.mrb[28].mxu1 }
 0x95a   :  { %v1982_v49 = vsel %vm204_vm0, %v1970_v44, 0.0  ;;  %v2423_v25 = vpop.f32.mrb[29].mxu1 }
 0x95b   :  { %v1979_v48 = vsel %vm204_vm0, %v1969_v47, 0.0  ;;  %v6416_v29 = vpack.c.bf16 %v5984_v19, %v2423_v25  ;;  %v5329_v25 = vld [vmem:[%s8150_s3] ss:$0 sm:$0xff] }
 0x95c   :  { %1983 = vadd.xlane.f32.xlu1 %v1982_v49  ;;  %1980 = vadd.xlane.f32.xlu0 %v1979_v48  ;;  %v5311_v48 = vld [vmem:[%s7102_s30] ss:$0 sm:$0xff]  ;;  %s8155_s30 = sld [smem:[#allocation11_spill]] }
 0x95d   :  { %v5987_v7 = vpop.f32.mrb[30].mxu1  ;;  %6417 = vmatprep.subr.bf16.mxu1 %v6416_v29  ;;  %v2551_v5 = vld [vmem:[%s8148_s17 + $0x8] sm:$0xff] }
 0x95e   :  { %v2433_v30 = vpop.f32.mrb[31].mxu1  ;;  %6419 = vmatpush3.bf16.msra.mxu1 %v6416_v29  ;;  %v2552_v29 = vld [vmem:[%s8148_s17 + $0x10] sm:$0xff] }
 0x95f   :  { %v6420_v6 = vpack.c.bf16 %v5987_v7, %v2433_v30  ;;  %v2553_v7 = vld [vmem:[%s8148_s17 + $0x18] sm:$0xff] }
 0x961   :  { %6421 = vmatprep.subr.bf16.mxu1 %v6420_v6 }
 0x962   :  { %6423 = vmatpush3.bf16.msra.mxu1 %v6420_v6 }
 0x965   :  { %5997 = vmatmul.mubr.msk.f32.vlgmr.msra.gmra.mrb[32].mxu1 %vm204_vm0, %v7605_v33 }
 0x966   :  { %5999 = vmatprep.mubr.msk.f32.mxu1 %vm204_vm0, %v7608_v34 }
 0x969   :  { %6000 = vmatmul.mubr.msk.f32.gmra.mrb[34].mxu1 %vm204_vm0, %v7615_v9 }
 0x96a   :  { %6024 = vmatprep.mubr.msk.f32.mxu1 %vm204_vm0, %v2349_v15  ;;  %v5313_v15 = vld [vmem:[%s8149_s25] ss:$0 sm:$0xff] }
 0x9e4   :  { %v1978_v57 = vpop.xlane.xlu0 %1977 }
 0x9e5   :  { %v1987_v58 = vmul.f32 0.03125, %v1978_v57  ;;  %v1975_v21 = vpop.xlane.xlu1 %1974  ;;  %v2160_v57 = vld [vmem:[%s7122_s27 + $0x10] sm:$0xff] }
 0x9e6   :  { %v1986_v59 = vmul.f32 0.03125, %v1975_v21 }
 0x9e7   :  { %v7576_v28 = vsub.f32 %v1968_v37, %v1987_v58  ;;  %v2161_v58 = vld [vmem:[%s7122_s27 + $0x18] sm:$0xff] }
 0x9e8   :  { %v7578_v23 = vsub.f32 %v1967_v45, %v1986_v59 }
 0x9e9   :  { %v1984_v32 = vpop.xlane.xlu1 %1983  ;;  %v1981_v22 = vpop.xlane.xlu0 %1980  ;;  %v1995_v20 = vmul.f32 %v7576_v28, %v7576_v28 }
 0x9ea   :  { %v1989_v60 = vmul.f32 0.03125, %v1984_v32  ;;  %v1988_v61 = vmul.f32 0.03125, %v1981_v22  ;;  %v1994_v62 = vmul.f32 %v7578_v23, %v7578_v23 }
 0x9eb   :  { %v2001_v63 = vsel %vm204_vm0, %v1995_v20, 0.0 }
 0x9ec   :  { %v7585_v0 = vsub.f32 %v1970_v44, %v1989_v60  ;;  %v7587_v27 = vsub.f32 %v1969_v47, %v1988_v61  ;;  %2002 = vadd.xlane.f32.xlu1 %v2001_v63  ;;  %v1998_v24 = vsel %vm204_vm0, %v1994_v62, 0.0  ;;  %v2162_v62 = vld [vmem:[%s7122_s27 + $0x20] sm:$0xff]  ;;  %v2163_v63 = vld [vmem:[%s7122_s27 + $0x28] sm:$0xff] }
 0x9ed   :  { %1999 = vadd.xlane.f32.xlu0 %v1998_v24 }
 0x9ee   :  { %v1997_v1 = vmul.f32 %v7585_v0, %v7585_v0  ;;  %v1996_v2 = vmul.f32 %v7587_v27, %v7587_v27 }
 0x9f0   :  { %v2007_v3 = vsel %vm204_vm0, %v1997_v1, 0.0  ;;  %v2004_v4 = vsel %vm204_vm0, %v1996_v2, 0.0  ;;  %v2164_v1 = vld [vmem:[%s7122_s27 + $0x30] sm:$0xff]  ;;  %v2165_v2 = vld [vmem:[%s7122_s27 + $0x38] sm:$0xff]  ;;  %s8158_s27 = sld [smem:[#allocation19_spill]] }
 0x9f1   :  { %2008 = vadd.xlane.f32.xlu1 %v2007_v3  ;;  %2005 = vadd.xlane.f32.xlu0 %v2004_v4  ;;  %v6404_v3 = vpack.c.bf16 %v2165_v2, %v2164_v1  ;;  %v2550_v4 = vld [vmem:[%s8148_s17] sm:$0xff] }
 0x9f2   :  { %v6424_v10 = vpack.c.bf16 %v2551_v5, %v2550_v4 }
 0xa38   :  { %v5998_v11 = vpop.f32.mrb[32].mxu1 }
 0xa39   :  { %v2527_v12 = vpop.f32.mrb[33].mxu1 }
 0xa3c   :  { %v6001_v13 = vpop.f32.mrb[34].mxu1 }
 0xa3d   :  { %v2537_v14 = vpop.f32.mrb[35].mxu1 }
 0xa79   :  { %v2003_v35 = vpop.xlane.xlu1 %2002 }
 0xa7a   :  { %v2011_v36 = vmul.f32 0.03125, %v2003_v35  ;;  %v2000_v37 = vpop.xlane.xlu0 %1999 }
 0xa7b   :  { %v2010_v38 = vmul.f32 0.03125, %v2000_v37  ;;  %v6428_v37 = vpack.c.bf16 %v2553_v7, %v2552_v29 }
 0xa7c   :  { %v2015_v45 = vadd.f32 1e-05, %v2011_v36  ;;  %v2528_v36 = vadd.f32 %v5329_v25, %v2527_v12 }
 0xa7d   :  { %v2014_v43 = vadd.f32 1e-05, %v2010_v38 }
 0xa7e   :  { %6847 = vrsqrt.f32 %v2015_v45  ;;  %v2009_v39 = vpop.xlane.xlu1 %2008  ;;  %v2006_v40 = vpop.xlane.xlu0 %2005 }
 0xa7f   :  { %6849 = vrsqrt.f32 %v2014_v43  ;;  %v2013_v41 = vmul.f32 0.03125, %v2009_v39  ;;  %v2012_v52 = vmul.f32 0.03125, %v2006_v40  ;;  %v2533_v39 = vadd.f32 %v5998_v11, %v5329_v25 }
 0xa81   :  { %v2017_v44 = vadd.f32 1e-05, %v2013_v41  ;;  %v2016_v47 = vadd.f32 1e-05, %v2012_v52  ;;  %v2546_v41 = vmax.f32 %v2528_v36, 0.0  ;;  %v2538_v52 = vadd.f32 %v5329_v25, %v2537_v14 }
 0xa83   :  { %6851 = vrsqrt.f32 %v2017_v44 }
 0xa84   :  { %6853 = vrsqrt.f32 %v2016_v47  ;;  %v2547_v47 = vmax.f32 %v2533_v39, 0.0  ;;  %v2852_v39 = vld [vmem:[%s8153_s19 + $0x8] sm:$0xff] }
 0xa88   :  { %v6848_v49 = vpop.eup %6847 }
 0xa89   :  { %v6850_v50 = vpop.eup %6849  ;;  %v2023_v51 = vmul.f32 %v6848_v49, %v7576_v28  ;;  %v6396_v28 = vpack.c.bf16 %v2161_v58, %v2160_v57  ;;  %v2543_v49 = vadd.f32 %v6001_v13, %v5329_v25 }
 0xa8a   :  { %v2022_v53 = vmul.f32 %v6850_v50, %v7578_v23 }
 0xa8b   :  { %v2033_v55 = vmul.f32 %v5311_v48, %v2023_v51  ;;  %v2549_v50 = vmax.f32 %v2543_v49, 0.0  ;;  %v5318_v51 = vld [vmem:[%s8151_s8] ss:$0 sm:$0xff] }
 0xa8c   :  { %v2032_v56 = vmul.f32 %v5311_v48, %v2022_v53 }
 0xa8d   :  { %v6852_v21 = vpop.eup %6851  ;;  %v7629_v20 = vadd.f32 %v5312_v54, %v2033_v55 }
 0xa8e   :  { %v6854_v59 = vpop.eup %6853  ;;  %v7626_v32 = vadd.f32 %v5312_v54, %v2032_v56  ;;  %v2025_v22 = vmul.f32 %v6852_v21, %v7585_v0 }
 0xa8f   :  { %v2024_v60 = vmul.f32 %v6854_v59, %v7587_v27  ;;  %v6400_v27 = vpack.c.bf16 %v2163_v63, %v2162_v62 }
 0xa90   :  { %5946 = vmatprep.mubr.msk.f32.mxu0 %vm204_vm0, %v7626_v32  ;;  %v2035_v23 = vmul.f32 %v5311_v48, %v2025_v22 }
 0xa91   :  { %5947 = vmatmul.mubr.msk.f32.vlgmr.msra.gmra.mrb[20].mxu0 %vm204_vm0, %v7629_v20  ;;  %v2034_v61 = vmul.f32 %v5311_v48, %v2024_v60  ;;  %v2548_v48 = vmax.f32 %v2538_v52, 0.0 }
 0xa92   :  { %v7638_v24 = vadd.f32 %v5312_v54, %v2035_v23  ;;  %6395 = vmatpush3.bf16.msra.mxu0 %v6392_v18 }
 0xa93   :  { %v7640_v0 = vadd.f32 %v5312_v54, %v2034_v61  ;;  %6397 = vmatprep.subr.bf16.mxu0 %v6396_v28 }
 0xa95   :  { %5949 = vmatprep.mubr.msk.f32.mxu0 %vm204_vm0, %v7640_v0 }
 0xa96   :  { %5950 = vmatmul.mubr.msk.f32.gmra.mrb[22].mxu0 %vm204_vm0, %v7638_v24 }
 0xa97   :  { %6399 = vmatpush3.bf16.msra.mxu0 %v6396_v28 }
 0xa98   :  { %6401 = vmatprep.subr.bf16.mxu0 %v6400_v27 }
 0xa9b   :  { %6403 = vmatpush3.bf16.msra.mxu0 %v6400_v27 }
 0xa9c   :  { %6405 = vmatprep.subr.bf16.mxu0 %v6404_v3 }
 0xa9f   :  { %6407 = vmatpush3.bf16.msra.mxu0 %v6404_v3 }
 0xaa0   :  { %6425 = vmatprep.subr.bf16.mxu0 %v6424_v10 }
 0xb64   :  { %v5948_v16 = vpop.f32.mrb[20].mxu0 }
 0xb65   :  { %v2141_v17 = vadd.f32 %v5948_v16, %v5313_v15  ;;  %v2135_v18 = vpop.f32.mrb[21].mxu0 }
 0xb66   :  { %v2136_v19 = vadd.f32 %v5313_v15, %v2135_v18 }
 0xb67   :  { %v2155_v6 = vmax.f32 %v2141_v17, 0.0 }
 0xb68   :  { %v2154_v30 = vmax.f32 %v2136_v19, 0.0 }
 0xb69   :  { %v5951_v35 = vpop.f32.mrb[22].mxu0 }
 0xb6a   :  { %v2151_v38 = vadd.f32 %v5951_v35, %v5313_v15  ;;  %v2145_v45 = vpop.f32.mrb[23].mxu0  ;;  %5968 = vmatprep.mubr.msk.f32.mxu0 %vm2173_vm3, %v2154_v30  ;;  %v2744_v35 = vld [vmem:[%s8152_s14 + $0x8] sm:$0xff] }
 0xb6b   :  { %v2146_v43 = vadd.f32 %v5313_v15, %v2145_v45  ;;  %5969 = vmatmul.mubr.msk.f32.vlgmr.msra.gmra.mrb[24].mxu0 %vm2173_vm3, %v2155_v6  ;;  %v2743_v6 = vld [vmem:[%s8152_s14] sm:$0xff] }
 0xb6c   :  { %6427 = vmatpush3.bf16.msra.mxu0 %v6424_v10  ;;  %v2157_v44 = vmax.f32 %v2151_v38, 0.0  ;;  %v6440_v36 = vpack.c.bf16 %v2744_v35, %v2743_v6  ;;  %v2746_v38 = vld [vmem:[%s8152_s14 + $0x18] sm:$0xff]  ;;  %v3021_v6 = vld [vmem:[%s8158_s27 + $0x10] sm:$0xff] }
 0xb6d   :  { %v2156_v40 = vmax.f32 %v2146_v43, 0.0  ;;  %6429 = vmatprep.subr.bf16.mxu0 %v6428_v37  ;;  %v2851_v43 = vld [vmem:[%s8153_s19] sm:$0xff] }
 0xb6f   :  { %5971 = vmatprep.mubr.msk.f32.mxu0 %vm2173_vm3, %v2156_v40  ;;  %v6448_v40 = vpack.c.bf16 %v2852_v39, %v2851_v43  ;;  %v5343_v39 = vld [vmem:[%s8160_s10] ss:$0 sm:$0xff] }
 0xb70   :  { %5972 = vmatmul.mubr.msk.f32.gmra.mrb[26].mxu0 %vm2173_vm3, %v2157_v44 }
 0xb71   :  { %6431 = vmatpush3.bf16.msra.mxu0 %v6428_v37  ;;  %6010 = vmatprep.mubr.msk.f32.mxu0 %vm204_vm0, %v2546_v41  ;;  %v2745_v37 = vld [vmem:[%s8152_s14 + $0x10] sm:$0xff] }
 0xb72   :  { %6441 = vmatprep.subr.bf16.mxu0 %v6440_v36  ;;  %v6444_v45 = vpack.c.bf16 %v2746_v38, %v2745_v37  ;;  %v3023_v38 = vld [vmem:[%s8159_s7] sm:$0xff] }
 0xb74   :  { %6011 = vmatmul.mubr.msk.f32.vlgmr.msra.gmra.mrb[28].mxu0 %vm204_vm0, %v2547_v47 }
 0xb75   :  { %6013 = vmatprep.mubr.msk.f32.mxu0 %vm204_vm0, %v2548_v48  ;;  %6443 = vmatpush3.bf16.msra.mxu0 %v6440_v36  ;;  %v3022_v36 = vld [vmem:[%s8158_s27 + $0x18] sm:$0xff] }
 0xb76   :  { %6445 = vmatprep.subr.bf16.mxu0 %v6444_v45  ;;  %v6460_v37 = vpack.c.bf16 %v3022_v36, %v3021_v6  ;;  %v3025_v6 = vld [vmem:[%s8159_s7 + $0x10] sm:$0xff] }
 0xb78   :  { %6014 = vmatmul.mubr.msk.f32.gmra.mrb[30].mxu0 %vm204_vm0, %v2549_v50 }
 0xb79   :  { %6447 = vmatpush3.bf16.msra.mxu0 %v6444_v45  ;;  %v3024_v45 = vld [vmem:[%s8159_s7 + $0x8] sm:$0xff] }
 0xb7a   :  { %6449 = vmatprep.subr.bf16.mxu0 %v6448_v40  ;;  %v7734_v43 = vpack.c.bf16 %v3024_v45, %v3023_v38  ;;  %v3014_v38 = vld [vmem:[%s8162_s15 + $0x18] sm:$0xff] }
 0xc3e   :  { %v5970_v53 = vpop.f32.mrb[24].mxu0 }
 0xc3f   :  { %v2258_v54 = vadd.f32 %v5970_v53, %v5318_v51  ;;  %v2252_v55 = vpop.f32.mrb[25].mxu0 }
 0xc40   :  { %v2253_v56 = vadd.f32 %v5318_v51, %v2252_v55 }
 0xc41   :  { %v2272_v57 = vadd.f32 %v2258_v54, %v7629_v20 }
 0xc42   :  { %v2271_v58 = vadd.f32 %v2253_v56, %v7626_v32 }
 0xc43   :  { %v5973_v21 = vpop.f32.mrb[26].mxu0  ;;  %v2280_v59 = vsel %vm204_vm0, %v2272_v57, 0.0 }
 0xc44   :  { %v2268_v22 = vadd.f32 %v5973_v21, %v5318_v51  ;;  %v2262_v60 = vpop.f32.mrb[27].mxu0  ;;  %2281 = vadd.xlane.f32.xlu1 %v2280_v59  ;;  %v2277_v28 = vsel %vm204_vm0, %v2271_v58, 0.0 }
 0xc45   :  { %v2263_v23 = vadd.f32 %v5318_v51, %v2262_v60  ;;  %2278 = vadd.xlane.f32.xlu0 %v2277_v28  ;;  %v5323_v60 = vld [vmem:[%s8154_s24] ss:$0 sm:$0xff] }
 0xc46   :  { %v2274_v61 = vadd.f32 %v2268_v22, %v7638_v24 }
 0xc47   :  { %v2273_v62 = vadd.f32 %v2263_v23, %v7640_v0  ;;  %v6012_v63 = vpop.f32.mrb[28].mxu0 }
 0xc48   :  { %v2286_v27 = vsel %vm204_vm0, %v2274_v61, 0.0  ;;  %v2632_v20 = vpop.f32.mrb[29].mxu0 }
 0xc49   :  { %2287 = vadd.xlane.f32.xlu1 %v2286_v27  ;;  %v2283_v32 = vsel %vm204_vm0, %v2273_v62, 0.0  ;;  %v6432_v1 = vpack.c.bf16 %v6012_v63, %v2632_v20  ;;  %v2853_v20 = vld [vmem:[%s8153_s19 + $0x10] sm:$0xff] }
 0xc4a   :  { %2284 = vadd.xlane.f32.xlu0 %v2283_v32  ;;  %v2854_v32 = vld [vmem:[%s8153_s19 + $0x18] sm:$0xff] }
 0xc4b   :  { %v6015_v2 = vpop.f32.mrb[30].mxu0  ;;  %6433 = vmatprep.subr.bf16.mxu1 %v6432_v1 }
 0xc4c   :  { %v2642_v3 = vpop.f32.mrb[31].mxu0  ;;  %6435 = vmatpush3.bf16.msra.mxu1 %v6432_v1 }
 0xc4d   :  { %v6436_v4 = vpack.c.bf16 %v6015_v2, %v2642_v3 }
 0xc4f   :  { %6437 = vmatprep.subr.bf16.mxu1 %v6436_v4 }
 0xc50   :  { %6439 = vmatpush3.bf16.msra.mxu1 %v6436_v4 }
 0xc53   :  { %6025 = vmatmul.mubr.msk.f32.vlgmr.msra.gmra.mrb[36].mxu1 %vm204_vm0, %v7605_v33 }
 0xc54   :  { %6027 = vmatprep.mubr.msk.f32.mxu1 %vm204_vm0, %v7608_v34 }
 0xc57   :  { %6028 = vmatmul.mubr.msk.f32.gmra.mrb[38].mxu1 %vm204_vm0, %v7615_v9 }
 0xcd1   :  { %v2282_v24 = vpop.xlane.xlu1 %2281 }
 0xcd2   :  { %v2290_v0 = vmul.f32 0.03125, %v2282_v24  ;;  %v2279_v5 = vpop.xlane.xlu0 %2278 }
 0xcd3   :  { %v2289_v10 = vmul.f32 0.03125, %v2279_v5  ;;  %v6452_v5 = vpack.c.bf16 %v2854_v32, %v2853_v20 }
 0xcd4   :  { %v2294_v11 = vsub.f32 %v2272_v57, %v2290_v0 }
 0xcd5   :  { %v2293_v12 = vsub.f32 %v2271_v58, %v2289_v10  ;;  %v5338_v10 = vld [vmem:[%s8156_s12] ss:$0 sm:$0xff] }
 0xcd6   :  { %v2288_v13 = vpop.xlane.xlu1 %2287  ;;  %v2298_v14 = vmul.f32 %v2294_v11, %v2294_v11 }
 0xcd7   :  { %v2292_v15 = vmul.f32 0.03125, %v2288_v13  ;;  %v2285_v16 = vpop.xlane.xlu0 %2284  ;;  %v2297_v17 = vmul.f32 %v2293_v12, %v2293_v12 }
 0xcd8   :  { %v2291_v33 = vmul.f32 0.03125, %v2285_v16  ;;  %v2304_v34 = vsel %vm204_vm0, %v2298_v14, 0.0 }
 0xcd9   :  { %v2296_v18 = vsub.f32 %v2274_v61, %v2292_v15  ;;  %2305 = vadd.xlane.f32.xlu1 %v2304_v34  ;;  %v2301_v9 = vsel %vm204_vm0, %v2297_v17, 0.0  ;;  %v3027_v34 = vld [vmem:[%s8157_s20] sm:$0xff] }
 0xcda   :  { %v2295_v19 = vsub.f32 %v2273_v62, %v2291_v33  ;;  %2302 = vadd.xlane.f32.xlu0 %v2301_v9  ;;  %v5324_v62 = vld [vmem:[%s8155_s30] ss:$0 sm:$0xff] }
 0xcdb   :  { %v2300_v25 = vmul.f32 %v2296_v18, %v2296_v18 }
 0xcdc   :  { %v2299_v29 = vmul.f32 %v2295_v19, %v2295_v19 }
 0xcdd   :  { %v2310_v7 = vsel %vm204_vm0, %v2300_v25, 0.0  ;;  %v3020_v25 = vld [vmem:[%s8158_s27 + $0x8] sm:$0xff] }
 0xcde   :  { %2311 = vadd.xlane.f32.xlu1 %v2310_v7  ;;  %v2307_v30 = vsel %vm204_vm0, %v2299_v29, 0.0  ;;  %v3029_v7 = vld [vmem:[%s8157_s20 + $0x10] sm:$0xff] }
 0xcdf   :  { %2308 = vadd.xlane.f32.xlu0 %v2307_v30  ;;  %v3030_v30 = vld [vmem:[%s8157_s20 + $0x18] sm:$0xff] }
 0xce0   :  { %v6476_v35 = vpack.c.bf16 %v3030_v30, %v3029_v7 }
 0xd26   :  { %v6026_v41 = vpop.f32.mrb[36].mxu1 }
 0xd27   :  { %v2724_v52 = vpop.f32.mrb[37].mxu1  ;;  %v7714_v17 = vadd.f32 %v6026_v41, %v5338_v10  ;;  %v5352_v41 = vld [vmem:[%s8161_s11] ss:$0 sm:$0xff] }
 0xd28   :  { %v7700_v13 = vadd.f32 %v5338_v10, %v2724_v52 }
 0xd2a   :  { %v6029_v44 = vpop.f32.mrb[38].mxu1 }
 0xd2b   :  { %v2734_v47 = vpop.f32.mrb[39].mxu1  ;;  %v7720_v33 = vadd.f32 %v6029_v44, %v5338_v10 }
 0xd2c   :  { %v7712_v16 = vadd.f32 %v5338_v10, %v2734_v47 }
 0xd66   :  { %v2306_v49 = vpop.xlane.xlu1 %2305 }
 0xd67   :  { %v2314_v48 = vmul.f32 0.03125, %v2306_v49  ;;  %v2303_v50 = vpop.xlane.xlu0 %2302 }
 0xd68   :  { %v2313_v51 = vmul.f32 0.03125, %v2303_v50 }
 0xd69   :  { %v2318_v53 = vadd.f32 1e-05, %v2314_v48 }
 0xd6a   :  { %v2317_v54 = vadd.f32 1e-05, %v2313_v51 }
 0xd6b   :  { %6855 = vrsqrt.f32 %v2318_v53  ;;  %v2312_v55 = vpop.xlane.xlu1 %2311 }
 0xd6c   :  { %6857 = vrsqrt.f32 %v2317_v54  ;;  %v2316_v56 = vmul.f32 0.03125, %v2312_v55  ;;  %v2309_v57 = vpop.xlane.xlu0 %2308 }
 0xd6d   :  { %v2315_v58 = vmul.f32 0.03125, %v2309_v57 }
 0xd6e   :  { %v2320_v21 = vadd.f32 1e-05, %v2316_v56 }
 0xd6f   :  { %v2319_v59 = vadd.f32 1e-05, %v2315_v58 }
 0xd70   :  { %6859 = vrsqrt.f32 %v2320_v21 }
 0xd71   :  { %6861 = vrsqrt.f32 %v2319_v59 }
 0xd75   :  { %v6856_v22 = vpop.eup %6855 }
 0xd76   :  { %v6858_v28 = vpop.eup %6857  ;;  %v2326_v23 = vmul.f32 %v6856_v22, %v2294_v11 }
 0xd77   :  { %v2325_v61 = vmul.f32 %v6858_v28, %v2293_v12 }
 0xd78   :  { %v2336_v63 = vmul.f32 %v5323_v60, %v2326_v23 }
 0xd79   :  { %v2335_v27 = vmul.f32 %v5323_v60, %v2325_v61 }
 0xd7a   :  { %v6860_v1 = vpop.eup %6859  ;;  %v7693_v24 = vadd.f32 %v5324_v62, %v2336_v63 }
 0xd7b   :  { %v6862_v2 = vpop.eup %6861  ;;  %v7691_v3 = vadd.f32 %v5324_v62, %v2335_v27  ;;  %v2328_v4 = vmul.f32 %v6860_v1, %v2296_v18  ;;  %v3028_v18 = vld [vmem:[%s8157_s20 + $0x8] sm:$0xff] }
 0xd7c   :  { %v2327_v0 = vmul.f32 %v6862_v2, %v2295_v19  ;;  %v6472_v9 = vpack.c.bf16 %v3028_v18, %v3027_v34  ;;  %v3019_v19 = vld [vmem:[%s8158_s27] sm:$0xff] }
 0xd7d   :  { %6038 = vmatprep.mubr.msk.f32.mxu0 %vm204_vm0, %v7691_v3  ;;  %v2338_v11 = vmul.f32 %v5323_v60, %v2328_v4  ;;  %v6456_v29 = vpack.c.bf16 %v3020_v25, %v3019_v19 }
 0xd7e   :  { %6039 = vmatmul.mubr.msk.f32.vlgmr.msra.gmra.mrb[32].mxu0 %vm204_vm0, %v7693_v24  ;;  %v2337_v12 = vmul.f32 %v5323_v60, %v2327_v0 }
 0xd7f   :  { %6451 = vmatpush3.bf16.msra.mxu0 %v6448_v40  ;;  %v7704_v15 = vadd.f32 %v5324_v62, %v2338_v11  ;;  %6457 = vmatprep.subr.bf16.mxu1 %v6456_v29 }
 0xd80   :  { %v7702_v14 = vadd.f32 %v5324_v62, %v2337_v12  ;;  %6453 = vmatprep.subr.bf16.mxu0 %v6452_v5  ;;  %6459 = vmatpush3.bf16.msra.mxu1 %v6456_v29  ;;  %v3011_v29 = vld [vmem:[%s8162_s15] sm:$0xff] }
 0xd81   :  { %6461 = vmatprep.subr.bf16.mxu1 %v6460_v37 }
 0xd82   :  { %6041 = vmatprep.mubr.msk.f32.mxu0 %vm204_vm0, %v7702_v14 }
 0xd83   :  { %6042 = vmatmul.mubr.msk.f32.gmra.mrb[34].mxu0 %vm204_vm0, %v7704_v15 }
 0xd84   :  { %6455 = vmatpush3.bf16.msra.mxu0 %v6452_v5  ;;  %6052 = vmatprep.mubr.msk.f32.mxu0 %vm204_vm0, %v7700_v13 }
 0xd85   :  { %6473 = vmatprep.subr.bf16.mxu0 %v6472_v9  ;;  %6463 = vmatpush3.bf16.msra.mxu1 %v6460_v37 }
 0xd86   :  { %6465 = vmatprep.subr.bf16.mxu1 %v7734_v43 }
 0xd87   :  { %6053 = vmatmul.mubr.msk.f32.vlgmr.msra.gmra.mrb[32].mxu0 %vm204_vm0, %v7714_v17 }
 0xd88   :  { %6055 = vmatprep.mubr.msk.f32.mxu0 %vm204_vm0, %v7712_v16  ;;  %6475 = vmatpush3.bf16.msra.mxu0 %v6472_v9 }
 0xd89   :  { %6477 = vmatprep.subr.bf16.mxu0 %v6476_v35 }
 0xd8b   :  { %6056 = vmatmul.mubr.msk.f32.gmra.mrb[34].mxu0 %vm204_vm0, %v7720_v33 }
 0xd8c   :  { %6479 = vmatpush3.bf16.msra.mxu0 %v6476_v35  ;;  %v3026_v35 = vld [vmem:[%s8159_s7 + $0x18] sm:$0xff] }
 0xe5a   :  { %v6054_v40 = vpop.f32.mrb[32].mxu0 }
 0xe5b   :  { %v6584_v52 = vadd.f32 %v6054_v40, %v5343_v39  ;;  %v2933_v44 = vpop.f32.mrb[33].mxu0 }
 0xe5c   :  { %v6585_v47 = vadd.f32 %v5343_v39, %v2933_v44 }
 0xe5d   :  { %v2964_v49 = vadd.f32 %v6584_v52, %v5352_v41 }
 0xe5e   :  { %v2963_v48 = vadd.f32 %v6585_v47, %v5352_v41  ;;  %v6057_v50 = vpop.f32.mrb[34].mxu0 }
 0xe5f   :  { %v5354_v51 = vmul.f32 -1.442695, %v2964_v49  ;;  %v6586_v53 = vadd.f32 %v6057_v50, %v5343_v39  ;;  %v2943_v54 = vpop.f32.mrb[35].mxu0 }
 0xe60   :  { %v5353_v55 = vmul.f32 -1.442695, %v2963_v48  ;;  %v6587_v56 = vadd.f32 %v5343_v39, %v2943_v54 }
 0xe61   :  { %6863 = vpow2.f32 %v5354_v51  ;;  %v2966_v57 = vadd.f32 %v6586_v53, %v5352_v41 }
 0xe62   :  { %6865 = vpow2.f32 %v5353_v55  ;;  %v2965_v58 = vadd.f32 %v6587_v56, %v5352_v41 }
 0xe63   :  { %v5356_v21 = vmul.f32 -1.442695, %v2966_v57 }
 0xe64   :  { %v5355_v59 = vmul.f32 -1.442695, %v2965_v58 }
 0xe65   :  { %6867 = vpow2.f32 %v5356_v21 }
 0xe66   :  { %6869 = vpow2.f32 %v5355_v59 }
 0xe6b   :  { %v6864_v22 = vpop.eup %6863 }
 0xe6c   :  { %v6866_v60 = vpop.eup %6865  ;;  %v2980_v28 = vadd.f32 1.0, %v6864_v22  ;;  %v7835_v22 = vld [vmem:[%s8163_s16 + $0x8] sm:$0xff] }
 0xe6d   :  { %v2979_v23 = vadd.f32 1.0, %v6866_v60  ;;  %v7838_v60 = vld [vmem:[%s8163_s16] sm:$0xff] }
 0xe6e   :  { %6871 = vrcp.f32 %v2980_v28 }
 0xe6f   :  { %v6868_v61 = vpop.eup %6867  ;;  %6873 = vrcp.f32 %v2979_v23 }
 0xe70   :  { %v6870_v62 = vpop.eup %6869  ;;  %v2982_v63 = vadd.f32 1.0, %v6868_v61 }
 0xe71   :  { %v2981_v27 = vadd.f32 1.0, %v6870_v62 }
 0xe72   :  { %6875 = vrcp.f32 %v2982_v63  ;;  %v7843_v63 = vld [vmem:[%s8163_s16 + $0x18] sm:$0xff] }
 0xe73   :  { %6877 = vrcp.f32 %v2981_v27 }
 0xe78   :  { %v6872_v20 = vpop.eup %6871 }
 0xe79   :  { %v6874_v32 = vpop.eup %6873  ;;  %v2996_v1 = vsub.f32 1.0, %v6872_v20  ;;  %v2992_v4 = vmul.f32 %v6872_v20, %v7693_v24  ;;  %v7847_v20 = vld [vmem:[%s8163_s16 + $0x10] sm:$0xff] }
 0xe7a   :  { %v2995_v2 = vsub.f32 1.0, %v6874_v32  ;;  %v2991_v10 = vmul.f32 %v6874_v32, %v7691_v3  ;;  %v3012_v3 = vld [vmem:[%s8162_s15 + $0x8] sm:$0xff] }
 0xe7b   :  { %v3000_v0 = vmul.f32 %v2996_v1, %v7714_v17 }
 0xe7c   :  { %v6876_v5 = vpop.eup %6875  ;;  %v2999_v11 = vmul.f32 %v2995_v2, %v7700_v13 }
 0xe7d   :  { %v6878_v12 = vpop.eup %6877  ;;  %v3004_v34 = vadd.f32 %v3000_v0, %v2992_v4  ;;  %v2998_v18 = vsub.f32 1.0, %v6876_v5  ;;  %v2994_v24 = vmul.f32 %v6876_v5, %v7704_v15 }
 0xe7e   :  { %v3003_v9 = vadd.f32 %v2999_v11, %v2991_v10  ;;  %v2997_v19 = vsub.f32 1.0, %v6878_v12  ;;  %v2993_v13 = vmul.f32 %v6878_v12, %v7702_v14 }
 0xe7f   :  { %v7744_v25 = vadd.f32 %v7550_v8, %v3004_v34  ;;  %v3002_v17 = vmul.f32 %v2998_v18, %v7720_v33  ;;  %v6468_v33 = vpack.c.bf16 %v3026_v35, %v3025_v6 }
 0xe80   :  { %v7750_v7 = vadd.f32 %v7544_v31, %v3003_v9  ;;  %v3001_v30 = vmul.f32 %v2997_v19, %v7712_v16  ;;  %v3013_v16 = vld [vmem:[%s8162_s15 + $0x10] sm:$0xff] }
 0xe81   :  { %v3006_v36 = vadd.f32 %v3002_v17, %v2994_v24  ;;  %v7765_v31 = vadd.f32 %v3012_v3, %v7744_v25 }
 0xe82   :  { %6094 = vmatprep.mubr.msk.f32.mxu0 %vm204_vm0, %v7750_v7  ;;  %v7760_v8 = vadd.f32 %v3011_v29, %v7750_v7  ;;  %v3005_v15 = vadd.f32 %v3001_v30, %v2993_v13 }
 0xe83   :  { %6095 = vmatmul.mubr.msk.f32.vlgmr.msra.gmra.mrb[36].mxu0 %vm204_vm0, %v7744_v25  ;;  %v7768_v14 = vadd.f32 %v7557_v42, %v3006_v36 }
 0xe84   :  { %6066 = vmatprep.mubr.msk.f32.mxu1 %vm204_vm0, %v7760_v8  ;;  %v7774_v37 = vadd.f32 %v7561_v46, %v3005_v15 }
 0xe85   :  { %6067 = vmatmul.mubr.msk.f32.vlgmr.msra.gmra.mrb[40].mxu1 %vm204_vm0, %v7765_v31  ;;  %v7788_v45 = vadd.f32 %v3014_v38, %v7768_v14 }
 0xe86   :  { %6467 = vmatpush3.bf16.msra.mxu1 %v7734_v43  ;;  %6097 = vmatprep.mubr.msk.f32.mxu0 %vm204_vm0, %v7774_v37  ;;  %v7783_v42 = vadd.f32 %v3013_v16, %v7774_v37 }
 0xe87   :  { %6098 = vmatmul.mubr.msk.f32.gmra.mrb[38].mxu0 %vm204_vm0, %v7768_v14  ;;  %6469 = vmatprep.subr.bf16.mxu1 %v6468_v33 }
 0xe88   :  { %6069 = vmatprep.mubr.msk.f32.mxu1 %vm204_vm0, %v7783_v42 }
 0xe89   :  { %6070 = vmatmul.mubr.msk.f32.gmra.mrb[42].mxu1 %vm204_vm0, %v7788_v45 }
 0xe8a   :  { %6471 = vmatpush3.bf16.msra.mxu1 %v6468_v33  ;;  %6080 = vmatprep.mubr.msk.f32.mxu1 %vm204_vm0, %v7750_v7 }
 0xe8d   :  { %6081 = vmatmul.mubr.msk.f32.vlgmr.msra.gmra.mrb[44].mxu1 %vm204_vm0, %v7744_v25 }
 0xe8e   :  { %6083 = vmatprep.mubr.msk.f32.mxu1 %vm204_vm0, %v7774_v37 }
 0xe91   :  { %6084 = vmatmul.mubr.msk.f32.gmra.mrb[46].mxu1 %vm204_vm0, %v7768_v14 }
 0xf56   :  { %v6096_v46 = vpop.f32.mrb[36].mxu0 }
 0xf57   :  { %v3300_v43 = vpop.f32.mrb[37].mxu0 }
 0xf58   :  { %v7802_v39 = vpack.i.bf16 %v6096_v46, %v3300_v43  ;;  %v7804_v40 = vpop.f32.mrb[40].mxu1  ;;  %v6492_v41 = vpack.c.bf16 %v6096_v46, %v3300_v43 }
 0xf59   :  { %v7806_v52 = vpop.f32.mrb[41].mxu1 }
 0xf5a   :  { %v6099_v44 = vpop.f32.mrb[38].mxu0  ;;  %6108 = vmatprep.mubr.msk.f32.mxu1 %vm496_vm1, %v7806_v52  ;;  %6493 = vmatprep.subr.bf16.mxu0 %v6492_v41 }
 0xf5b   :  { %v3310_v47 = vpop.f32.mrb[39].mxu0  ;;  %6495 = vmatpush3.bf16.msra.mxu0 %v6492_v41 }
 0xf5c   :  { %v7810_v49 = vpack.i.bf16 %v6099_v44, %v3310_v47  ;;  %v7812_v48 = vpop.f32.mrb[42].mxu1  ;;  %v6496_v50 = vpack.c.bf16 %v6099_v44, %v3310_v47 }
 0xf5d   :  { %v7814_v51 = vpop.f32.mrb[43].mxu1 }
 0xf5e   :  { %6497 = vmatprep.subr.bf16.mxu0 %v6496_v50 }
 0xf5f   :  { %6499 = vmatpush3.bf16.msra.mxu0 %v6496_v50 }
 0xf60   :  { %v6082_v53 = vpop.f32.mrb[44].mxu1 }
 0xf61   :  { %v3215_v54 = vpop.f32.mrb[45].mxu1 }
 0xf62   :  { %v7816_v55 = vpack.i.bf16 %v6082_v53, %v3215_v54  ;;  %v6480_v56 = vpack.c.bf16 %v6082_v53, %v3215_v54 }
 0xf64   :  { %v6085_v57 = vpop.f32.mrb[46].mxu1  ;;  %6482 = vmatprep.subr.msk.bf16.mxu1 %vm7285_vm2, %v6480_v56 }
 0xf65   :  { %v3225_v58 = vpop.f32.mrb[47].mxu1  ;;  %6485 = vmatpush3.bf16.xpose.msk.msra.mxu1 %vm7285_vm2, %v6480_v56 }
 0xf66   :  { %v7822_v21 = vpack.i.bf16 %v6085_v57, %v3225_v58  ;;  %v6486_v59 = vpack.c.bf16 %v6085_v57, %v3225_v58 }
 0xf68   :  { %6488 = vmatprep.subr.msk.bf16.mxu1 %vm7285_vm2, %v6486_v59 }
 0xf6d   :  { %6491 = vmatpush3.bf16.xpose.msk.msra.mxu1 %vm7285_vm2, %v6486_v59 }
 0xf74   :  { %6109 = vmatmul.mubr.msk.f32.vlgmr.msra.gmra.mrb[48].mxu1 %vm496_vm1, %v7804_v40 }
 0xf75   :  { %6111 = vmatprep.mubr.msk.f32.mxu1 %vm496_vm1, %v7814_v51 }
 0xf78   :  { %6112 = vmatmul.mubr.msk.f32.gmra.mrb[50].mxu1 %vm496_vm1, %v7812_v48 }
0x1047   :  { %v6110_v28 = vpop.f32.mrb[48].mxu1 }
0x1048   :  { %v3415_v23 = vadd.f32 %v6110_v28, %v7835_v22  ;;  %v3409_v61 = vpop.f32.mrb[49].mxu1 }
0x1049   :  { %v3410_v62 = vadd.f32 %v3409_v61, %v7838_v60 }
0x104a   :  { %v3431_v27 = vsel %vm204_vm0, %v3415_v23, -inf }
0x104b   :  { %3432 = vmax.xlane.f32.xlu1 %v3431_v27  ;;  %v6113_v32 = vpop.f32.mrb[50].mxu1  ;;  %v3428_v1 = vsel %vm204_vm0, %v3410_v62, -inf }
0x104c   :  { %v3425_v2 = vadd.f32 %v6113_v32, %v7843_v63  ;;  %v3419_v4 = vpop.f32.mrb[51].mxu1  ;;  %3429 = vmax.xlane.f32.xlu0 %v3428_v1 }
0x104d   :  { %v3420_v0 = vadd.f32 %v3419_v4, %v7847_v20 }
0x104e   :  { %v3437_v5 = vsel %vm204_vm0, %v3425_v2, -inf }
0x104f   :  { %3438 = vmax.xlane.f32.xlu1 %v3437_v5  ;;  %v3434_v10 = vsel %vm204_vm0, %v3420_v0, -inf }
0x1050   :  { %3435 = vmax.xlane.f32.xlu0 %v3434_v10 }
0x10d8   :  { %v3433_v11 = vpop.xlane.xlu1 %3432 }
0x10d9   :  { %v3441_v12 = vsub.f32 %v3415_v23, %v3433_v11  ;;  %v3430_v34 = vpop.xlane.xlu0 %3429 }
0x10da   :  { %v3440_v18 = vsub.f32 %v3410_v62, %v3430_v34 }
0x10db   :  { %v3446_v9 = vmul.f32 1.442695, %v3441_v12 }
0x10dc   :  { %v3444_v19 = vmul.f32 1.442695, %v3440_v18  ;;  %v3439_v29 = vpop.xlane.xlu1 %3438 }
0x10dd   :  { %6879 = vpow2.f32 %v3446_v9  ;;  %v3443_v24 = vsub.f32 %v3425_v2, %v3439_v29  ;;  %v3436_v17 = vpop.xlane.xlu0 %3435 }
0x10de   :  { %6881 = vpow2.f32 %v3444_v19  ;;  %v3442_v3 = vsub.f32 %v3420_v0, %v3436_v17 }
0x10df   :  { %v3450_v13 = vmul.f32 1.442695, %v3443_v24 }
0x10e0   :  { %v3448_v30 = vmul.f32 1.442695, %v3442_v3 }
0x10e1   :  { %6883 = vpow2.f32 %v3450_v13 }
0x10e2   :  { %6885 = vpow2.f32 %v3448_v30 }
0x10e7   :  { %v6880_v6 = vpop.eup %6879 }
0x10e8   :  { %v6882_v35 = vpop.eup %6881  ;;  %v3455_v36 = vsel %vm204_vm0, %v6880_v6, 0.0 }
0x10e9   :  { %3456 = vadd.xlane.f32.xlu1 %v3455_v36  ;;  %v3452_v15 = vsel %vm204_vm0, %v6882_v35, 0.0 }
0x10ea   :  { %3453 = vadd.xlane.f32.xlu0 %v3452_v15 }
0x10eb   :  { %v6884_v16 = vpop.eup %6883 }
0x10ec   :  { %v6886_v33 = vpop.eup %6885  ;;  %v3461_v38 = vsel %vm204_vm0, %v6884_v16, 0.0 }
0x10ed   :  { %3462 = vadd.xlane.f32.xlu1 %v3461_v38  ;;  %v3458_v46 = vsel %vm204_vm0, %v6886_v33, 0.0 }
0x10ee   :  { %3459 = vadd.xlane.f32.xlu0 %v3458_v46 }
0x10fe   :  { %6729 = vrot.lane.b32.xlu1 %v7822_v21, %s7028_s0 }
0x1102   :  { %3569 = vrot.lane.b32.xlu1 %v7806_v52, %s7028_s0 }
0x1104   :  { %6724 = vrot.lane.b32.xlu0 %v7816_v55, %s7028_s0 }
0x1106   :  { %3571 = vrot.lane.b32.xlu1 %v7804_v40, %s7028_s0 }
0x1108   :  { %3573 = vrot.lane.b32.xlu0 %v7814_v51, %s7028_s0 }
0x110a   :  { %3575 = vrot.lane.b32.xlu1 %v7812_v48, %s7028_s0 }
0x110c   :  { %6734 = vrot.lane.b32.xlu0 %v7816_v55, %s7029_s9 }
0x110e   :  { %6739 = vrot.lane.b32.xlu1 %v7822_v21, %s7029_s9 }
0x1110   :  { %4037 = vrot.lane.b32.xlu0 %v7806_v52, %s7029_s9 }
0x1112   :  { %4039 = vrot.lane.b32.xlu1 %v7804_v40, %s7029_s9 }
0x1114   :  { %4041 = vrot.lane.b32.xlu0 %v7814_v51, %s7029_s9 }
0x1116   :  { %4043 = vrot.lane.b32.xlu1 %v7812_v48, %s7029_s9 }
0x1176   :  { %v3457_v43 = vpop.xlane.xlu1 %3456 }
0x1177   :  { %6887 = vrcp.f32 %v3457_v43  ;;  %v3454_v41 = vpop.xlane.xlu0 %3453 }
0x1178   :  { %6889 = vrcp.f32 %v3454_v41 }
0x117a   :  { %v3463_v44 = vpop.xlane.xlu1 %3462 }
0x117b   :  { %6891 = vrcp.f32 %v3463_v44  ;;  %v3460_v47 = vpop.xlane.xlu0 %3459 }
0x117c   :  { %6893 = vrcp.f32 %v3460_v47 }
0x117e   :  { %v6730_v50 = vpop.permute.xlu1 %6729 }
0x117f   :  { %v6725_v53 = vpop.permute.xlu0 %6724  ;;  %v6732_v59 = vunpack.i.h.bf16 %v6730_v50  ;;  %v6731_v28 = vunpack.i.l.bf16 %v6730_v50 }
0x1180   :  { %v6727_v54 = vunpack.i.h.bf16 %v6725_v53  ;;  %v6726_v56 = vunpack.i.l.bf16 %v6725_v53 }
0x1181   :  { %v6888_v57 = vpop.eup %6887  ;;  %v6506_v4 = vpack.c.bf16 %v6732_v59, %v6731_v28 }
0x1182   :  { %v6890_v58 = vpop.eup %6889  ;;  %v6500_v23 = vpack.c.bf16 %v6727_v54, %v6726_v56  ;;  %v3570_v61 = vpop.permute.xlu1 %3569  ;;  %v3469_v32 = vmul.f32 %v6888_v57, %v6880_v6 }
0x1183   :  { %v3574_v62 = vpop.permute.xlu0 %3573  ;;  %v3468_v27 = vmul.f32 %v6890_v58, %v6882_v35 }
0x1184   :  { %6502 = vmatprep.subr.msk.bf16.mxu0 %vm7285_vm2, %v6500_v23 }
0x1185   :  { %v6892_v1 = vpop.eup %6891  ;;  %6122 = vmatprep.mubr.msk.f32.mxu0 %vm204_vm0, %v3468_v27 }
0x1186   :  { %v6894_v2 = vpop.eup %6893  ;;  %v3572_v0 = vpop.permute.xlu1 %3571  ;;  %6123 = vmatmul.mubr.msk.f32.vlgmr.msra.gmra.mrb[40].mxu0 %vm204_vm0, %v3469_v32  ;;  %v3471_v11 = vmul.f32 %v6892_v1, %v6884_v16 }
0x1187   :  { %6505 = vmatpush3.bf16.xpose.msk.msra.mxu0 %vm7285_vm2, %v6500_v23  ;;  %v6735_v5 = vpop.permute.xlu0 %6734  ;;  %v3470_v10 = vmul.f32 %v6894_v2, %v6886_v33 }
0x1188   :  { %6508 = vmatprep.subr.msk.bf16.mxu0 %vm7285_vm2, %v6506_v4  ;;  %v6737_v12 = vunpack.i.h.bf16 %v6735_v5  ;;  %v6736_v34 = vunpack.i.l.bf16 %v6735_v5 }
0x1189   :  { %6125 = vmatprep.mubr.msk.f32.mxu0 %vm204_vm0, %v3470_v10 }
0x118a   :  { %v3576_v18 = vpop.permute.xlu1 %3575  ;;  %6126 = vmatmul.mubr.msk.f32.gmra.mrb[42].mxu0 %vm204_vm0, %v3471_v11  ;;  %v6520_v9 = vpack.c.bf16 %v6737_v12, %v6736_v34 }
0x118b   :  { %6136 = vmatprep.mubr.msk.f32.mxu0 %vm496_vm1, %v3570_v61  ;;  %v4038_v3 = vpop.permute.xlu0 %4037 }
0x118e   :  { %v6740_v19 = vpop.permute.xlu1 %6739 }
0x118f   :  { %6511 = vmatpush3.bf16.xpose.msk.msra.mxu0 %vm7285_vm2, %v6506_v4  ;;  %v6742_v29 = vunpack.i.h.bf16 %v6740_v19  ;;  %v6741_v24 = vunpack.i.l.bf16 %v6740_v19  ;;  %v4042_v30 = vpop.permute.xlu0 %4041 }
0x1190   :  { %6522 = vmatprep.subr.msk.bf16.mxu0 %vm7285_vm2, %v6520_v9 }
0x1191   :  { %v6526_v17 = vpack.c.bf16 %v6742_v29, %v6741_v24 }
0x1192   :  { %v4040_v13 = vpop.permute.xlu1 %4039 }
0x1196   :  { %6137 = vmatmul.mubr.msk.f32.vlgmr.msra.gmra.mrb[44].mxu0 %vm496_vm1, %v3572_v0  ;;  %v4044_v6 = vpop.permute.xlu1 %4043 }
0x1197   :  { %6139 = vmatprep.mubr.msk.f32.mxu0 %vm496_vm1, %v3574_v62  ;;  %6525 = vmatpush3.bf16.xpose.msk.msra.mxu0 %vm7285_vm2, %v6520_v9 }
0x1198   :  { %6528 = vmatprep.subr.msk.bf16.mxu0 %vm7285_vm2, %v6526_v17 }
0x119a   :  { %6140 = vmatmul.mubr.msk.f32.gmra.mrb[46].mxu0 %vm496_vm1, %v3576_v18 }
0x119b   :  { %6180 = vmatprep.mubr.msk.f32.mxu0 %vm496_vm1, %v4038_v3 }
0x119f   :  { %6531 = vmatpush3.bf16.xpose.msk.msra.mxu0 %vm7285_vm2, %v6526_v17 }
0x11a6   :  { %6181 = vmatmul.mubr.msk.f32.vlgmr.msra.gmra.mrb[48].mxu0 %vm496_vm1, %v4040_v13 }
0x11a7   :  { %6183 = vmatprep.mubr.msk.f32.mxu0 %vm496_vm1, %v4042_v30 }
0x11aa   :  { %6184 = vmatmul.mubr.msk.f32.gmra.mrb[50].mxu0 %vm496_vm1, %v4044_v6 }
0x1259   :  { %v7910_v35 = vpop.f32.mrb[40].mxu0 }
0x125a   :  { %v7912_v36 = vpop.f32.mrb[41].mxu0 }
0x125d   :  { %v7914_v15 = vpop.f32.mrb[42].mxu0 }
0x125e   :  { %v7916_v16 = vpop.f32.mrb[43].mxu0 }
0x1269   :  { %v6138_v33 = vpop.f32.mrb[44].mxu0 }
0x126a   :  { %v3673_v38 = vadd.f32 %v6138_v33, %v7835_v22  ;;  %v3667_v46 = vpop.f32.mrb[45].mxu0 }
0x126b   :  { %v3668_v43 = vadd.f32 %v3667_v46, %v7838_v60 }
0x126c   :  { %v3689_v41 = vsel %vm204_vm0, %v3673_v38, -inf }
0x126d   :  { %3690 = vmax.xlane.f32.xlu1 %v3689_v41  ;;  %v6141_v44 = vpop.f32.mrb[46].mxu0  ;;  %v3686_v47 = vsel %vm204_vm0, %v3668_v43, -inf }
0x126e   :  { %v3677_v50 = vpop.f32.mrb[47].mxu0  ;;  %3687 = vmax.xlane.f32.xlu0 %v3686_v47  ;;  %v3683_v54 = vadd.f32 %v6141_v44, %v7843_v63 }
0x126f   :  { %v3678_v53 = vadd.f32 %v3677_v50, %v7847_v20 }
0x1270   :  { %v3695_v57 = vsel %vm204_vm0, %v3683_v54, -inf }
0x1271   :  { %v3692_v56 = vsel %vm204_vm0, %v3678_v53, -inf }
0x1272   :  { %3693 = vmax.xlane.f32.xlu0 %v3692_v56 }
0x1276   :  { %3696 = vmax.xlane.f32.xlu0 %v3695_v57 }
0x1279   :  { %v6182_v58 = vpop.f32.mrb[48].mxu0 }
0x127a   :  { %v4135_v59 = vpop.f32.mrb[49].mxu0 }
0x127b   :  { %v7950_v13 = vadd.f32 %v4135_v59, %v7838_v60 }
0x127d   :  { %v6185_v28 = vpop.f32.mrb[50].mxu0 }
0x127e   :  { %v4145_v23 = vpop.f32.mrb[51].mxu0 }
0x12fa   :  { %v3691_v61 = vpop.xlane.xlu1 %3690 }
0x12fb   :  { %v3699_v62 = vsub.f32 %v3673_v38, %v3691_v61  ;;  %v3688_v27 = vpop.xlane.xlu0 %3687 }
0x12fc   :  { %v3698_v32 = vsub.f32 %v3668_v43, %v3688_v27 }
0x12fd   :  { %v3704_v1 = vmul.f32 1.442695, %v3699_v62 }
0x12fe   :  { %v3702_v2 = vmul.f32 1.442695, %v3698_v32 }
0x12ff   :  { %6895 = vpow2.f32 %v3704_v1  ;;  %v3694_v4 = vpop.xlane.xlu0 %3693 }
0x1300   :  { %6897 = vpow2.f32 %v3702_v2  ;;  %v3700_v0 = vsub.f32 %v3678_v53, %v3694_v4 }
0x1302   :  { %v3706_v5 = vmul.f32 1.442695, %v3700_v0 }
0x1303   :  { %v3697_v10 = vpop.xlane.xlu0 %3696 }
0x1304   :  { %6899 = vpow2.f32 %v3706_v5  ;;  %v3701_v11 = vsub.f32 %v3683_v54, %v3697_v10 }
0x1306   :  { %v3708_v12 = vmul.f32 1.442695, %v3701_v11 }
0x1308   :  { %6901 = vpow2.f32 %v3708_v12 }
0x1309   :  { %v6896_v34 = vpop.eup %6895 }
0x130a   :  { %v6898_v18 = vpop.eup %6897  ;;  %v3713_v9 = vsel %vm204_vm0, %v6896_v34, 0.0 }
0x130b   :  { %3714 = vadd.xlane.f32.xlu1 %v3713_v9  ;;  %v3710_v19 = vsel %vm204_vm0, %v6898_v18, 0.0 }
0x130c   :  { %3711 = vadd.xlane.f32.xlu0 %v3710_v19 }
0x130e   :  { %v6900_v29 = vpop.eup %6899 }
0x130f   :  { %v3716_v24 = vsel %vm204_vm0, %v6900_v29, 0.0 }
0x1310   :  { %3717 = vadd.xlane.f32.xlu0 %v3716_v24 }
0x1312   :  { %v7929_v17 = vpop.eup %6901 }
0x1313   :  { %v3719_v3 = vsel %vm204_vm0, %v7929_v17, 0.0 }
0x1314   :  { %3720 = vadd.xlane.f32.xlu1 %v3719_v3 }
0x1325   :  { %6749 = vrot.lane.b32.xlu1 %v7810_v49, %s7028_s0 }
0x1326   :  { %6744 = vrot.lane.b32.xlu0 %v7802_v39, %s7028_s0 }
0x1329   :  { %6754 = vrot.lane.b32.xlu1 %v7816_v55, %s7030_s13  ;;  %v7953_v55 = vadd.f32 %v4145_v23, %v7847_v20 }
0x132a   :  { %4408 = vrot.lane.b32.xlu0 %v7806_v52, %s7030_s13  ;;  %v4154_v52 = vsel %vm204_vm0, %v7950_v13, -inf }
0x132d   :  { %6759 = vrot.lane.b32.xlu1 %v7822_v21, %s7030_s13  ;;  %v7958_v21 = vadd.f32 %v6185_v28, %v7843_v63 }
0x132e   :  { %4412 = vrot.lane.b32.xlu0 %v7814_v51, %s7030_s13  ;;  %v4160_v51 = vsel %vm204_vm0, %v7953_v55, -inf }
0x1331   :  { %4410 = vrot.lane.b32.xlu1 %v7804_v40, %s7030_s13  ;;  %v7963_v40 = vadd.f32 %v6182_v58, %v7835_v22 }
0x1333   :  { %v4157_v30 = vsel %vm204_vm0, %v7963_v40, -inf }
0x1335   :  { %4414 = vrot.lane.b32.xlu1 %v7812_v48, %s7030_s13  ;;  %v4163_v48 = vsel %vm204_vm0, %v7958_v21, -inf }
0x134d   :  { %4155 = vmax.xlane.f32.xlu0 %v4154_v52 }
0x1351   :  { %4161 = vmax.xlane.f32.xlu0 %v4160_v51 }
0x1355   :  { %4164 = vmax.xlane.f32.xlu0 %v4163_v48 }
0x1359   :  { %4158 = vmax.xlane.f32.xlu1 %v4157_v30 }
0x1398   :  { %v3715_v33 = vpop.xlane.xlu1 %3714 }
0x1399   :  { %v3712_v6 = vpop.xlane.xlu0 %3711 }
0x139a   :  { %6903 = vrcp.f32 %v3712_v6 }
0x139b   :  { %6905 = vrcp.f32 %v3715_v33 }
0x139d   :  { %v3718_v38 = vpop.xlane.xlu0 %3717 }
0x139e   :  { %6907 = vrcp.f32 %v3718_v38 }
0x13a1   :  { %v3721_v46 = vpop.xlane.xlu1 %3720  ;;  %v6745_v43 = vpop.permute.xlu0 %6744 }
0x13a2   :  { %v6747_v41 = vunpack.i.h.bf16 %v6745_v43  ;;  %v6746_v44 = vunpack.i.l.bf16 %v6745_v43  ;;  %6909 = vrcp.f32 %v3721_v46 }
0x13a4   :  { %v6904_v47 = vpop.eup %6903  ;;  %v6512_v50 = vpack.c.bf16 %v6747_v41, %v6746_v44  ;;  %v3032_v44 = vld [vmem:[%s8164_s18 + $0x8] sm:$0xff] }
0x13a5   :  { %v6750_v53 = vpop.permute.xlu1 %6749  ;;  %v4409_v54 = vpop.permute.xlu0 %4408  ;;  %v3726_v56 = vmul.f32 %v6904_v47, %v6898_v18  ;;  %v3031_v47 = vld [vmem:[%s8164_s18] sm:$0xff] }
0x13a6   :  { %v6752_v57 = vunpack.i.h.bf16 %v6750_v53  ;;  %v6751_v58 = vunpack.i.l.bf16 %v6750_v53  ;;  %6513 = vmatprep.subr.bf16.mxu1 %v6512_v50  ;;  %6216 = vmatprep.mubr.msk.f32.mxu0 %vm496_vm1, %v4409_v54  ;;  %v6906_v28 = vpop.eup %6905 }
0x13a7   :  { %6515 = vmatpush3.bf16.msra.mxu1 %v6512_v50  ;;  %6150 = vmatprep.mubr.msk.f32.mxu1 %vm204_vm0, %v3726_v56  ;;  %v3727_v32 = vmul.f32 %v6906_v28, %v6896_v34 }
0x13a8   :  { %v6516_v59 = vpack.c.bf16 %v6752_v57, %v6751_v58  ;;  %v6908_v61 = vpop.eup %6907 }
0x13a9   :  { %v6755_v23 = vpop.permute.xlu1 %6754  ;;  %v3728_v0 = vmul.f32 %v6908_v61, %v6900_v29  ;;  %v4413_v18 = vpop.permute.xlu0 %4412 }
0x13aa   :  { %v6757_v62 = vunpack.i.h.bf16 %v6755_v23  ;;  %v6756_v27 = vunpack.i.l.bf16 %v6755_v23  ;;  %6517 = vmatprep.subr.bf16.mxu1 %v6516_v59 }
0x13ab   :  { %6519 = vmatpush3.bf16.msra.mxu1 %v6516_v59 }
0x13ac   :  { %v6540_v1 = vpack.c.bf16 %v6757_v62, %v6756_v27  ;;  %v6910_v2 = vpop.eup %6909  ;;  %6156 = vmatprep.subr.mxu1 %v3032_v44 }
0x13ad   :  { %v6760_v4 = vpop.permute.xlu1 %6759  ;;  %v3729_v12 = vmul.f32 %v6910_v2, %v7929_v17 }
0x13ae   :  { %v6762_v5 = vunpack.i.h.bf16 %v6760_v4  ;;  %v6761_v10 = vunpack.i.l.bf16 %v6760_v4  ;;  %6151 = vmatmul.mubr.msk.f32.vlgmr.msra.gmra.mrb[52].mxu1 %vm204_vm0, %v3727_v32  ;;  %6542 = vmatprep.subr.msk.bf16.mxu0 %vm7285_vm2, %v6540_v1 }
0x13af   :  { %6153 = vmatprep.mubr.msk.f32.mxu1 %vm204_vm0, %v3728_v0  ;;  %6545 = vmatpush3.bf16.xpose.msk.msra.mxu0 %vm7285_vm2, %v6540_v1 }
0x13b0   :  { %v6546_v11 = vpack.c.bf16 %v6762_v5, %v6761_v10  ;;  %6157 = vmatpush3.msra.mxu1 %v3032_v44 }
0x13b1   :  { %v4411_v34 = vpop.permute.xlu1 %4410  ;;  %6164 = vmatprep.subr.mxu1 %v3031_v47 }
0x13b2   :  { %6154 = vmatmul.mubr.msk.f32.gmra.mrb[54].mxu1 %vm204_vm0, %v3729_v12  ;;  %6548 = vmatprep.subr.msk.bf16.mxu0 %vm7285_vm2, %v6546_v11 }
0x13b5   :  { %v4415_v9 = vpop.permute.xlu1 %4414 }
0x13b7   :  { %6551 = vmatpush3.bf16.xpose.msk.msra.mxu0 %vm7285_vm2, %v6546_v11 }
0x13be   :  { %6217 = vmatmul.mubr.msk.f32.vlgmr.msra.gmra.mrb[52].mxu0 %vm496_vm1, %v4411_v34 }
0x13bf   :  { %6219 = vmatprep.mubr.msk.f32.mxu0 %vm496_vm1, %v4413_v18 }
0x13c2   :  { %6220 = vmatmul.mubr.msk.f32.gmra.mrb[54].mxu0 %vm496_vm1, %v4415_v9 }
0x13da   :  { %v4156_v19 = vpop.xlane.xlu0 %4155 }
0x13db   :  { %v4166_v29 = vsub.f32 %v7950_v13, %v4156_v19 }
0x13dd   :  { %v4170_v24 = vmul.f32 1.442695, %v4166_v29 }
0x13de   :  { %v4162_v17 = vpop.xlane.xlu0 %4161 }
0x13df   :  { %6911 = vpow2.f32 %v4170_v24  ;;  %v4168_v3 = vsub.f32 %v7953_v55, %v4162_v17 }
0x13e1   :  { %v4174_v52 = vmul.f32 1.442695, %v4168_v3 }
0x13e2   :  { %v4165_v26 = vpop.xlane.xlu0 %4164 }
0x13e3   :  { %6913 = vpow2.f32 %v4174_v52  ;;  %v4169_v51 = vsub.f32 %v7958_v21, %v4165_v26  ;;  %v3033_v26 = vld [vmem:[%s8164_s18 + $0x10] sm:$0xff] }
0x13e5   :  { %v4176_v33 = vmul.f32 1.442695, %v4169_v51 }
0x13e6   :  { %v4159_v48 = vpop.xlane.xlu1 %4158 }
0x13e7   :  { %v4167_v30 = vsub.f32 %v7963_v40, %v4159_v48 }
0x13e9   :  { %v6912_v6 = vpop.eup %6911  ;;  %v4172_v38 = vmul.f32 1.442695, %v4167_v30 }
0x13ea   :  { %v4178_v46 = vsel %vm204_vm0, %v6912_v6, 0.0 }
0x13eb   :  { %6915 = vpow2.f32 %v4172_v38  ;;  %4179 = vadd.xlane.f32.xlu0 %v4178_v46 }
0x13ec   :  { %6917 = vpow2.f32 %v4176_v33 }
0x13ed   :  { %v6914_v13 = vpop.eup %6913 }
0x13ee   :  { %v4184_v55 = vsel %vm204_vm0, %v6914_v13, 0.0 }
0x13ef   :  { %4185 = vadd.xlane.f32.xlu0 %v4184_v55 }
0x13f5   :  { %v6916_v43 = vpop.eup %6915 }
0x13f6   :  { %v4181_v21 = vsel %vm204_vm0, %v6916_v43, 0.0  ;;  %v7993_v41 = vpop.eup %6917 }
0x13f7   :  { %4182 = vadd.xlane.f32.xlu1 %v4181_v21  ;;  %v4187_v40 = vsel %vm204_vm0, %v7993_v41, 0.0 }
0x13fb   :  { %4188 = vadd.xlane.f32.xlu1 %v4187_v40 }
0x1405   :  { %6764 = vrot.lane.b32.xlu0 %v7802_v39, %s7029_s9 }
0x140c   :  { %6769 = vrot.lane.b32.xlu1 %v7810_v49, %s7029_s9 }
0x1478   :  { %v4180_v50 = vpop.xlane.xlu0 %4179 }
0x1479   :  { %6919 = vrcp.f32 %v4180_v50 }
0x147c   :  { %v4186_v53 = vpop.xlane.xlu0 %4185 }
0x1480   :  { %v6765_v54 = vpop.permute.xlu0 %6764 }
0x1481   :  { %v6767_v56 = vunpack.i.h.bf16 %v6765_v54  ;;  %v6766_v57 = vunpack.i.l.bf16 %v6765_v54  ;;  %v6152_v58 = vpop.f32.mrb[52].mxu1 }
0x1482   :  { %v3824_v59 = vpop.f32.mrb[53].mxu1 }
0x1483   :  { %v6532_v28 = vpack.c.bf16 %v6767_v56, %v6766_v57  ;;  %6158 = vmatprep.mubr.msk.f32.mxu1 %vm496_vm1, %v3824_v59  ;;  %v6920_v32 = vpop.eup %6919 }
0x1484   :  { %v4183_v23 = vpop.xlane.xlu1 %4182  ;;  %6159 = vmatmul.mubr.msk.f32.vlgmr.msra.gmra.mrb[56].mxu1 %vm496_vm1, %v6152_v58  ;;  %v4194_v5 = vmul.f32 %v6920_v32, %v6912_v6 }
0x1485   :  { %6165 = vmatpush3.msra.mxu1 %v3031_v47  ;;  %v6155_v61 = vpop.f32.mrb[54].mxu1  ;;  %6921 = vrcp.f32 %v4183_v23 }
0x1486   :  { %6533 = vmatprep.subr.bf16.mxu1 %v6532_v28  ;;  %v3834_v62 = vpop.f32.mrb[55].mxu1  ;;  %6923 = vrcp.f32 %v4186_v53 }
0x1487   :  { %6161 = vmatprep.mubr.msk.f32.mxu1 %vm496_vm1, %v3834_v62 }
0x1488   :  { %v4189_v27 = vpop.xlane.xlu1 %4188  ;;  %6162 = vmatmul.mubr.msk.f32.gmra.mrb[58].mxu1 %vm496_vm1, %v6155_v61 }
0x1489   :  { %6166 = vmatprep.mubr.msk.f32.mxu1 %vm496_vm1, %v7912_v36  ;;  %6925 = vrcp.f32 %v4189_v27 }
0x148c   :  { %v6770_v1 = vpop.permute.xlu1 %6769  ;;  %6167 = vmatmul.mubr.msk.f32.vlgmr.msra.gmra.mrb[56].mxu1 %vm496_vm1, %v7910_v35 }
0x148d   :  { %v6772_v2 = vunpack.i.h.bf16 %v6770_v1  ;;  %v6771_v4 = vunpack.i.l.bf16 %v6770_v1  ;;  %6535 = vmatpush3.bf16.msra.mxu1 %v6532_v28  ;;  %6169 = vmatprep.mubr.msk.f32.mxu1 %vm496_vm1, %v7916_v16 }
0x148f   :  { %v6536_v0 = vpack.c.bf16 %v6772_v2, %v6771_v4  ;;  %v6922_v10 = vpop.eup %6921 }
0x1490   :  { %6170 = vmatmul.mubr.msk.f32.gmra.mrb[58].mxu1 %vm496_vm1, %v7914_v15  ;;  %v6924_v11 = vpop.eup %6923  ;;  %v4195_v34 = vmul.f32 %v6922_v10, %v6916_v43 }
0x1491   :  { %6537 = vmatprep.subr.bf16.mxu1 %v6536_v0  ;;  %6194 = vmatprep.mubr.msk.f32.mxu1 %vm204_vm0, %v4194_v5  ;;  %v6218_v36 = vpop.f32.mrb[52].mxu0  ;;  %v4196_v19 = vmul.f32 %v6924_v11, %v6914_v13 }
0x1492   :  { %v4512_v12 = vadd.f32 %v6218_v36, %v7835_v22  ;;  %6539 = vmatpush3.bf16.msra.mxu1 %v6536_v0  ;;  %v4506_v35 = vpop.f32.mrb[53].mxu0  ;;  %v3034_v36 = vld [vmem:[%s8164_s18 + $0x18] sm:$0xff] }
0x1493   :  { %v4507_v18 = vadd.f32 %v4506_v35, %v7838_v60  ;;  %v6926_v9 = vpop.eup %6925  ;;  %6200 = vmatprep.subr.mxu1 %v3033_v26 }
0x1494   :  { %v4528_v16 = vsel %vm204_vm0, %v4512_v12, -inf  ;;  %v4197_v60 = vmul.f32 %v6926_v9, %v7993_v41 }
0x1495   :  { %v6221_v29 = vpop.f32.mrb[54].mxu0  ;;  %4529 = vmax.xlane.f32.xlu0 %v4528_v16  ;;  %6195 = vmatmul.mubr.msk.f32.vlgmr.msra.gmra.mrb[60].mxu1 %vm204_vm0, %v4195_v34  ;;  %v4525_v15 = vsel %vm204_vm0, %v4507_v18, -inf }
0x1496   :  { %v4522_v24 = vadd.f32 %v6221_v29, %v7843_v63  ;;  %v4516_v17 = vpop.f32.mrb[55].mxu0  ;;  %4526 = vmax.xlane.f32.xlu1 %v4525_v15  ;;  %6197 = vmatprep.mubr.msk.f32.mxu1 %vm204_vm0, %v4196_v19 }
0x1497   :  { %v4517_v22 = vadd.f32 %v4516_v17, %v7847_v20  ;;  %6201 = vmatpush3.msra.mxu1 %v3033_v26 }
0x1498   :  { %v4534_v3 = vsel %vm204_vm0, %v4522_v24, -inf }
0x1499   :  { %6198 = vmatmul.mubr.msk.f32.gmra.mrb[62].mxu1 %vm204_vm0, %v4197_v60  ;;  %v4531_v52 = vsel %vm204_vm0, %v4517_v22, -inf }
0x149a   :  { %4532 = vmax.xlane.f32.xlu0 %v4531_v52  ;;  %4535 = vmax.xlane.f32.xlu1 %v4534_v3 }
0x1522   :  { %v4530_v63 = vpop.xlane.xlu0 %4529 }
0x1523   :  { %v4538_v51 = vsub.f32 %v4512_v12, %v4530_v63  ;;  %v4527_v48 = vpop.xlane.xlu1 %4526 }
0x1524   :  { %v4537_v30 = vsub.f32 %v4507_v18, %v4527_v48 }
0x1525   :  { %v4543_v6 = vmul.f32 1.442695, %v4538_v51 }
0x1526   :  { %v4541_v33 = vmul.f32 1.442695, %v4537_v30 }
0x1527   :  { %6927 = vpow2.f32 %v4543_v6  ;;  %v4536_v20 = vpop.xlane.xlu1 %4535  ;;  %v4533_v38 = vpop.xlane.xlu0 %4532 }
0x1528   :  { %6929 = vpow2.f32 %v4541_v33  ;;  %v4540_v46 = vsub.f32 %v4522_v24, %v4536_v20  ;;  %v4539_v13 = vsub.f32 %v4517_v22, %v4533_v38  ;;  %v5433_v24 = vld [vmem:[%s8165_s22] ss:$0 sm:$0xff] }
0x152a   :  { %v4547_v55 = vmul.f32 1.442695, %v4540_v46  ;;  %v4545_v43 = vmul.f32 1.442695, %v4539_v13 }
0x152c   :  { %6931 = vpow2.f32 %v4547_v55 }
0x152d   :  { %6933 = vpow2.f32 %v4545_v43 }
0x1531   :  { %v6928_v21 = vpop.eup %6927 }
0x1532   :  { %v6930_v41 = vpop.eup %6929  ;;  %v4552_v40 = vsel %vm204_vm0, %v6928_v21, 0.0 }
0x1533   :  { %4553 = vadd.xlane.f32.xlu1 %v4552_v40  ;;  %v4549_v44 = vsel %vm204_vm0, %v6930_v41, 0.0 }
0x1534   :  { %4550 = vadd.xlane.f32.xlu0 %v4549_v44 }
0x1536   :  { %v6932_v47 = vpop.eup %6931 }
0x1537   :  { %v6934_v50 = vpop.eup %6933  ;;  %v4558_v53 = vsel %vm204_vm0, %v6932_v47, 0.0 }
0x1538   :  { %4559 = vadd.xlane.f32.xlu1 %v4558_v53  ;;  %v4555_v54 = vsel %vm204_vm0, %v6934_v50, 0.0 }
0x1539   :  { %4556 = vadd.xlane.f32.xlu0 %v4555_v54 }
0x1549   :  { %6779 = vrot.lane.b32.xlu1 %v7810_v49, %s7030_s13 }
0x154f   :  { %6774 = vrot.lane.b32.xlu0 %v7802_v39, %s7030_s13 }
0x1568   :  { %v6196_v56 = vpop.f32.mrb[60].mxu1 }
0x1569   :  { %v4288_v57 = vpop.f32.mrb[61].mxu1 }
0x156a   :  { %6202 = vmatprep.mubr.msk.f32.mxu1 %vm496_vm1, %v4288_v57 }
0x156b   :  { %6203 = vmatmul.mubr.msk.f32.vlgmr.msra.gmra.mrb[56].mxu1 %vm496_vm1, %v6196_v56 }
0x156c   :  { %v6199_v58 = vpop.f32.mrb[62].mxu1 }
0x156d   :  { %v4298_v59 = vpop.f32.mrb[63].mxu1 }
0x156e   :  { %6205 = vmatprep.mubr.msk.f32.mxu1 %vm496_vm1, %v4298_v59 }
0x156f   :  { %6206 = vmatmul.mubr.msk.f32.gmra.mrb[58].mxu1 %vm496_vm1, %v6199_v58 }
0x15c0   :  { %v4554_v28 = vpop.xlane.xlu1 %4553 }
0x15c1   :  { %v4551_v23 = vpop.xlane.xlu0 %4550 }
0x15c2   :  { %6935 = vrcp.f32 %v4551_v23 }
0x15c3   :  { %6937 = vrcp.f32 %v4554_v28 }
0x15c5   :  { %v4560_v61 = vpop.xlane.xlu1 %4559 }
0x15c6   :  { %v4557_v49 = vpop.xlane.xlu0 %4556 }
0x15c7   :  { %6939 = vrcp.f32 %v4557_v49  ;;  %v4868_v49 = vld [vmem:[%s8166_s23 + $0x8] sm:$0xff] }
0x15c8   :  { %6941 = vrcp.f32 %v4560_v61  ;;  %v4867_v61 = vld [vmem:[%s8166_s23] sm:$0xff] }
0x15c9   :  { %v6780_v39 = vpop.permute.xlu1 %6779 }
0x15ca   :  { %v6775_v62 = vpop.permute.xlu0 %6774  ;;  %v6782_v27 = vunpack.i.h.bf16 %v6780_v39  ;;  %v6781_v32 = vunpack.i.l.bf16 %v6780_v39  ;;  %v6560_v39 = vpack.c.bf16 %v4868_v49, %v4867_v61  ;;  %v5441_v49 = vld [vmem:[%s7232_s29] ss:$0 sm:$0xff] }
0x15cb   :  { %v6777_v1 = vunpack.i.h.bf16 %v6775_v62  ;;  %v6776_v2 = vunpack.i.l.bf16 %v6775_v62  ;;  %v4869_v62 = vld [vmem:[%s8166_s23 + $0x10] sm:$0xff] }
0x15cc   :  { %v6936_v4 = vpop.eup %6935  ;;  %v6556_v10 = vpack.c.bf16 %v6782_v27, %v6781_v32  ;;  %v4870_v27 = vld [vmem:[%s8166_s23 + $0x18] sm:$0xff]  ;;  %6561 = vmatprep.subr.bf16.mxu0 %v6560_v39 }
0x15cd   :  { %v6552_v0 = vpack.c.bf16 %v6777_v1, %v6776_v2  ;;  %v4565_v5 = vmul.f32 %v6936_v4, %v6930_v41  ;;  %v6938_v11 = vpop.eup %6937  ;;  %v6564_v32 = vpack.c.bf16 %v4870_v27, %v4869_v62  ;;  %6563 = vmatpush3.bf16.msra.mxu0 %v6560_v39  ;;  %v4979_v1 = vld [vmem:[%s8167_s26] sm:$0xff]  ;;  %v4980_v2 = vld [vmem:[%s8167_s26 + $0x8] sm:$0xff] }
0x15ce   :  { %v4566_v35 = vmul.f32 %v6938_v11, %v6928_v21  ;;  %v6568_v4 = vpack.c.bf16 %v4980_v2, %v4979_v1 }
0x15cf   :  { %6553 = vmatprep.subr.bf16.mxu1 %v6552_v0  ;;  %6230 = vmatprep.mubr.msk.f32.mxu1 %vm204_vm0, %v4565_v5 }
0x15d0   :  { %6555 = vmatpush3.bf16.msra.mxu1 %v6552_v0  ;;  %6565 = vmatprep.subr.bf16.mxu0 %v6564_v32 }
0x15d1   :  { %6557 = vmatprep.subr.bf16.mxu1 %v6556_v10  ;;  %v6940_v12 = vpop.eup %6939  ;;  %6567 = vmatpush3.bf16.msra.mxu0 %v6564_v32 }
0x15d2   :  { %v6942_v34 = vpop.eup %6941  ;;  %v4567_v18 = vmul.f32 %v6940_v12, %v6934_v50  ;;  %6569 = vmatprep.subr.bf16.mxu0 %v6568_v4 }
0x15d3   :  { %v4568_v9 = vmul.f32 %v6942_v34, %v6932_v47 }
0x15d4   :  { %6559 = vmatpush3.bf16.msra.mxu1 %v6556_v10 }
0x15d5   :  { %6236 = vmatprep.subr.mxu1 %v3034_v36 }
0x15d7   :  { %6231 = vmatmul.mubr.msk.f32.vlgmr.msra.gmra.mrb[64].mxu1 %vm204_vm0, %v4566_v35 }
0x15d8   :  { %6233 = vmatprep.mubr.msk.f32.mxu1 %vm204_vm0, %v4567_v18  ;;  %6237 = vmatpush3.msra.mxu1 %v3034_v36 }
0x15db   :  { %6234 = vmatmul.mubr.msk.f32.gmra.mrb[66].mxu1 %vm204_vm0, %v4568_v9 }
0x16aa   :  { %v6232_v16 = vpop.f32.mrb[64].mxu1 }
0x16ab   :  { %v4659_v19 = vpop.f32.mrb[65].mxu1 }
0x16ac   :  { %6238 = vmatprep.mubr.msk.f32.mxu1 %vm496_vm1, %v4659_v19 }
0x16ad   :  { %6239 = vmatmul.mubr.msk.f32.vlgmr.msra.gmra.mrb[56].mxu1 %vm496_vm1, %v6232_v16 }
0x16ae   :  { %v6235_v29 = vpop.f32.mrb[66].mxu1 }
0x16af   :  { %v4669_v15 = vpop.f32.mrb[67].mxu1 }
0x16b0   :  { %6241 = vmatprep.mubr.msk.f32.mxu1 %vm496_vm1, %v4669_v15  ;;  %v5434_v15 = vld [vmem:[%s8168_s28] ss:$0 sm:$0xff] }
0x16b1   :  { %6242 = vmatmul.mubr.msk.f32.gmra.mrb[58].mxu1 %vm496_vm1, %v6235_v29 }
0x1780   :  { %v6240_v17 = vpop.f32.mrb[56].mxu1 }
0x1781   :  { %v4786_v22 = vadd.f32 %v6240_v17, %v5433_v24  ;;  %v4756_v60 = vpop.f32.mrb[57].mxu1 }
0x1782   :  { %v4785_v3 = vadd.f32 %v5433_v24, %v4756_v60  ;;  %v5435_v60 = vld [vmem:[%s8169_s1] ss:$0 sm:$0xff] }
0x1783   :  { %v4790_v52 = vadd.f32 %v4786_v22, %v7765_v31 }
0x1784   :  { %v4789_v26 = vadd.f32 %v4785_v3, %v7760_v8  ;;  %v6243_v63 = vpop.f32.mrb[58].mxu1 }
0x1785   :  { %v4788_v51 = vadd.f32 %v6243_v63, %v5433_v24  ;;  %v4766_v48 = vpop.f32.mrb[59].mxu1  ;;  %v4798_v30 = vsel %vm204_vm0, %v4790_v52, 0.0  ;;  %v4982_v63 = vld [vmem:[%s8167_s26 + $0x18] sm:$0xff] }
0x1786   :  { %v4787_v6 = vadd.f32 %v5433_v24, %v4766_v48  ;;  %4799 = vadd.xlane.f32.xlu0 %v4798_v30  ;;  %v4795_v33 = vsel %vm204_vm0, %v4789_v26, 0.0 }
0x1787   :  { %v4792_v20 = vadd.f32 %v4788_v51, %v7788_v45  ;;  %4796 = vadd.xlane.f32.xlu1 %v4795_v33 }
0x1788   :  { %v4791_v38 = vadd.f32 %v4787_v6, %v7783_v42 }
0x1789   :  { %v4804_v46 = vsel %vm204_vm0, %v4792_v20, 0.0 }
0x178a   :  { %v4801_v31 = vsel %vm204_vm0, %v4791_v38, 0.0 }
0x178b   :  { %4805 = vadd.xlane.f32.xlu1 %v4804_v46  ;;  %4802 = vadd.xlane.f32.xlu0 %v4801_v31 }
0x1813   :  { %v4800_v8 = vpop.xlane.xlu0 %4799 }
0x1814   :  { %v4808_v13 = vmul.f32 0.03125, %v4800_v8  ;;  %v4797_v55 = vpop.xlane.xlu1 %4796  ;;  %v4983_v8 = vld [vmem:[%s8167_s26 + $0x20] sm:$0xff] }
0x1815   :  { %v4807_v43 = vmul.f32 0.03125, %v4797_v55 }
0x1816   :  { %v4812_v21 = vsub.f32 %v4790_v52, %v4808_v13  ;;  %v4984_v13 = vld [vmem:[%s8167_s26 + $0x28] sm:$0xff] }
0x1817   :  { %v4811_v41 = vsub.f32 %v4789_v26, %v4807_v43  ;;  %v4981_v26 = vld [vmem:[%s8167_s26 + $0x10] sm:$0xff] }
0x1818   :  { %v4806_v40 = vpop.xlane.xlu1 %4805  ;;  %v4803_v44 = vpop.xlane.xlu0 %4802  ;;  %v4816_v47 = vmul.f32 %v4812_v21, %v4812_v21 }
0x1819   :  { %v4810_v45 = vmul.f32 0.03125, %v4806_v40  ;;  %v4809_v50 = vmul.f32 0.03125, %v4803_v44  ;;  %v4815_v42 = vmul.f32 %v4811_v41, %v4811_v41  ;;  %v4986_v40 = vld [vmem:[%s8167_s26 + $0x38] sm:$0xff] }
0x181a   :  { %v4822_v53 = vsel %vm204_vm0, %v4816_v47, 0.0  ;;  %v5436_v47 = vld [vmem:[%s8170_s2] ss:$0 sm:$0xff] }
0x181b   :  { %v4814_v54 = vsub.f32 %v4792_v20, %v4810_v45  ;;  %v4813_v56 = vsub.f32 %v4791_v38, %v4809_v50  ;;  %4823 = vadd.xlane.f32.xlu1 %v4822_v53  ;;  %v4819_v57 = vsel %vm204_vm0, %v4815_v42, 0.0  ;;  %v6572_v38 = vpack.c.bf16 %v4982_v63, %v4981_v26 }
0x181c   :  { %4820 = vadd.xlane.f32.xlu0 %v4819_v57 }
0x181d   :  { %v4818_v58 = vmul.f32 %v4814_v54, %v4814_v54  ;;  %v4817_v59 = vmul.f32 %v4813_v56, %v4813_v56 }
0x181f   :  { %v4828_v28 = vsel %vm204_vm0, %v4818_v58, 0.0  ;;  %v4825_v23 = vsel %vm204_vm0, %v4817_v59, 0.0 }
0x1820   :  { %4829 = vadd.xlane.f32.xlu1 %v4828_v28  ;;  %4826 = vadd.xlane.f32.xlu0 %v4825_v23 }
0x18a8   :  { %v4824_v0 = vpop.xlane.xlu1 %4823 }
0x18a9   :  { %v4832_v5 = vmul.f32 0.03125, %v4824_v0  ;;  %v4821_v10 = vpop.xlane.xlu0 %4820 }
0x18aa   :  { %v4831_v11 = vmul.f32 0.03125, %v4821_v10 }
0x18ab   :  { %v4836_v36 = vadd.f32 1e-05, %v4832_v5 }
0x18ac   :  { %v4835_v12 = vadd.f32 1e-05, %v4831_v11 }
0x18ad   :  { %6943 = vrsqrt.f32 %v4836_v36  ;;  %v4830_v35 = vpop.xlane.xlu1 %4829  ;;  %v4827_v34 = vpop.xlane.xlu0 %4826 }
0x18ae   :  { %6945 = vrsqrt.f32 %v4835_v12  ;;  %v4834_v18 = vmul.f32 0.03125, %v4830_v35  ;;  %v4833_v9 = vmul.f32 0.03125, %v4827_v34 }
0x18b0   :  { %v4838_v16 = vadd.f32 1e-05, %v4834_v18  ;;  %v4837_v19 = vadd.f32 1e-05, %v4833_v9 }
0x18b2   :  { %6947 = vrsqrt.f32 %v4838_v16 }
0x18b3   :  { %6949 = vrsqrt.f32 %v4837_v19 }
0x18b7   :  { %v6944_v29 = vpop.eup %6943 }
0x18b8   :  { %v6946_v24 = vpop.eup %6945  ;;  %v4844_v17 = vmul.f32 %v6944_v29, %v4812_v21  ;;  %v6576_v21 = vpack.c.bf16 %v4984_v13, %v4983_v8 }
0x18b9   :  { %v4843_v22 = vmul.f32 %v6946_v24, %v4811_v41  ;;  %v4985_v41 = vld [vmem:[%s8167_s26 + $0x30] sm:$0xff] }
0x18ba   :  { %v4854_v3 = vmul.f32 %v5434_v15, %v4844_v17  ;;  %v6580_v44 = vpack.c.bf16 %v4986_v40, %v4985_v41 }
0x18bb   :  { %v4853_v52 = vmul.f32 %v5434_v15, %v4843_v22 }
0x18bc   :  { %v6948_v51 = vpop.eup %6947  ;;  %v4864_v33 = vadd.f32 %v5435_v60, %v4854_v3 }
0x18bd   :  { %v6950_v48 = vpop.eup %6949  ;;  %v4863_v30 = vadd.f32 %v5435_v60, %v4853_v52  ;;  %v4846_v6 = vmul.f32 %v6948_v51, %v4814_v54 }
0x18be   :  { %v4845_v20 = vmul.f32 %v6950_v48, %v4813_v56 }
0x18bf   :  { %6252 = vmatprep.mubr.msk.f32.mxu0 %vm204_vm0, %v4863_v30  ;;  %v4856_v46 = vmul.f32 %v5434_v15, %v4846_v6 }
0x18c0   :  { %6253 = vmatmul.mubr.msk.f32.vlgmr.msra.gmra.mrb[56].mxu0 %vm204_vm0, %v4864_v33  ;;  %v4855_v31 = vmul.f32 %v5434_v15, %v4845_v20 }
0x18c1   :  { %v4866_v55 = vadd.f32 %v5435_v60, %v4856_v46  ;;  %6571 = vmatpush3.bf16.msra.mxu0 %v6568_v4 }
0x18c2   :  { %v4865_v43 = vadd.f32 %v5435_v60, %v4855_v31  ;;  %6573 = vmatprep.subr.bf16.mxu0 %v6572_v38 }
0x18c4   :  { %6255 = vmatprep.mubr.msk.f32.mxu0 %vm204_vm0, %v4865_v43 }
0x18c5   :  { %6256 = vmatmul.mubr.msk.f32.gmra.mrb[58].mxu0 %vm204_vm0, %v4866_v55 }
0x18c6   :  { %6575 = vmatpush3.bf16.msra.mxu0 %v6572_v38 }
0x18c7   :  { %6577 = vmatprep.subr.bf16.mxu0 %v6576_v21 }
0x18ca   :  { %6579 = vmatpush3.bf16.msra.mxu0 %v6576_v21 }
0x18cb   :  { %6581 = vmatprep.subr.bf16.mxu0 %v6580_v44 }
0x18ce   :  { %6583 = vmatpush3.bf16.msra.mxu0 %v6580_v44 }
0x1993   :  { %v6254_v45 = vpop.f32.mrb[56].mxu0 }
0x1994   :  { %v4962_v50 = vadd.f32 %v6254_v45, %v5436_v47  ;;  %v4956_v42 = vpop.f32.mrb[57].mxu0 }
0x1995   :  { %v4957_v53 = vadd.f32 %v5436_v47, %v4956_v42  ;;  %v5446_v42 = vld [vmem:[%s7237_s21] ss:$0 sm:$0xff]  ;;  %s7031_s21 = smov [#allocation2]  }
0x1996   :  { %v4976_v56 = vmax.f32 %v4962_v50, 0.0  ;;  %s5182_s29 = sshll.u32 %s7031_s21, 4  ;;  %s5183_s29 = int_to_ptr.vmem [resolvable:$true] %s5182_s29 }
0x1997   :  { %v4975_v54 = vmax.f32 %v4957_v53, 0.0  ;;  %p6968_p1 = scmp.lt.s32.totalorder %s5183_s29, %s5183_s29 }
0x1998   :  { %v6257_v57 = vpop.f32.mrb[58].mxu0 }
0x1999   :  { %v4972_v58 = vadd.f32 %v6257_v57, %v5436_v47  ;;  %v4966_v59 = vpop.f32.mrb[59].mxu0  ;;  %6274 = vmatprep.mubr.msk.f32.mxu0 %vm2173_vm3, %v4975_v54 }
0x199a   :  { %v4967_v28 = vadd.f32 %v5436_v47, %v4966_v59  ;;  %6275 = vmatmul.mubr.msk.f32.vlgmr.msra.gmra.mrb[60].mxu0 %vm2173_vm3, %v4976_v56  ;;  %v5447_v56 = vld [vmem:[%s7242_s6] ss:$0 sm:$0xff]  ;;  %s6963_s6 = scalar_lea.vmem %s5183_s29, 512 }
0x199b   :  { %v4978_v61 = vmax.f32 %v4972_v58, 0.0  ;;  %p6964_p0 = scmp.ne.s32.totalorder %s5183_s29, %s6963_s6  ;;  %p6969_p2 = scmp.lt.s32.totalorder %s6963_s6, %s6963_s6 }
0x199c   :  { %v4977_v23 = vmax.f32 %v4967_v28, 0.0 }
0x199d   :  { %p6970_p3 = por %p6969_p2, %p6968_p1 }
0x199e   :  { %6277 = vmatprep.mubr.msk.f32.mxu0 %vm2173_vm3, %v4977_v23 }
0x199f   :  { %6278 = vmatmul.mubr.msk.f32.gmra.mrb[62].mxu0 %vm2173_vm3, %v4978_v61  ;;  %p6971_p4 = pnand %p6970_p3, %p6964_p0 }
0x1a6d   :  { %v6276_v39 = vpop.f32.mrb[60].mxu0 }
0x1a6e   :  { %v5078_v62 = vadd.f32 %v6276_v39, %v5441_v49  ;;  %v5072_v27 = vpop.f32.mrb[61].mxu0 }
0x1a6f   :  { %v5073_v32 = vadd.f32 %v5441_v49, %v5072_v27 }
0x1a70   :  { %v5092_v1 = vadd.f32 %v5078_v62, %v4864_v33 }
0x1a71   :  { %v5091_v2 = vadd.f32 %v5073_v32, %v4863_v30 }
0x1a72   :  { %v6279_v4 = vpop.f32.mrb[62].mxu0  ;;  %v5100_v0 = vsel %vm204_vm0, %v5092_v1, 0.0 }
0x1a73   :  { %v5088_v5 = vadd.f32 %v6279_v4, %v5441_v49  ;;  %v5082_v10 = vpop.f32.mrb[63].mxu0  ;;  %5101 = vadd.xlane.f32.xlu1 %v5100_v0  ;;  %v5097_v11 = vsel %vm204_vm0, %v5091_v2, 0.0 }
0x1a74   :  { %v5083_v36 = vadd.f32 %v5441_v49, %v5082_v10  ;;  %5098 = vadd.xlane.f32.xlu0 %v5097_v11 }
0x1a75   :  { %v5094_v12 = vadd.f32 %v5088_v5, %v4866_v55 }
0x1a76   :  { %v5093_v35 = vadd.f32 %v5083_v36, %v4865_v43 }
0x1a77   :  { %v5106_v34 = vsel %vm204_vm0, %v5094_v12, 0.0 }
0x1a78   :  { %5107 = vadd.xlane.f32.xlu1 %v5106_v34  ;;  %v5103_v18 = vsel %vm204_vm0, %v5093_v35, 0.0 }
0x1a79   :  { %5104 = vadd.xlane.f32.xlu0 %v5103_v18 }
0x1b00   :  { %v5102_v9 = vpop.xlane.xlu1 %5101 }
0x1b01   :  { %v5110_v16 = vmul.f32 0.03125, %v5102_v9  ;;  %v5099_v19 = vpop.xlane.xlu0 %5098 }
0x1b02   :  { %v5109_v29 = vmul.f32 0.03125, %v5099_v19 }
0x1b03   :  { %v5114_v15 = vsub.f32 %v5092_v1, %v5110_v16 }
0x1b04   :  { %v5113_v24 = vsub.f32 %v5091_v2, %v5109_v29 }
0x1b05   :  { %v5108_v17 = vpop.xlane.xlu1 %5107  ;;  %v5118_v22 = vmul.f32 %v5114_v15, %v5114_v15 }
0x1b06   :  { %v5112_v60 = vmul.f32 0.03125, %v5108_v17  ;;  %v5105_v3 = vpop.xlane.xlu0 %5104  ;;  %v5117_v52 = vmul.f32 %v5113_v24, %v5113_v24 }
0x1b07   :  { %v5111_v26 = vmul.f32 0.03125, %v5105_v3  ;;  %v5124_v63 = vsel %vm204_vm0, %v5118_v22, 0.0 }
0x1b08   :  { %v5116_v51 = vsub.f32 %v5094_v12, %v5112_v60  ;;  %5125 = vadd.xlane.f32.xlu1 %v5124_v63  ;;  %v5121_v48 = vsel %vm204_vm0, %v5117_v52, 0.0 }
0x1b09   :  { %v5115_v30 = vsub.f32 %v5093_v35, %v5111_v26  ;;  %5122 = vadd.xlane.f32.xlu0 %v5121_v48 }
0x1b0a   :  { %v5120_v6 = vmul.f32 %v5116_v51, %v5116_v51 }
0x1b0b   :  { %v5119_v33 = vmul.f32 %v5115_v30, %v5115_v30 }
0x1b0c   :  { %v5130_v20 = vsel %vm204_vm0, %v5120_v6, 0.0 }
0x1b0d   :  { %5131 = vadd.xlane.f32.xlu1 %v5130_v20  ;;  %v5127_v38 = vsel %vm204_vm0, %v5119_v33, 0.0 }
0x1b0e   :  { %5128 = vadd.xlane.f32.xlu0 %v5127_v38 }
0x1b95   :  { %v5126_v46 = vpop.xlane.xlu1 %5125 }
0x1b96   :  { %v5134_v31 = vmul.f32 0.03125, %v5126_v46  ;;  %v5123_v8 = vpop.xlane.xlu0 %5122 }
0x1b97   :  { %v5133_v13 = vmul.f32 0.03125, %v5123_v8 }
0x1b98   :  { %v5138_v55 = vadd.f32 1e-05, %v5134_v31 }
0x1b99   :  { %v5137_v43 = vadd.f32 1e-05, %v5133_v13 }
0x1b9a   :  { %6951 = vrsqrt.f32 %v5138_v55  ;;  %v5132_v21 = vpop.xlane.xlu1 %5131 }
0x1b9b   :  { %6953 = vrsqrt.f32 %v5137_v43  ;;  %v5136_v41 = vmul.f32 0.03125, %v5132_v21  ;;  %v5129_v40 = vpop.xlane.xlu0 %5128 }
0x1b9c   :  { %v5135_v44 = vmul.f32 0.03125, %v5129_v40 }
0x1b9d   :  { %v5140_v47 = vadd.f32 1e-05, %v5136_v41 }
0x1b9e   :  { %v5139_v45 = vadd.f32 1e-05, %v5135_v44 }
0x1b9f   :  { %6955 = vrsqrt.f32 %v5140_v47 }
0x1ba0   :  { %6957 = vrsqrt.f32 %v5139_v45 }
0x1ba4   :  { %v6952_v50 = vpop.eup %6951 }
0x1ba5   :  { %v6954_v53 = vpop.eup %6953  ;;  %v5146_v54 = vmul.f32 %v6952_v50, %v5114_v15 }
0x1ba6   :  { %v5145_v57 = vmul.f32 %v6954_v53, %v5113_v24 }
0x1ba7   :  { %v5156_v58 = vmul.f32 %v5446_v42, %v5146_v54 }
0x1ba8   :  { %v5155_v59 = vmul.f32 %v5446_v42, %v5145_v57 }
0x1ba9   :  { %v6956_v28 = vpop.eup %6955  ;;  %v5166_v23 = vadd.f32 %v5447_v56, %v5156_v58 }
0x1baa   :  { %v6958_v61 = vpop.eup %6957  ;;  %v5165_v49 = vadd.f32 %v5447_v56, %v5155_v59  ;;  %v5148_v39 = vmul.f32 %v6956_v28, %v5116_v51 }
0x1bab   :  { %v5147_v62 = vmul.f32 %v6958_v61, %v5115_v30  ;;  %v5170_v27 = vadd.f32 %v5166_v23, %v7744_v25 }
0x1bac   :  { %v5158_v32 = vmul.f32 %v5446_v42, %v5148_v39  ;;  %v5169_v1 = vadd.f32 %v5165_v49, %v7750_v7 }
0x1bad   :  { %v5157_v2 = vmul.f32 %v5446_v42, %v5147_v62  ;;  %5174 = vst.msk [vmem:[#allocation2 + $0x8] sm:$0xff] %vm204_vm0, %v5170_v27 }
0x1bae   :  { %v5168_v4 = vadd.f32 %v5447_v56, %v5158_v32  ;;  %5173 = vst.msk [vmem:[#allocation2] sm:$0xff] %vm204_vm0, %v5169_v1 }
0x1baf   :  { %v5167_v0 = vadd.f32 %v5447_v56, %v5157_v2 }
0x1bb0   :  { %v5172_v5 = vadd.f32 %v5168_v4, %v7768_v14 }
0x1bb1   :  { %v5171_v10 = vadd.f32 %v5167_v0, %v7774_v37 }
0x1bb2   :  { %5176 = vst.msk [vmem:[#allocation2 + $0x18] sm:$0xff] %vm204_vm0, %v5172_v5 }
0x1bb3   :  { %5175 = vst.msk [vmem:[#allocation2 + $0x10] sm:$0xff] %vm204_vm0, %v5171_v10 }
0x1bb4   :  { %6974 = shalt.err (!%p6971_p4)
}
0x1bb5   :  { %s6975_s0 = scalar_lea.hbm %s7247_s4, 512 }
0x1bb6   :  { %p6976_p5 = scmp.ne.s32.totalorder %s7247_s4, %s6975_s0  ;;  %p6979_p6 = scmp.lt.u32.totalorder %s6975_s0, %s7247_s4 }
0x1bb8   :  { %p6981_p7 = pnand %p6979_p6, %p6976_p5 }
0x1bba   :  { %6984 = shalt.err (!%p6981_p7)
}
0x1bbb   :  { %s7032_s9 = smov 128   ;;  %s7033_s13 = smov 8  }
0x1bbc   :  { %5188 = dma.vmem_to_hbm [thread:$0]  %s5183_s29, 512, %s7247_s4, [#allocation3], %s7032_s9, %s7032_s9, %s7033_s13  }
0x1bbd   :  { %6985 = dma.done.wait [#allocation3], 512  }
0x1bbe   :  { %6986 = vsyncadd [#allocation3], 4294966784 }
0x1bbf   :  { %5192 = vsyncpa [#allocation3], 1 }

</bundles_post_ra>
